<compile_context>
chip_gen: v7x
topology: tpu7x:2x2x1
jax: 0.10.0
libtpu: 0.0.40
codegen_flags: <defaults>
</compile_context>

<pallas_src>
import functools
import math

import jax
import jax.numpy as jnp
from jax import lax
from jax.experimental import pallas as pl
from jax.experimental.pallas import tpu as pltpu

EPS = 1e-5  # nn.LayerNorm default eps


def _vmem_limit_bytes():
    # v7x: 64 MiB VMEM/TC -> cap near 48 MiB; v5e/v6e: 128 MiB -> ~96 MiB.
    try:
        cap = int(pltpu.get_tpu_info().vmem_capacity_bytes)
    except Exception:
        return 48 * 1024 * 1024
    return int(min(max(cap - 16 * 1024 * 1024, 32 * 1024 * 1024),
                   96 * 1024 * 1024))


VMEM_LIMIT = _vmem_limit_bytes()


def _cp(sem):
    return pltpu.CompilerParams(dimension_semantics=sem,
                                vmem_limit_bytes=VMEM_LIMIT)


def _ce(flops, transcendentals, bytes_accessed):
    return pl.CostEstimate(flops=int(flops),
                           transcendentals=int(transcendentals),
                           bytes_accessed=int(bytes_accessed))


# ----------------------------------------------------------------------------
# shared math (usable both inside Pallas kernels and in the pure-JAX reference)
# ----------------------------------------------------------------------------
def _layer_norm(x, g, b):
    mean = jnp.mean(x, axis=-1, keepdims=True)
    var = jnp.mean((x - mean) ** 2, axis=-1, keepdims=True)
    return (x - mean) * lax.rsqrt(var + EPS) * g + b


def _f32(x):
    return x.astype(jnp.float32)


def sinusoidal_positions(seq_len, dim, padding_idx):
    """MBartSinusoidalPositionalEmbedding.get_embedding (plain-JAX glue)."""
    half = dim // 2
    positions = jnp.arange(padding_idx + 1, seq_len + padding_idx + 1,
                           dtype=jnp.float32)
    emb = math.log(10000.0) / (half - 1)
    emb = jnp.exp(jnp.arange(half, dtype=jnp.float32) * -emb)
    emb = jnp.outer(positions, emb)
    emb = jnp.concatenate([jnp.sin(emb), jnp.cos(emb)], axis=1)
    if dim % 2 == 1:
        emb = jnp.pad(emb, ((0, 0), (0, 1)))
    return emb  # (seq_len, dim)


# ----------------------------------------------------------------------------
# Pallas kernels
# ----------------------------------------------------------------------------
def embed_ln_kernel(tok_ref, pos_ref, g_ref, b_ref, out_ref):
    # tok_ref: (tq, H) f32, pos_ref: (tq, H) f32, g/b: (1, H) f32 -> bf16 out
    x = tok_ref[...] + pos_ref[...]
    out_ref[...] = _layer_norm(x, g_ref[...], b_ref[...]).astype(out_ref.dtype)


def proj_kernel(apply_ln, out_dims, *refs):
    """(optional pre-LN) -> x @ W + b, split into len(out_dims) bf16 outputs."""
    if apply_ln:
        x_ref, g_ref, b_ref, w_ref, bias_ref = refs[:5]
        out_refs = refs[5:]
        h = _layer_norm(_f32(x_ref[...]), g_ref[...], b_ref[...])
        h = h.astype(jnp.bfloat16)
    else:
        x_ref, w_ref, bias_ref = refs[:3]
        out_refs = refs[3:]
        h = x_ref[...]                                    # already bf16
    y = jnp.dot(h, w_ref[...], preferred_element_type=jnp.float32)
    y = y + bias_ref[...]
    off = 0
    for ref, d in zip(out_refs, out_dims):
        ref[...] = y[:, off:off + d].astype(ref.dtype)    # 128-aligned slices
        off += d


def attn_kernel(head_dim, return_probs,
                x_ref, g_ref, b_ref, wq_ref, bq_ref, k_ref, v_ref,
                wo_ref, bo_ref, out_ref, *rest):
    """Fused pre-LN + Q-proj + single-head attention + out-proj + residual.

    Grid = (batch, q-tiles, heads); the head axis is a reduction: per-head
    out-projection contributions are accumulated into an f32 VMEM scratch.
    All BlockSpec-selected per-head slices (Wq, bq, K, V, Wo) arrive already
    sliced, so there is no masked sub-128-lane indexing in the kernel.
    """
    if return_probs:
        probs_ref, acc = rest
    else:
        (acc,) = rest
    h_idx = pl.program_id(2)
    x = _f32(x_ref[...])                                   # (tq, H) residual

    @pl.when(h_idx == 0)
    def _init():
        acc[...] = x + bo_ref[...]                         # residual + out bias

    hn = _layer_norm(x, g_ref[...], b_ref[...])
    q = jnp.dot(hn.astype(jnp.bfloat16), wq_ref[...],      # (tq, hd)
                preferred_element_type=jnp.float32)
    q = (q + bq_ref[...]) * (head_dim ** -0.5)             # fold scaling into q

    # scores: contract on head_dim without materializing k.T  (bf16 MXU)
    s = lax.dot_general(q.astype(jnp.bfloat16), k_ref[...],
                        dimension_numbers=(((1,), (1,)), ((), ())),
                        preferred_element_type=jnp.float32)  # (tq, S_kv)
    s = s - jnp.max(s, axis=-1, keepdims=True)
    p = jnp.exp(s)
    p = p * pl.reciprocal(jnp.sum(p, axis=-1, keepdims=True), approx=True)
    if return_probs:
        probs_ref[...] = p

    ctx = jnp.dot(p.astype(jnp.bfloat16), v_ref[...],       # (tq, hd)
                  preferred_element_type=jnp.float32)
    acc[...] += jnp.dot(ctx.astype(jnp.bfloat16), wo_ref[...],
                        preferred_element_type=jnp.float32)

    @pl.when(h_idx == pl.num_programs(2) - 1)
    def _done():
        out_ref[...] = acc[...].astype(out_ref.dtype)


def ffn_kernel(x_ref, g_ref, b_ref, w1_ref, b1_ref, w2_ref, b2_ref,
               out_ref, h_sc, acc_sc):
    """Pre-LN FFN, tiled over F (grid axis 2 = reduction, 'arbitrary')."""
    @pl.when(pl.program_id(2) == 0)
    def _init():
        x = _f32(x_ref[...])
        h_sc[...] = _layer_norm(x, g_ref[...], b_ref[...]).astype(jnp.bfloat16)
        acc_sc[...] = x + b2_ref[...]                      # residual + fc2 bias

    f = jnp.dot(h_sc[...], w1_ref[...],
                preferred_element_type=jnp.float32) + b1_ref[...]
    f = jnp.maximum(f, 0.0)                                # ReLU
    acc_sc[...] += jnp.dot(f.astype(jnp.bfloat16), w2_ref[...],
                           preferred_element_type=jnp.float32)

    @pl.when(pl.program_id(2) == pl.num_programs(2) - 1)
    def _done():
        out_ref[...] = acc_sc[...].astype(out_ref.dtype)


# ----------------------------------------------------------------------------
# pallas_call wrappers
# ----------------------------------------------------------------------------
def run_embed_ln(tok, pos, g, b, tq):
    B, S, H = tok.shape
    return pl.pallas_call(
        embed_ln_kernel,
        grid=(B, S // tq),
        in_specs=[
            pl.BlockSpec((None, tq, H), lambda bb, ss: (bb, ss, 0)),
            pl.BlockSpec((tq, H), lambda bb, ss: (ss, 0)),
            pl.BlockSpec((1, H), lambda bb, ss: (0, 0)),
            pl.BlockSpec((1, H), lambda bb, ss: (0, 0)),
        ],
        out_specs=pl.BlockSpec((None, tq, H), lambda bb, ss: (bb, ss, 0)),
        out_shape=jax.ShapeDtypeStruct((B, S, H), jnp.bfloat16),
        compiler_params=_cp(("parallel", "parallel")),
    )(tok, pos, g, b)


def run_proj(x, w, bias, out_dims, ln, tq):
    B, S, Din = x.shape
    Dout = w.shape[1]
    apply_ln = ln is not None
    kernel = functools.partial(proj_kernel, apply_ln, tuple(out_dims))

    in_specs = [pl.BlockSpec((None, tq, Din), lambda bb, ss: (bb, ss, 0))]
    inputs = [x]
    if apply_ln:
        in_specs += [pl.BlockSpec((1, Din), lambda bb, ss: (0, 0)),
                     pl.BlockSpec((1, Din), lambda bb, ss: (0, 0))]
        inputs += [ln[0], ln[1]]
    in_specs += [pl.BlockSpec((Din, Dout), lambda bb, ss: (0, 0)),
                 pl.BlockSpec((1, Dout), lambda bb, ss: (0, 0))]
    inputs += [w, bias]

    out_shape = tuple(jax.ShapeDtypeStruct((B, S, d), jnp.bfloat16)
                      for d in out_dims)
    out_specs = tuple(pl.BlockSpec((None, tq, d), lambda bb, ss: (bb, ss, 0))
                      for d in out_dims)

    outs = pl.pallas_call(
        kernel,
        grid=(B, S // tq),
        in_specs=in_specs,
        out_specs=out_specs,
        out_shape=out_shape,
        compiler_params=_cp(("parallel", "parallel")),
        cost_estimate=_ce(2 * B * S * Din * Dout, 0,
                          2 * (B * S * (Din + Dout) + Din * Dout)),
    )(*inputs)
    if not isinstance(outs, (tuple, list)):
        outs = (outs,)
    return tuple(outs)


def run_attention(x, k, v, ln_g, ln_b, wq, bq, wo, bo, num_heads, tq,
                  return_probs=False):
    """x: (B,T,H) bf16 residual/query source; k/v: (B,S_kv,H) bf16."""
    B, T, H = x.shape
    S_kv = k.shape[1]
    hd = H // num_heads
    kernel = functools.partial(attn_kernel, hd, return_probs)

    in_specs = [
        pl.BlockSpec((None, tq, H), lambda bb, qt, hh: (bb, qt, 0)),   # x
        pl.BlockSpec((1, H), lambda bb, qt, hh: (0, 0)),               # ln g
        pl.BlockSpec((1, H), lambda bb, qt, hh: (0, 0)),               # ln b
        pl.BlockSpec((H, hd), lambda bb, qt, hh: (0, hh)),             # Wq head
        pl.BlockSpec((1, hd), lambda bb, qt, hh: (0, hh)),             # bq head
        pl.BlockSpec((None, S_kv, hd), lambda bb, qt, hh: (bb, 0, hh)),  # K
        pl.BlockSpec((None, S_kv, hd), lambda bb, qt, hh: (bb, 0, hh)),  # V
        pl.BlockSpec((hd, H), lambda bb, qt, hh: (hh, 0)),             # Wo head
        pl.BlockSpec((1, H), lambda bb, qt, hh: (0, 0)),               # bo
    ]
    out_shape = [jax.ShapeDtypeStruct((B, T, H), jnp.bfloat16)]
    out_specs = [pl.BlockSpec((None, tq, H), lambda bb, qt, hh: (bb, qt, 0))]
    if return_probs:
        out_shape.append(
            jax.ShapeDtypeStruct((B, num_heads, T, S_kv), jnp.float32))
        out_specs.append(
            pl.BlockSpec((None, None, tq, S_kv),
                         lambda bb, qt, hh: (bb, hh, qt, 0)))

    flops = 4 * B * T * H * H + 4 * B * T * S_kv * H
    byts = 2 * (2 * B * T * H + 2 * B * S_kv * H + 2 * H * H)
    if return_probs:
        byts += 4 * B * num_heads * T * S_kv

    outs = pl.pallas_call(
        kernel,
        grid=(B, T // tq, num_heads),
        in_specs=in_specs,
        out_specs=out_specs,
        out_shape=out_shape,
        scratch_shapes=[pltpu.VMEM((tq, H), jnp.float32)],   # out accumulator
        compiler_params=_cp(("parallel", "parallel", "arbitrary")),
        cost_estimate=_ce(flops, B * num_heads * T * S_kv, byts),
    )(x, ln_g, ln_b, wq, bq, k, v, wo, bo)

    if return_probs:
        return outs[0], outs[1]
    return outs[0] if isinstance(outs, (tuple, list)) else outs


def run_ffn(x, g, b, w1, b1, w2, b2, tq, tf):
    B, S, H = x.shape
    F = w1.shape[1]
    return pl.pallas_call(
        ffn_kernel,
        grid=(B, S // tq, F // tf),
        in_specs=[
            pl.BlockSpec((None, tq, H), lambda bb, ss, ff: (bb, ss, 0)),
            pl.BlockSpec((1, H), lambda bb, ss, ff: (0, 0)),
            pl.BlockSpec((1, H), lambda bb, ss, ff: (0, 0)),
            pl.BlockSpec((H, tf), lambda bb, ss, ff: (0, ff)),   # fc1 W tile
            pl.BlockSpec((1, tf), lambda bb, ss, ff: (0, ff)),   # fc1 b tile
            pl.BlockSpec((tf, H), lambda bb, ss, ff: (ff, 0)),   # fc2 W tile
            pl.BlockSpec((1, H), lambda bb, ss, ff: (0, 0)),
        ],
        out_specs=pl.BlockSpec((None, tq, H), lambda bb, ss, ff: (bb, ss, 0)),
        out_shape=jax.ShapeDtypeStruct((B, S, H), jnp.bfloat16),
        scratch_shapes=[pltpu.VMEM((tq, H), jnp.bfloat16),   # LN(x) (bf16)
                        pltpu.VMEM((tq, H), jnp.float32)],   # accumulator
        compiler_params=_cp(("parallel", "parallel", "arbitrary")),
        cost_estimate=_ce(4 * B * S * H * F, 0,
                          2 * (2 * B * S * H + 2 * H * F)),
    )(x, g, b, w1, b1, w2, b2)


# ----------------------------------------------------------------------------
# model forward (Pallas path)
# ----------------------------------------------------------------------------
def mbart_encoder_forward(input_ids, params, num_heads, tq, tf, pad_id):
    B, S = input_ids.shape
    H = params["enc_embed_tokens"].shape[1]
    tok = params["enc_embed_tokens"][input_ids]          # JAX glue gather
    pos = sinusoidal_positions(S, H, pad_id)
    x = run_embed_ln(tok, pos, params["enc_ln_emb_g"], params["enc_ln_emb_b"],
                     tq)
    all_layers = []
    for lp in params["enc_layers"]:
        k, v = run_proj(x, lp["wkv"], lp["bkv"], (H, H),
                        ln=(lp["ln1_g"], lp["ln1_b"]), tq=tq)
        x = run_attention(x, k, v, lp["ln1_g"], lp["ln1_b"],
                          lp["wq"], lp["bq"], lp["wo"], lp["bo"],
                          num_heads, tq)
        x = run_ffn(x, lp["ln2_g"], lp["ln2_b"],
                    lp["w1"], lp["b1"], lp["w2"], lp["b2"], tq, tf)
        all_layers.append(x)
    return x, all_layers


def mbart_decoder_forward(decoder_input_ids, encoder_states, params,
                          num_heads, tq, tf, pad_id):
    B, T = decoder_input_ids.shape
    H = params["dec_embed_tokens"].shape[1]
    tok = params["dec_embed_tokens"][decoder_input_ids]
    pos = sinusoidal_positions(T, H, pad_id)
    y = run_embed_ln(tok, pos, params["dec_ln_emb_g"], params["dec_ln_emb_b"],
                     tq)
    all_dec, all_cross = [], []
    for lp in params["dec_layers"]:
        # self attention (K/V from LN'd decoder states)
        k, v = run_proj(y, lp["self_wkv"], lp["self_bkv"], (H, H),
                        ln=(lp["self_ln_g"], lp["self_ln_b"]), tq=tq)
        y = run_attention(y, k, v, lp["self_ln_g"], lp["self_ln_b"],
                          lp["self_wq"], lp["self_bq"],
                          lp["self_wo"], lp["self_bo"], num_heads, tq)
        # cross attention (K/V from encoder states, Q fused in-kernel)
        ck, cv = run_proj(encoder_states, lp["cross_wkv"], lp["cross_bkv"],
                          (H, H), ln=None, tq=tq)
        y, cross_p = run_attention(y, ck, cv, lp["cross_ln_g"],
                                   lp["cross_ln_b"], lp["cross_wq"],
                                   lp["cross_bq"], lp["cross_wo"],
                                   lp["cross_bo"], num_heads, tq,
                                   return_probs=True)
        # FFN
        y = run_ffn(y, lp["ffn_ln_g"], lp["ffn_ln_b"],
                    lp["w1"], lp["b1"], lp["w2"], lp["b2"], tq, tf)
        all_dec.append(y)
        all_cross.append(cross_p)
    return y, all_dec, all_cross


def mbart_model_forward(input_ids, decoder_input_ids, params, num_heads,
                        tq, tf, pad_id):
    enc_states, _ = mbart_encoder_forward(input_ids, params, num_heads,
                                          tq, tf, pad_id)
    return mbart_decoder_forward(decoder_input_ids, enc_states, params,
                                 num_heads, tq, tf, pad_id)


# ----------------------------------------------------------------------------
# pure-JAX reference (mirrors the kernel path's bf16 staging points)
# ----------------------------------------------------------------------------
def _ref_kv(x, w, bias, ln):
    h = _f32(x)
    if ln is not None:
        h = _layer_norm(h, ln[0], ln[1])
    h = h.astype(jnp.bfloat16)
    y = jnp.dot(_f32(h), _f32(w)) + bias
    Hd = w.shape[1] // 2
    return (y[..., :Hd].astype(jnp.bfloat16),
            y[..., Hd:].astype(jnp.bfloat16))


def _ref_attention(x, k, v, ln_g, ln_b, wq, bq, wo, bo, nh):
    B, T, H = x.shape
    S = k.shape[1]
    hd = H // nh
    xf = _f32(x)
    h = _layer_norm(xf, ln_g, ln_b).astype(jnp.bfloat16)
    q = (jnp.dot(_f32(h), _f32(wq)) + bq) * (hd ** -0.5)
    qh = _f32(q.reshape(B, T, nh, hd).transpose(0, 2, 1, 3)
              .astype(jnp.bfloat16))
    kh = _f32(k).reshape(B, S, nh, hd).transpose(0, 2, 1, 3)
    vh = _f32(v).reshape(B, S, nh, hd).transpose(0, 2, 1, 3)
    s = jnp.einsum("bhqd,bhkd->bhqk", qh, kh)
    p = jax.nn.softmax(s, axis=-1)
    ctx = jnp.einsum("bhqk,bhkd->bhqd", _f32(p.astype(jnp.bfloat16)), vh)
    ctx = ctx.transpose(0, 2, 1, 3).reshape(B, T, H)
    out = xf + jnp.dot(_f32(ctx.astype(jnp.bfloat16)), _f32(wo)) + bo
    return out.astype(jnp.bfloat16), p


def _ref_ffn(x, g, b, w1, b1, w2, b2):
    xf = _f32(x)
    h = _layer_norm(xf, g, b).astype(jnp.bfloat16)
    f = jnp.maximum(jnp.dot(_f32(h), _f32(w1)) + b1, 0.0)
    y = xf + b2 + jnp.dot(_f32(f.astype(jnp.bfloat16)), _f32(w2))
    return y.astype(jnp.bfloat16)


def reference_forward(input_ids, decoder_input_ids, params, nh, pad_id):
    H = params["enc_embed_tokens"].shape[1]
    B, S = input_ids.shape
    _, T = decoder_input_ids.shape

    tok = params["enc_embed_tokens"][input_ids]
    pos = sinusoidal_positions(S, H, pad_id)
    x = _layer_norm(tok + pos[None], params["enc_ln_emb_g"],
                    params["enc_ln_emb_b"]).astype(jnp.bfloat16)
    for lp in params["enc_layers"]:
        k, v = _ref_kv(x, lp["wkv"], lp["bkv"], (lp["ln1_g"], lp["ln1_b"]))
        x, _ = _ref_attention(x, k, v, lp["ln1_g"], lp["ln1_b"],
                              lp["wq"], lp["bq"], lp["wo"], lp["bo"], nh)
        x = _ref_ffn(x, lp["ln2_g"], lp["ln2_b"],
                     lp["w1"], lp["b1"], lp["w2"], lp["b2"])
    enc_out = x

    tok = params["dec_embed_tokens"][decoder_input_ids]
    pos = sinusoidal_positions(T, H, pad_id)
    y = _layer_norm(tok + pos[None], params["dec_ln_emb_g"],
                    params["dec_ln_emb_b"]).astype(jnp.bfloat16)
    all_dec, all_cross = [], []
    for lp in params["dec_layers"]:
        k, v = _ref_kv(y, lp["self_wkv"], lp["self_bkv"],
                       (lp["self_ln_g"], lp["self_ln_b"]))
        y, _ = _ref_attention(y, k, v, lp["self_ln_g"], lp["self_ln_b"],
                              lp["self_wq"], lp["self_bq"],
                              lp["self_wo"], lp["self_bo"], nh)
        k, v = _ref_kv(enc_out, lp["cross_wkv"], lp["cross_bkv"], None)
        y, cross_p = _ref_attention(y, k, v, lp["cross_ln_g"],
                                    lp["cross_ln_b"], lp["cross_wq"],
                                    lp["cross_bq"], lp["cross_wo"],
                                    lp["cross_bo"], nh)
        y = _ref_ffn(y, lp["ffn_ln_g"], lp["ffn_ln_b"],
                     lp["w1"], lp["b1"], lp["w2"], lp["b2"])
        all_dec.append(y)
        all_cross.append(cross_p)
    return y, all_dec, all_cross


# ----------------------------------------------------------------------------
# deterministic parameter init (weights bf16, biases / LN params f32)
# ----------------------------------------------------------------------------
def init_params(key, vocab, H, F, n_enc, n_dec, pad_id):
    keys = iter(jax.random.split(key, 256))

    def w(shape, dtype=jnp.bfloat16):
        return (jax.random.normal(next(keys), shape, jnp.float32)
                * 0.02).astype(dtype)

    def bias(d):
        return jax.random.normal(next(keys), (1, d), jnp.float32) * 0.02

    def ln(d):
        g = 1.0 + 0.1 * jax.random.normal(next(keys), (1, d), jnp.float32)
        b = 0.1 * jax.random.normal(next(keys), (1, d), jnp.float32)
        return g, b

    enc_emb = w((vocab, H), dtype=jnp.float32).at[pad_id].set(0.0)
    dec_emb = w((vocab, H), dtype=jnp.float32).at[pad_id].set(0.0)
    eg, eb = ln(H)
    dg, db = ln(H)
    params = {
        "enc_embed_tokens": enc_emb, "dec_embed_tokens": dec_emb,
        "enc_ln_emb_g": eg, "enc_ln_emb_b": eb,
        "dec_ln_emb_g": dg, "dec_ln_emb_b": db,
        "enc_layers": [], "dec_layers": [],
    }
    for _ in range(n_enc):
        g1, b1_ = ln(H)
        g2, b2_ = ln(H)
        params["enc_layers"].append({
            "ln1_g": g1, "ln1_b": b1_,
            "wq": w((H, H)), "bq": bias(H),
            "wkv": w((H, 2 * H)), "bkv": bias(2 * H),
            "wo": w((H, H)), "bo": bias(H),
            "ln2_g": g2, "ln2_b": b2_,
            "w1": w((H, F)), "b1": bias(F),
            "w2": w((F, H)), "b2": bias(H),
        })
    for _ in range(n_dec):
        sg, sb = ln(H)
        cg, cb = ln(H)
        fg, fb = ln(H)
        params["dec_layers"].append({
            "self_ln_g": sg, "self_ln_b": sb,
            "self_wq": w((H, H)), "self_bq": bias(H),
            "self_wkv": w((H, 2 * H)), "self_bkv": bias(2 * H),
            "self_wo": w((H, H)), "self_bo": bias(H),
            "cross_ln_g": cg, "cross_ln_b": cb,
            "cross_wq": w((H, H)), "cross_bq": bias(H),
            "cross_wkv": w((H, 2 * H)), "cross_bkv": bias(2 * H),
            "cross_wo": w((H, H)), "cross_bo": bias(H),
            "ffn_ln_g": fg, "ffn_ln_b": fb,
            "w1": w((H, F)), "b1": bias(F),
            "w2": w((F, H)), "b2": bias(H),
        })
    return params


# ----------------------------------------------------------------------------
if __name__ == "__main__":
    VOCAB = 100
    HIDDEN = 256          # head_dim = 128 -> lane-dense per-head blocks
    FFN_DIM = 512
    NUM_HEADS = 2
    ENC_LAYERS = 2
    DEC_LAYERS = 2
    PAD_TOKEN_ID = 1
    B, S_ENC, S_DEC = 2, 8, 8
    TQ = 8                       # == seq here; use 128-512 at real shapes
    TF = min(FFN_DIM, 512)       # FFN reduction tile

    key = jax.random.PRNGKey(0)
    kp, k1, k2 = jax.random.split(key, 3)
    params = init_params(kp, VOCAB, HIDDEN, FFN_DIM, ENC_LAYERS, DEC_LAYERS,
                         PAD_TOKEN_ID)
    input_ids = jax.random.randint(k1, (B, S_ENC), 2, VOCAB)
    decoder_input_ids = jax.random.randint(k2, (B, S_DEC), 2, VOCAB)

    fwd = jax.jit(functools.partial(mbart_model_forward,
                                    num_heads=NUM_HEADS, tq=TQ, tf=TF,
                                    pad_id=PAD_TOKEN_ID))
    dec_states, all_dec, all_cross = fwd(input_ids, decoder_input_ids, params)
    dec_states = jax.block_until_ready(dec_states)
    for a in list(all_dec) + list(all_cross):
        jax.block_until_ready(a)

    ref_fn = jax.jit(functools.partial(reference_forward, nh=NUM_HEADS,
                                       pad_id=PAD_TOKEN_ID))
    ref_dec, _, ref_all_cross = ref_fn(input_ids, decoder_input_ids, params)
    ref_dec = jax.block_until_ready(ref_dec)

    assert dec_states.shape == (B, S_DEC, HIDDEN)
    assert len(all_dec) == DEC_LAYERS and len(all_cross) == DEC_LAYERS
    assert all_cross[-1].shape == (B, NUM_HEADS, S_DEC, S_ENC)

    d_hidden = float(jnp.max(jnp.abs(_f32(dec_states) - _f32(ref_dec))))
    d_probs = float(jnp.max(jnp.abs(all_cross[-1] - ref_all_cross[-1])))
    assert jnp.allclose(_f32(dec_states), _f32(ref_dec),
                        atol=3e-2, rtol=3e-2), d_hidden
    assert jnp.allclose(all_cross[-1], ref_all_cross[-1],
                        atol=3e-2, rtol=3e-2), d_probs

    print("KERNEL_OK")
</pallas_src>

<mosaic_0001>
module attributes {stable_mosaic.version = 11 : i64} {
  func.func @proj_kernel(%arg0: i32, %arg1: i32, %arg2: memref<1x8x256xbf16, #tpu.memory_space<vmem>>, %arg3: memref<1x256xf32, #tpu.memory_space<vmem>>, %arg4: memref<1x256xf32, #tpu.memory_space<vmem>>, %arg5: memref<256x512xbf16, #tpu.memory_space<vmem>>, %arg6: memref<1x512xf32, #tpu.memory_space<vmem>>, %arg7: memref<1x8x256xbf16, #tpu.memory_space<vmem>>, %arg8: memref<1x8x256xbf16, #tpu.memory_space<vmem>>) attributes {dimension_semantics = [#tpu.dimension_semantics<parallel>, #tpu.dimension_semantics<parallel>], iteration_bounds = array<i64: 2, 1>, scalar_prefetch = 0 : i64, scratch_operands = 0 : i64, tpu.core_type = #tpu.core_type<tc>, window_params = [{transform_indices = @transform_0, window_bounds = array<i64: 1, 8, 256>}, {pipeline_mode = #tpu.pipeline_mode<synchronous>, transform_indices = @transform_1, window_bounds = array<i64: 1, 256>}, {pipeline_mode = #tpu.pipeline_mode<synchronous>, transform_indices = @transform_2, window_bounds = array<i64: 1, 256>}, {pipeline_mode = #tpu.pipeline_mode<synchronous>, transform_indices = @transform_3, window_bounds = array<i64: 256, 512>}, {pipeline_mode = #tpu.pipeline_mode<synchronous>, transform_indices = @transform_4, window_bounds = array<i64: 1, 512>}, {transform_indices = @transform_5, window_bounds = array<i64: 1, 8, 256>}, {transform_indices = @transform_6, window_bounds = array<i64: 1, 8, 256>}]} {
    %c0 = arith.constant 0 : index
    %c0_0 = arith.constant 0 : index
    %c0_1 = arith.constant 0 : index
    %0 = vector.load %arg2[%c0, %c0_0, %c0_1] : memref<1x8x256xbf16, #tpu.memory_space<vmem>>, vector<1x8x256xbf16>
    %1 = vector.shape_cast %0 : vector<1x8x256xbf16> to vector<8x256xbf16>
    %2 = arith.extf %1 : vector<8x256xbf16> to vector<8x256xf32>
    %c0_2 = arith.constant 0 : index
    %c0_3 = arith.constant 0 : index
    %3 = vector.load %arg3[%c0_2, %c0_3] : memref<1x256xf32, #tpu.memory_space<vmem>>, vector<1x256xf32>
    %c0_4 = arith.constant 0 : index
    %c0_5 = arith.constant 0 : index
    %4 = vector.load %arg4[%c0_4, %c0_5] : memref<1x256xf32, #tpu.memory_space<vmem>>, vector<1x256xf32>
    %cst = arith.constant dense<0.000000e+00> : vector<8xf32>
    %5 = vector.multi_reduction <add>, %2, %cst [1] : vector<8x256xf32> to vector<8xf32>
    %6 = vector.shape_cast %5 : vector<8xf32> to vector<8x1xf32>
    %cst_6 = arith.constant 2.560000e+02 : f32
    %7 = vector.broadcast %cst_6 : f32 to vector<8x1xf32>
    %8 = arith.divf %6, %7 : vector<8x1xf32>
    %9 = vector.broadcast %8 : vector<8x1xf32> to vector<8x256xf32>
    %10 = arith.subf %2, %9 : vector<8x256xf32>
    %11 = arith.mulf %10, %10 : vector<8x256xf32>
    %cst_7 = arith.constant dense<0.000000e+00> : vector<8xf32>
    %12 = vector.multi_reduction <add>, %11, %cst_7 [1] : vector<8x256xf32> to vector<8xf32>
    %13 = vector.shape_cast %12 : vector<8xf32> to vector<8x1xf32>
    %cst_8 = arith.constant 2.560000e+02 : f32
    %14 = vector.broadcast %cst_8 : f32 to vector<8x1xf32>
    %15 = arith.divf %13, %14 : vector<8x1xf32>
    %16 = vector.broadcast %8 : vector<8x1xf32> to vector<8x256xf32>
    %17 = arith.subf %2, %16 : vector<8x256xf32>
    %cst_9 = arith.constant 9.99999974E-6 : f32
    %18 = vector.broadcast %cst_9 : f32 to vector<8x1xf32>
    %19 = arith.addf %15, %18 : vector<8x1xf32>
    %20 = math.rsqrt %19 : vector<8x1xf32>
    %21 = vector.broadcast %20 : vector<8x1xf32> to vector<8x256xf32>
    %22 = arith.mulf %17, %21 : vector<8x256xf32>
    %23 = vector.broadcast %3 : vector<1x256xf32> to vector<8x256xf32>
    %24 = arith.mulf %22, %23 : vector<8x256xf32>
    %25 = vector.broadcast %4 : vector<1x256xf32> to vector<8x256xf32>
    %26 = arith.addf %24, %25 : vector<8x256xf32>
    %27 = arith.truncf %26 : vector<8x256xf32> to vector<8x256xbf16>
    %c0_10 = arith.constant 0 : index
    %c0_11 = arith.constant 0 : index
    %28 = vector.load %arg5[%c0_10, %c0_11] : memref<256x512xbf16, #tpu.memory_space<vmem>>, vector<256x512xbf16>
    %cst_12 = arith.constant dense<0.000000e+00> : vector<8x512xf32>
    %29 = tpu.matmul %27, %28, %cst_12 {dimension_numbers = #tpu.dot_dimension_numbers<[1], [0], [0], [1], [0, 0, 1, 1], [], []>} : vector<8x256xbf16>, vector<256x512xbf16>, vector<8x512xf32> -> vector<8x512xf32>
    %c0_13 = arith.constant 0 : index
    %c0_14 = arith.constant 0 : index
    %30 = vector.load %arg6[%c0_13, %c0_14] : memref<1x512xf32, #tpu.memory_space<vmem>>, vector<1x512xf32>
    %31 = vector.broadcast %30 : vector<1x512xf32> to vector<8x512xf32>
    %32 = arith.addf %29, %31 : vector<8x512xf32>
    %33 = vector.extract_strided_slice %32 {offsets = [0, 0], sizes = [8, 256], strides = [1, 1]} : vector<8x512xf32> to vector<8x256xf32>
    %34 = arith.truncf %33 : vector<8x256xf32> to vector<8x256xbf16>
    %c0_15 = arith.constant 0 : index
    %c0_16 = arith.constant 0 : index
    %c0_17 = arith.constant 0 : index
    %35 = vector.load %arg7[%c0_15, %c0_16, %c0_17] : memref<1x8x256xbf16, #tpu.memory_space<vmem>>, vector<1x8x256xbf16>
    %36 = vector.shape_cast %35 : vector<1x8x256xbf16> to vector<8x256xbf16>
    %37 = vector.shape_cast %34 : vector<8x256xbf16> to vector<1x8x256xbf16>
    tpu.vector_store %arg7[%c0_15, %c0_16, %c0_17], %37 {strides = array<i32>} : memref<1x8x256xbf16, #tpu.memory_space<vmem>>, vector<1x8x256xbf16>,
    %38 = vector.extract_strided_slice %32 {offsets = [0, 256], sizes = [8, 256], strides = [1, 1]} : vector<8x512xf32> to vector<8x256xf32>
    %39 = arith.truncf %38 : vector<8x256xf32> to vector<8x256xbf16>
    %c0_18 = arith.constant 0 : index
    %c0_19 = arith.constant 0 : index
    %c0_20 = arith.constant 0 : index
    %40 = vector.load %arg8[%c0_18, %c0_19, %c0_20] : memref<1x8x256xbf16, #tpu.memory_space<vmem>>, vector<1x8x256xbf16>
    %41 = vector.shape_cast %40 : vector<1x8x256xbf16> to vector<8x256xbf16>
    %42 = vector.shape_cast %39 : vector<8x256xbf16> to vector<1x8x256xbf16>
    tpu.vector_store %arg8[%c0_18, %c0_19, %c0_20], %42 {strides = array<i32>} : memref<1x8x256xbf16, #tpu.memory_space<vmem>>, vector<1x8x256xbf16>,
    return
  }
  func.func @transform_0(%arg0: i32, %arg1: i32) -> (i32, i32, i32) {
    %c0_i32 = arith.constant 0 : i32
    %c0_i32_0 = arith.constant 0 : i32
    return %arg0, %arg1, %c0_i32 : i32, i32, i32
  }
  func.func @transform_1(%arg0: i32, %arg1: i32) -> (i32, i32) {
    %c0_i32 = arith.constant 0 : i32
    %c0_i32_0 = arith.constant 0 : i32
    %c0_i32_1 = arith.constant 0 : i32
    return %c0_i32, %c0_i32_0 : i32, i32
  }
  func.func @transform_2(%arg0: i32, %arg1: i32) -> (i32, i32) {
    %c0_i32 = arith.constant 0 : i32
    %c0_i32_0 = arith.constant 0 : i32
    %c0_i32_1 = arith.constant 0 : i32
    return %c0_i32, %c0_i32_0 : i32, i32
  }
  func.func @transform_3(%arg0: i32, %arg1: i32) -> (i32, i32) {
    %c0_i32 = arith.constant 0 : i32
    %c0_i32_0 = arith.constant 0 : i32
    %c0_i32_1 = arith.constant 0 : i32
    return %c0_i32, %c0_i32_0 : i32, i32
  }
  func.func @transform_4(%arg0: i32, %arg1: i32) -> (i32, i32) {
    %c0_i32 = arith.constant 0 : i32
    %c0_i32_0 = arith.constant 0 : i32
    %c0_i32_1 = arith.constant 0 : i32
    return %c0_i32, %c0_i32_0 : i32, i32
  }
  func.func @transform_5(%arg0: i32, %arg1: i32) -> (i32, i32, i32) {
    %c0_i32 = arith.constant 0 : i32
    %c0_i32_0 = arith.constant 0 : i32
    return %arg0, %arg1, %c0_i32 : i32, i32, i32
  }
  func.func @transform_6(%arg0: i32, %arg1: i32) -> (i32, i32, i32) {
    %c0_i32 = arith.constant 0 : i32
    %c0_i32_0 = arith.constant 0 : i32
    return %arg0, %arg1, %c0_i32 : i32, i32, i32
  }
}

module attributes {stable_mosaic.version = 11 : i64} {
  func.func @attn_kernel(%arg0: i32, %arg1: i32, %arg2: i32, %arg3: memref<1x8x256xbf16, #tpu.memory_space<vmem>>, %arg4: memref<1x256xf32, #tpu.memory_space<vmem>>, %arg5: memref<1x256xf32, #tpu.memory_space<vmem>>, %arg6: memref<256x128xbf16, #tpu.memory_space<vmem>>, %arg7: memref<1x128xf32, #tpu.memory_space<vmem>>, %arg8: memref<1x8x128xbf16, #tpu.memory_space<vmem>>, %arg9: memref<1x8x128xbf16, #tpu.memory_space<vmem>>, %arg10: memref<128x256xbf16, #tpu.memory_space<vmem>>, %arg11: memref<1x256xf32, #tpu.memory_space<vmem>>, %arg12: memref<1x8x256xbf16, #tpu.memory_space<vmem>>, %arg13: memref<8x256xf32, #tpu.memory_space<vmem>>) attributes {dimension_semantics = [#tpu.dimension_semantics<parallel>, #tpu.dimension_semantics<parallel>, #tpu.dimension_semantics<arbitrary>], iteration_bounds = array<i64: 2, 1, 2>, scalar_prefetch = 0 : i64, scratch_operands = 1 : i64, tpu.core_type = #tpu.core_type<tc>, window_params = [{transform_indices = @transform_0, window_bounds = array<i64: 1, 8, 256>}, {pipeline_mode = #tpu.pipeline_mode<synchronous>, transform_indices = @transform_1, window_bounds = array<i64: 1, 256>}, {pipeline_mode = #tpu.pipeline_mode<synchronous>, transform_indices = @transform_2, window_bounds = array<i64: 1, 256>}, {transform_indices = @transform_3, window_bounds = array<i64: 256, 128>}, {transform_indices = @transform_4, window_bounds = array<i64: 1, 128>}, {transform_indices = @transform_5, window_bounds = array<i64: 1, 8, 128>}, {transform_indices = @transform_6, window_bounds = array<i64: 1, 8, 128>}, {transform_indices = @transform_7, window_bounds = array<i64: 128, 256>}, {pipeline_mode = #tpu.pipeline_mode<synchronous>, transform_indices = @transform_8, window_bounds = array<i64: 1, 256>}, {transform_indices = @transform_9, window_bounds = array<i64: 1, 8, 256>}]} {
    %c0 = arith.constant 0 : index
    %c0_0 = arith.constant 0 : index
    %c0_1 = arith.constant 0 : index
    %0 = vector.load %arg3[%c0, %c0_0, %c0_1] : memref<1x8x256xbf16, #tpu.memory_space<vmem>>, vector<1x8x256xbf16>
    %1 = vector.shape_cast %0 : vector<1x8x256xbf16> to vector<8x256xbf16>
    %2 = arith.extf %1 : vector<8x256xbf16> to vector<8x256xf32>
    %c0_i32 = arith.constant 0 : i32
    %3 = arith.cmpi eq, %arg2, %c0_i32 : i32
    %4 = arith.extui %3 : i1 to i32
    %c0_i32_2 = arith.constant 0 : i32
    %5 = arith.cmpi ne, %4, %c0_i32_2 : i32
    scf.if %5 {
      %c0_35 = arith.constant 0 : index
      %c0_36 = arith.constant 0 : index
      %65 = vector.load %arg11[%c0_35, %c0_36] : memref<1x256xf32, #tpu.memory_space<vmem>>, vector<1x256xf32>
      %66 = vector.broadcast %65 : vector<1x256xf32> to vector<8x256xf32>
      %67 = arith.addf %2, %66 : vector<8x256xf32>
      %c0_37 = arith.constant 0 : index
      %c0_38 = arith.constant 0 : index
      %68 = vector.load %arg13[%c0_37, %c0_38] : memref<8x256xf32, #tpu.memory_space<vmem>>, vector<8x256xf32>
      tpu.vector_store %arg13[%c0_37, %c0_38], %67 {strides = array<i32>} : memref<8x256xf32, #tpu.memory_space<vmem>>, vector<8x256xf32>,
    } else {
    }
    %c0_3 = arith.constant 0 : index
    %c0_4 = arith.constant 0 : index
    %6 = vector.load %arg4[%c0_3, %c0_4] : memref<1x256xf32, #tpu.memory_space<vmem>>, vector<1x256xf32>
    %c0_5 = arith.constant 0 : index
    %c0_6 = arith.constant 0 : index
    %7 = vector.load %arg5[%c0_5, %c0_6] : memref<1x256xf32, #tpu.memory_space<vmem>>, vector<1x256xf32>
    %cst = arith.constant dense<0.000000e+00> : vector<8xf32>
    %8 = vector.multi_reduction <add>, %2, %cst [1] : vector<8x256xf32> to vector<8xf32>
    %9 = vector.shape_cast %8 : vector<8xf32> to vector<8x1xf32>
    %cst_7 = arith.constant 2.560000e+02 : f32
    %10 = vector.broadcast %cst_7 : f32 to vector<8x1xf32>
    %11 = arith.divf %9, %10 : vector<8x1xf32>
    %12 = vector.broadcast %11 : vector<8x1xf32> to vector<8x256xf32>
    %13 = arith.subf %2, %12 : vector<8x256xf32>
    %14 = arith.mulf %13, %13 : vector<8x256xf32>
    %cst_8 = arith.constant dense<0.000000e+00> : vector<8xf32>
    %15 = vector.multi_reduction <add>, %14, %cst_8 [1] : vector<8x256xf32> to vector<8xf32>
    %16 = vector.shape_cast %15 : vector<8xf32> to vector<8x1xf32>
    %cst_9 = arith.constant 2.560000e+02 : f32
    %17 = vector.broadcast %cst_9 : f32 to vector<8x1xf32>
    %18 = arith.divf %16, %17 : vector<8x1xf32>
    %19 = vector.broadcast %11 : vector<8x1xf32> to vector<8x256xf32>
    %20 = arith.subf %2, %19 : vector<8x256xf32>
    %cst_10 = arith.constant 9.99999974E-6 : f32
    %21 = vector.broadcast %cst_10 : f32 to vector<8x1xf32>
    %22 = arith.addf %18, %21 : vector<8x1xf32>
    %23 = math.rsqrt %22 : vector<8x1xf32>
    %24 = vector.broadcast %23 : vector<8x1xf32> to vector<8x256xf32>
    %25 = arith.mulf %20, %24 : vector<8x256xf32>
    %26 = vector.broadcast %6 : vector<1x256xf32> to vector<8x256xf32>
    %27 = arith.mulf %25, %26 : vector<8x256xf32>
    %28 = vector.broadcast %7 : vector<1x256xf32> to vector<8x256xf32>
    %29 = arith.addf %27, %28 : vector<8x256xf32>
    %30 = arith.truncf %29 : vector<8x256xf32> to vector<8x256xbf16>
    %c0_11 = arith.constant 0 : index
    %c0_12 = arith.constant 0 : index
    %31 = vector.load %arg6[%c0_11, %c0_12] : memref<256x128xbf16, #tpu.memory_space<vmem>>, vector<256x128xbf16>
    %cst_13 = arith.constant dense<0.000000e+00> : vector<8x128xf32>
    %32 = tpu.matmul %30, %31, %cst_13 {dimension_numbers = #tpu.dot_dimension_numbers<[1], [0], [0], [1], [0, 0, 1, 1], [], []>} : vector<8x256xbf16>, vector<256x128xbf16>, vector<8x128xf32> -> vector<8x128xf32>
    %c0_14 = arith.constant 0 : index
    %c0_15 = arith.constant 0 : index
    %33 = vector.load %arg7[%c0_14, %c0_15] : memref<1x128xf32, #tpu.memory_space<vmem>>, vector<1x128xf32>
    %34 = vector.broadcast %33 : vector<1x128xf32> to vector<8x128xf32>
    %35 = arith.addf %32, %34 : vector<8x128xf32>
    %cst_16 = arith.constant 0.0883883461 : f32
    %36 = vector.broadcast %cst_16 : f32 to vector<8x128xf32>
    %37 = arith.mulf %35, %36 : vector<8x128xf32>
    %38 = arith.truncf %37 : vector<8x128xf32> to vector<8x128xbf16>
    %c0_17 = arith.constant 0 : index
    %c0_18 = arith.constant 0 : index
    %c0_19 = arith.constant 0 : index
    %39 = vector.load %arg8[%c0_17, %c0_18, %c0_19] : memref<1x8x128xbf16, #tpu.memory_space<vmem>>, vector<1x8x128xbf16>
    %40 = vector.shape_cast %39 : vector<1x8x128xbf16> to vector<8x128xbf16>
    %cst_20 = arith.constant dense<0.000000e+00> : vector<8x8xf32>
    %41 = tpu.matmul %38, %40, %cst_20 {dimension_numbers = #tpu.dot_dimension_numbers<[1], [1], [0], [0], [0, 0, 1, 0], [], []>} : vector<8x128xbf16>, vector<8x128xbf16>, vector<8x8xf32> -> vector<8x8xf32>
    %cst_21 = arith.constant dense<0xFF800000> : vector<8xf32>
    %42 = vector.multi_reduction <maximumf>, %41, %cst_21 [1] : vector<8x8xf32> to vector<8xf32>
    %43 = vector.shape_cast %42 : vector<8xf32> to vector<8x1xf32>
    %44 = vector.broadcast %43 : vector<8x1xf32> to vector<8x8xf32>
    %45 = arith.subf %41, %44 : vector<8x8xf32>
    %46 = math.exp %45 : vector<8x8xf32>
    %cst_22 = arith.constant dense<0.000000e+00> : vector<8xf32>
    %47 = vector.multi_reduction <add>, %46, %cst_22 [1] : vector<8x8xf32> to vector<8xf32>
    %48 = vector.shape_cast %47 : vector<8xf32> to vector<8x1xf32>
    %49 = tpu.reciprocal %48 {approx = true} : vector<8x1xf32> -> vector<8x1xf32>
    %50 = vector.broadcast %49 : vector<8x1xf32> to vector<8x8xf32>
    %51 = arith.mulf %46, %50 : vector<8x8xf32>
    %52 = arith.truncf %51 : vector<8x8xf32> to vector<8x8xbf16>
    %c0_23 = arith.constant 0 : index
    %c0_24 = arith.constant 0 : index
    %c0_25 = arith.constant 0 : index
    %53 = vector.load %arg9[%c0_23, %c0_24, %c0_25] : memref<1x8x128xbf16, #tpu.memory_space<vmem>>, vector<1x8x128xbf16>
    %54 = vector.shape_cast %53 : vector<1x8x128xbf16> to vector<8x128xbf16>
    %cst_26 = arith.constant dense<0.000000e+00> : vector<8x128xf32>
    %55 = tpu.matmul %52, %54, %cst_26 {dimension_numbers = #tpu.dot_dimension_numbers<[1], [0], [0], [1], [0, 0, 1, 1], [], []>} : vector<8x8xbf16>, vector<8x128xbf16>, vector<8x128xf32> -> vector<8x128xf32>
    %c0_27 = arith.constant 0 : index
    %c0_28 = arith.constant 0 : index
    %56 = vector.load %arg13[%c0_27, %c0_28] : memref<8x256xf32, #tpu.memory_space<vmem>>, vector<8x256xf32>
    %57 = arith.truncf %55 : vector<8x128xf32> to vector<8x128xbf16>
    %c0_29 = arith.constant 0 : index
    %c0_30 = arith.constant 0 : index
    %58 = vector.load %arg10[%c0_29, %c0_30] : memref<128x256xbf16, #tpu.memory_space<vmem>>, vector<128x256xbf16>
    %cst_31 = arith.constant dense<0.000000e+00> : vector<8x256xf32>
    %59 = tpu.matmul %57, %58, %cst_31 {dimension_numbers = #tpu.dot_dimension_numbers<[1], [0], [0], [1], [0, 0, 1, 1], [], []>} : vector<8x128xbf16>, vector<128x256xbf16>, vector<8x256xf32> -> vector<8x256xf32>
    %60 = arith.addf %56, %59 : vector<8x256xf32>
    %c0_32 = arith.constant 0 : index
    %c0_33 = arith.constant 0 : index
    %61 = vector.load %arg13[%c0_32, %c0_33] : memref<8x256xf32, #tpu.memory_space<vmem>>, vector<8x256xf32>
    tpu.vector_store %arg13[%c0_32, %c0_33], %60 {strides = array<i32>} : memref<8x256xf32, #tpu.memory_space<vmem>>, vector<8x256xf32>,
    %c1_i32 = arith.constant 1 : i32
    %62 = arith.cmpi eq, %arg2, %c1_i32 : i32
    %63 = arith.extui %62 : i1 to i32
    %c0_i32_34 = arith.constant 0 : i32
    %64 = arith.cmpi ne, %63, %c0_i32_34 : i32
    scf.if %64 {
      %c0_35 = arith.constant 0 : index
      %c0_36 = arith.constant 0 : index
      %65 = vector.load %arg13[%c0_35, %c0_36] : memref<8x256xf32, #tpu.memory_space<vmem>>, vector<8x256xf32>
      %66 = arith.truncf %65 : vector<8x256xf32> to vector<8x256xbf16>
      %c0_37 = arith.constant 0 : index
      %c0_38 = arith.constant 0 : index
      %c0_39 = arith.constant 0 : index
      %67 = vector.load %arg12[%c0_37, %c0_38, %c0_39] : memref<1x8x256xbf16, #tpu.memory_space<vmem>>, vector<1x8x256xbf16>
      %68 = vector.shape_cast %67 : vector<1x8x256xbf16> to vector<8x256xbf16>
      %69 = vector.shape_cast %66 : vector<8x256xbf16> to vector<1x8x256xbf16>
      tpu.vector_store %arg12[%c0_37, %c0_38, %c0_39], %69 {strides = array<i32>} : memref<1x8x256xbf16, #tpu.memory_space<vmem>>, vector<1x8x256xbf16>,
    } else {
    }
    return
  }
  func.func @transform_0(%arg0: i32, %arg1: i32, %arg2: i32) -> (i32, i32, i32) {
    %c0_i32 = arith.constant 0 : i32
    %c0_i32_0 = arith.constant 0 : i32
    return %arg0, %arg1, %c0_i32 : i32, i32, i32
  }
  func.func @transform_1(%arg0: i32, %arg1: i32, %arg2: i32) -> (i32, i32) {
    %c0_i32 = arith.constant 0 : i32
    %c0_i32_0 = arith.constant 0 : i32
    %c0_i32_1 = arith.constant 0 : i32
    return %c0_i32, %c0_i32_0 : i32, i32
  }
  func.func @transform_2(%arg0: i32, %arg1: i32, %arg2: i32) -> (i32, i32) {
    %c0_i32 = arith.constant 0 : i32
    %c0_i32_0 = arith.constant 0 : i32
    %c0_i32_1 = arith.constant 0 : i32
    return %c0_i32, %c0_i32_0 : i32, i32
  }
  func.func @transform_3(%arg0: i32, %arg1: i32, %arg2: i32) -> (i32, i32) {
    %c0_i32 = arith.constant 0 : i32
    %c0_i32_0 = arith.constant 0 : i32
    return %c0_i32, %arg2 : i32, i32
  }
  func.func @transform_4(%arg0: i32, %arg1: i32, %arg2: i32) -> (i32, i32) {
    %c0_i32 = arith.constant 0 : i32
    %c0_i32_0 = arith.constant 0 : i32
    return %c0_i32, %arg2 : i32, i32
  }
  func.func @transform_5(%arg0: i32, %arg1: i32, %arg2: i32) -> (i32, i32, i32) {
    %c0_i32 = arith.constant 0 : i32
    %c0_i32_0 = arith.constant 0 : i32
    return %arg0, %c0_i32, %arg2 : i32, i32, i32
  }
  func.func @transform_6(%arg0: i32, %arg1: i32, %arg2: i32) -> (i32, i32, i32) {
    %c0_i32 = arith.constant 0 : i32
    %c0_i32_0 = arith.constant 0 : i32
    return %arg0, %c0_i32, %arg2 : i32, i32, i32
  }
  func.func @transform_7(%arg0: i32, %arg1: i32, %arg2: i32) -> (i32, i32) {
    %c0_i32 = arith.constant 0 : i32
    %c0_i32_0 = arith.constant 0 : i32
    return %arg2, %c0_i32 : i32, i32
  }
  func.func @transform_8(%arg0: i32, %arg1: i32, %arg2: i32) -> (i32, i32) {
    %c0_i32 = arith.constant 0 : i32
    %c0_i32_0 = arith.constant 0 : i32
    %c0_i32_1 = arith.constant 0 : i32
    return %c0_i32, %c0_i32_0 : i32, i32
  }
  func.func @transform_9(%arg0: i32, %arg1: i32, %arg2: i32) -> (i32, i32, i32) {
    %c0_i32 = arith.constant 0 : i32
    %c0_i32_0 = arith.constant 0 : i32
    return %arg0, %arg1, %c0_i32 : i32, i32, i32
  }
}

module attributes {stable_mosaic.version = 11 : i64} {
  func.func @embed_ln_kernel(%arg0: i32, %arg1: i32, %arg2: memref<1x8x256xf32, #tpu.memory_space<vmem>>, %arg3: memref<8x256xf32, #tpu.memory_space<vmem>>, %arg4: memref<1x256xf32, #tpu.memory_space<vmem>>, %arg5: memref<1x256xf32, #tpu.memory_space<vmem>>, %arg6: memref<1x8x256xbf16, #tpu.memory_space<vmem>>) attributes {dimension_semantics = [#tpu.dimension_semantics<parallel>, #tpu.dimension_semantics<parallel>], iteration_bounds = array<i64: 2, 1>, scalar_prefetch = 0 : i64, scratch_operands = 0 : i64, tpu.core_type = #tpu.core_type<tc>, window_params = [{transform_indices = @transform_0, window_bounds = array<i64: 1, 8, 256>}, {transform_indices = @transform_1, window_bounds = array<i64: 8, 256>}, {pipeline_mode = #tpu.pipeline_mode<synchronous>, transform_indices = @transform_2, window_bounds = array<i64: 1, 256>}, {pipeline_mode = #tpu.pipeline_mode<synchronous>, transform_indices = @transform_3, window_bounds = array<i64: 1, 256>}, {transform_indices = @transform_4, window_bounds = array<i64: 1, 8, 256>}]} {
    %c0 = arith.constant 0 : index
    %c0_0 = arith.constant 0 : index
    %c0_1 = arith.constant 0 : index
    %0 = vector.load %arg2[%c0, %c0_0, %c0_1] : memref<1x8x256xf32, #tpu.memory_space<vmem>>, vector<1x8x256xf32>
    %1 = vector.shape_cast %0 : vector<1x8x256xf32> to vector<8x256xf32>
    %c0_2 = arith.constant 0 : index
    %c0_3 = arith.constant 0 : index
    %2 = vector.load %arg3[%c0_2, %c0_3] : memref<8x256xf32, #tpu.memory_space<vmem>>, vector<8x256xf32>
    %3 = arith.addf %1, %2 : vector<8x256xf32>
    %c0_4 = arith.constant 0 : index
    %c0_5 = arith.constant 0 : index
    %4 = vector.load %arg4[%c0_4, %c0_5] : memref<1x256xf32, #tpu.memory_space<vmem>>, vector<1x256xf32>
    %c0_6 = arith.constant 0 : index
    %c0_7 = arith.constant 0 : index
    %5 = vector.load %arg5[%c0_6, %c0_7] : memref<1x256xf32, #tpu.memory_space<vmem>>, vector<1x256xf32>
    %cst = arith.constant dense<0.000000e+00> : vector<8xf32>
    %6 = vector.multi_reduction <add>, %3, %cst [1] : vector<8x256xf32> to vector<8xf32>
    %7 = vector.shape_cast %6 : vector<8xf32> to vector<8x1xf32>
    %cst_8 = arith.constant 2.560000e+02 : f32
    %8 = vector.broadcast %cst_8 : f32 to vector<8x1xf32>
    %9 = arith.divf %7, %8 : vector<8x1xf32>
    %10 = vector.broadcast %9 : vector<8x1xf32> to vector<8x256xf32>
    %11 = arith.subf %3, %10 : vector<8x256xf32>
    %12 = arith.mulf %11, %11 : vector<8x256xf32>
    %cst_9 = arith.constant dense<0.000000e+00> : vector<8xf32>
    %13 = vector.multi_reduction <add>, %12, %cst_9 [1] : vector<8x256xf32> to vector<8xf32>
    %14 = vector.shape_cast %13 : vector<8xf32> to vector<8x1xf32>
    %cst_10 = arith.constant 2.560000e+02 : f32
    %15 = vector.broadcast %cst_10 : f32 to vector<8x1xf32>
    %16 = arith.divf %14, %15 : vector<8x1xf32>
    %17 = vector.broadcast %9 : vector<8x1xf32> to vector<8x256xf32>
    %18 = arith.subf %3, %17 : vector<8x256xf32>
    %cst_11 = arith.constant 9.99999974E-6 : f32
    %19 = vector.broadcast %cst_11 : f32 to vector<8x1xf32>
    %20 = arith.addf %16, %19 : vector<8x1xf32>
    %21 = math.rsqrt %20 : vector<8x1xf32>
    %22 = vector.broadcast %21 : vector<8x1xf32> to vector<8x256xf32>
    %23 = arith.mulf %18, %22 : vector<8x256xf32>
    %24 = vector.broadcast %4 : vector<1x256xf32> to vector<8x256xf32>
    %25 = arith.mulf %23, %24 : vector<8x256xf32>
    %26 = vector.broadcast %5 : vector<1x256xf32> to vector<8x256xf32>
    %27 = arith.addf %25, %26 : vector<8x256xf32>
    %28 = arith.truncf %27 : vector<8x256xf32> to vector<8x256xbf16>
    %c0_12 = arith.constant 0 : index
    %c0_13 = arith.constant 0 : index
    %c0_14 = arith.constant 0 : index
    %29 = vector.load %arg6[%c0_12, %c0_13, %c0_14] : memref<1x8x256xbf16, #tpu.memory_space<vmem>>, vector<1x8x256xbf16>
    %30 = vector.shape_cast %29 : vector<1x8x256xbf16> to vector<8x256xbf16>
    %31 = vector.shape_cast %28 : vector<8x256xbf16> to vector<1x8x256xbf16>
    tpu.vector_store %arg6[%c0_12, %c0_13, %c0_14], %31 {strides = array<i32>} : memref<1x8x256xbf16, #tpu.memory_space<vmem>>, vector<1x8x256xbf16>,
    return
  }
  func.func @transform_0(%arg0: i32, %arg1: i32) -> (i32, i32, i32) {
    %c0_i32 = arith.constant 0 : i32
    %c0_i32_0 = arith.constant 0 : i32
    return %arg0, %arg1, %c0_i32 : i32, i32, i32
  }
  func.func @transform_1(%arg0: i32, %arg1: i32) -> (i32, i32) {
    %c0_i32 = arith.constant 0 : i32
    %c0_i32_0 = arith.constant 0 : i32
    return %arg1, %c0_i32 : i32, i32
  }
  func.func @transform_2(%arg0: i32, %arg1: i32) -> (i32, i32) {
    %c0_i32 = arith.constant 0 : i32
    %c0_i32_0 = arith.constant 0 : i32
    %c0_i32_1 = arith.constant 0 : i32
    return %c0_i32, %c0_i32_0 : i32, i32
  }
  func.func @transform_3(%arg0: i32, %arg1: i32) -> (i32, i32) {
    %c0_i32 = arith.constant 0 : i32
    %c0_i32_0 = arith.constant 0 : i32
    %c0_i32_1 = arith.constant 0 : i32
    return %c0_i32, %c0_i32_0 : i32, i32
  }
  func.func @transform_4(%arg0: i32, %arg1: i32) -> (i32, i32, i32) {
    %c0_i32 = arith.constant 0 : i32
    %c0_i32_0 = arith.constant 0 : i32
    return %arg0, %arg1, %c0_i32 : i32, i32, i32
  }
}

module attributes {stable_mosaic.version = 11 : i64} {
  func.func @ffn_kernel(%arg0: i32, %arg1: i32, %arg2: i32, %arg3: memref<1x8x256xbf16, #tpu.memory_space<vmem>>, %arg4: memref<1x256xf32, #tpu.memory_space<vmem>>, %arg5: memref<1x256xf32, #tpu.memory_space<vmem>>, %arg6: memref<256x512xbf16, #tpu.memory_space<vmem>>, %arg7: memref<1x512xf32, #tpu.memory_space<vmem>>, %arg8: memref<512x256xbf16, #tpu.memory_space<vmem>>, %arg9: memref<1x256xf32, #tpu.memory_space<vmem>>, %arg10: memref<1x8x256xbf16, #tpu.memory_space<vmem>>, %arg11: memref<8x256xbf16, #tpu.memory_space<vmem>>, %arg12: memref<8x256xf32, #tpu.memory_space<vmem>>) attributes {dimension_semantics = [#tpu.dimension_semantics<parallel>, #tpu.dimension_semantics<parallel>, #tpu.dimension_semantics<arbitrary>], iteration_bounds = array<i64: 2, 1, 1>, scalar_prefetch = 0 : i64, scratch_operands = 2 : i64, tpu.core_type = #tpu.core_type<tc>, window_params = [{transform_indices = @transform_0, window_bounds = array<i64: 1, 8, 256>}, {pipeline_mode = #tpu.pipeline_mode<synchronous>, transform_indices = @transform_1, window_bounds = array<i64: 1, 256>}, {pipeline_mode = #tpu.pipeline_mode<synchronous>, transform_indices = @transform_2, window_bounds = array<i64: 1, 256>}, {transform_indices = @transform_3, window_bounds = array<i64: 256, 512>}, {transform_indices = @transform_4, window_bounds = array<i64: 1, 512>}, {transform_indices = @transform_5, window_bounds = array<i64: 512, 256>}, {pipeline_mode = #tpu.pipeline_mode<synchronous>, transform_indices = @transform_6, window_bounds = array<i64: 1, 256>}, {transform_indices = @transform_7, window_bounds = array<i64: 1, 8, 256>}]} {
    %c0_i32 = arith.constant 0 : i32
    %0 = arith.cmpi eq, %arg2, %c0_i32 : i32
    %1 = arith.extui %0 : i1 to i32
    %c0_i32_0 = arith.constant 0 : i32
    %2 = arith.cmpi ne, %1, %c0_i32_0 : i32
    scf.if %2 {
      %c0_16 = arith.constant 0 : index
      %c0_17 = arith.constant 0 : index
      %c0_18 = arith.constant 0 : index
      %20 = vector.load %arg3[%c0_16, %c0_17, %c0_18] : memref<1x8x256xbf16, #tpu.memory_space<vmem>>, vector<1x8x256xbf16>
      %21 = vector.shape_cast %20 : vector<1x8x256xbf16> to vector<8x256xbf16>
      %22 = arith.extf %21 : vector<8x256xbf16> to vector<8x256xf32>
      %c0_19 = arith.constant 0 : index
      %c0_20 = arith.constant 0 : index
      %23 = vector.load %arg4[%c0_19, %c0_20] : memref<1x256xf32, #tpu.memory_space<vmem>>, vector<1x256xf32>
      %c0_21 = arith.constant 0 : index
      %c0_22 = arith.constant 0 : index
      %24 = vector.load %arg5[%c0_21, %c0_22] : memref<1x256xf32, #tpu.memory_space<vmem>>, vector<1x256xf32>
      %cst_23 = arith.constant dense<0.000000e+00> : vector<8xf32>
      %25 = vector.multi_reduction <add>, %22, %cst_23 [1] : vector<8x256xf32> to vector<8xf32>
      %26 = vector.shape_cast %25 : vector<8xf32> to vector<8x1xf32>
      %cst_24 = arith.constant 2.560000e+02 : f32
      %27 = vector.broadcast %cst_24 : f32 to vector<8x1xf32>
      %28 = arith.divf %26, %27 : vector<8x1xf32>
      %29 = vector.broadcast %28 : vector<8x1xf32> to vector<8x256xf32>
      %30 = arith.subf %22, %29 : vector<8x256xf32>
      %31 = arith.mulf %30, %30 : vector<8x256xf32>
      %cst_25 = arith.constant dense<0.000000e+00> : vector<8xf32>
      %32 = vector.multi_reduction <add>, %31, %cst_25 [1] : vector<8x256xf32> to vector<8xf32>
      %33 = vector.shape_cast %32 : vector<8xf32> to vector<8x1xf32>
      %cst_26 = arith.constant 2.560000e+02 : f32
      %34 = vector.broadcast %cst_26 : f32 to vector<8x1xf32>
      %35 = arith.divf %33, %34 : vector<8x1xf32>
      %36 = vector.broadcast %28 : vector<8x1xf32> to vector<8x256xf32>
      %37 = arith.subf %22, %36 : vector<8x256xf32>
      %cst_27 = arith.constant 9.99999974E-6 : f32
      %38 = vector.broadcast %cst_27 : f32 to vector<8x1xf32>
      %39 = arith.addf %35, %38 : vector<8x1xf32>
      %40 = math.rsqrt %39 : vector<8x1xf32>
      %41 = vector.broadcast %40 : vector<8x1xf32> to vector<8x256xf32>
      %42 = arith.mulf %37, %41 : vector<8x256xf32>
      %43 = vector.broadcast %23 : vector<1x256xf32> to vector<8x256xf32>
      %44 = arith.mulf %42, %43 : vector<8x256xf32>
      %45 = vector.broadcast %24 : vector<1x256xf32> to vector<8x256xf32>
      %46 = arith.addf %44, %45 : vector<8x256xf32>
      %47 = arith.truncf %46 : vector<8x256xf32> to vector<8x256xbf16>
      %c0_28 = arith.constant 0 : index
      %c0_29 = arith.constant 0 : index
      %48 = vector.load %arg11[%c0_28, %c0_29] : memref<8x256xbf16, #tpu.memory_space<vmem>>, vector<8x256xbf16>
      tpu.vector_store %arg11[%c0_28, %c0_29], %47 {strides = array<i32>} : memref<8x256xbf16, #tpu.memory_space<vmem>>, vector<8x256xbf16>,
      %c0_30 = arith.constant 0 : index
      %c0_31 = arith.constant 0 : index
      %49 = vector.load %arg9[%c0_30, %c0_31] : memref<1x256xf32, #tpu.memory_space<vmem>>, vector<1x256xf32>
      %50 = vector.broadcast %49 : vector<1x256xf32> to vector<8x256xf32>
      %51 = arith.addf %22, %50 : vector<8x256xf32>
      %c0_32 = arith.constant 0 : index
      %c0_33 = arith.constant 0 : index
      %52 = vector.load %arg12[%c0_32, %c0_33] : memref<8x256xf32, #tpu.memory_space<vmem>>, vector<8x256xf32>
      tpu.vector_store %arg12[%c0_32, %c0_33], %51 {strides = array<i32>} : memref<8x256xf32, #tpu.memory_space<vmem>>, vector<8x256xf32>,
    } else {
    }
    %c0 = arith.constant 0 : index
    %c0_1 = arith.constant 0 : index
    %3 = vector.load %arg11[%c0, %c0_1] : memref<8x256xbf16, #tpu.memory_space<vmem>>, vector<8x256xbf16>
    %c0_2 = arith.constant 0 : index
    %c0_3 = arith.constant 0 : index
    %4 = vector.load %arg6[%c0_2, %c0_3] : memref<256x512xbf16, #tpu.memory_space<vmem>>, vector<256x512xbf16>
    %cst = arith.constant dense<0.000000e+00> : vector<8x512xf32>
    %5 = tpu.matmul %3, %4, %cst {dimension_numbers = #tpu.dot_dimension_numbers<[1], [0], [0], [1], [0, 0, 1, 1], [], []>} : vector<8x256xbf16>, vector<256x512xbf16>, vector<8x512xf32> -> vector<8x512xf32>
    %c0_4 = arith.constant 0 : index
    %c0_5 = arith.constant 0 : index
    %6 = vector.load %arg7[%c0_4, %c0_5] : memref<1x512xf32, #tpu.memory_space<vmem>>, vector<1x512xf32>
    %7 = vector.broadcast %6 : vector<1x512xf32> to vector<8x512xf32>
    %8 = arith.addf %5, %7 : vector<8x512xf32>
    %cst_6 = arith.constant 0.000000e+00 : f32
    %9 = vector.broadcast %cst_6 : f32 to vector<8x512xf32>
    %10 = arith.maximumf %8, %9 : vector<8x512xf32>
    %c0_7 = arith.constant 0 : index
    %c0_8 = arith.constant 0 : index
    %11 = vector.load %arg12[%c0_7, %c0_8] : memref<8x256xf32, #tpu.memory_space<vmem>>, vector<8x256xf32>
    %12 = arith.truncf %10 : vector<8x512xf32> to vector<8x512xbf16>
    %c0_9 = arith.constant 0 : index
    %c0_10 = arith.constant 0 : index
    %13 = vector.load %arg8[%c0_9, %c0_10] : memref<512x256xbf16, #tpu.memory_space<vmem>>, vector<512x256xbf16>
    %cst_11 = arith.constant dense<0.000000e+00> : vector<8x256xf32>
    %14 = tpu.matmul %12, %13, %cst_11 {dimension_numbers = #tpu.dot_dimension_numbers<[1], [0], [0], [1], [0, 0, 1, 1], [], []>} : vector<8x512xbf16>, vector<512x256xbf16>, vector<8x256xf32> -> vector<8x256xf32>
    %15 = arith.addf %11, %14 : vector<8x256xf32>
    %c0_12 = arith.constant 0 : index
    %c0_13 = arith.constant 0 : index
    %16 = vector.load %arg12[%c0_12, %c0_13] : memref<8x256xf32, #tpu.memory_space<vmem>>, vector<8x256xf32>
    tpu.vector_store %arg12[%c0_12, %c0_13], %15 {strides = array<i32>} : memref<8x256xf32, #tpu.memory_space<vmem>>, vector<8x256xf32>,
    %c0_i32_14 = arith.constant 0 : i32
    %17 = arith.cmpi eq, %arg2, %c0_i32_14 : i32
    %18 = arith.extui %17 : i1 to i32
    %c0_i32_15 = arith.constant 0 : i32
    %19 = arith.cmpi ne, %18, %c0_i32_15 : i32
    scf.if %19 {
      %c0_16 = arith.constant 0 : index
      %c0_17 = arith.constant 0 : index
      %20 = vector.load %arg12[%c0_16, %c0_17] : memref<8x256xf32, #tpu.memory_space<vmem>>, vector<8x256xf32>
      %21 = arith.truncf %20 : vector<8x256xf32> to vector<8x256xbf16>
      %c0_18 = arith.constant 0 : index
      %c0_19 = arith.constant 0 : index
      %c0_20 = arith.constant 0 : index
      %22 = vector.load %arg10[%c0_18, %c0_19, %c0_20] : memref<1x8x256xbf16, #tpu.memory_space<vmem>>, vector<1x8x256xbf16>
      %23 = vector.shape_cast %22 : vector<1x8x256xbf16> to vector<8x256xbf16>
      %24 = vector.shape_cast %21 : vector<8x256xbf16> to vector<1x8x256xbf16>
      tpu.vector_store %arg10[%c0_18, %c0_19, %c0_20], %24 {strides = array<i32>} : memref<1x8x256xbf16, #tpu.memory_space<vmem>>, vector<1x8x256xbf16>,
    } else {
    }
    return
  }
  func.func @transform_0(%arg0: i32, %arg1: i32, %arg2: i32) -> (i32, i32, i32) {
    %c0_i32 = arith.constant 0 : i32
    %c0_i32_0 = arith.constant 0 : i32
    return %arg0, %arg1, %c0_i32 : i32, i32, i32
  }
  func.func @transform_1(%arg0: i32, %arg1: i32, %arg2: i32) -> (i32, i32) {
    %c0_i32 = arith.constant 0 : i32
    %c0_i32_0 = arith.constant 0 : i32
    %c0_i32_1 = arith.constant 0 : i32
    return %c0_i32, %c0_i32_0 : i32, i32
  }
  func.func @transform_2(%arg0: i32, %arg1: i32, %arg2: i32) -> (i32, i32) {
    %c0_i32 = arith.constant 0 : i32
    %c0_i32_0 = arith.constant 0 : i32
    %c0_i32_1 = arith.constant 0 : i32
    return %c0_i32, %c0_i32_0 : i32, i32
  }
  func.func @transform_3(%arg0: i32, %arg1: i32, %arg2: i32) -> (i32, i32) {
    %c0_i32 = arith.constant 0 : i32
    %c0_i32_0 = arith.constant 0 : i32
    return %c0_i32, %arg2 : i32, i32
  }
  func.func @transform_4(%arg0: i32, %arg1: i32, %arg2: i32) -> (i32, i32) {
    %c0_i32 = arith.constant 0 : i32
    %c0_i32_0 = arith.constant 0 : i32
    return %c0_i32, %arg2 : i32, i32
  }
  func.func @transform_5(%arg0: i32, %arg1: i32, %arg2: i32) -> (i32, i32) {
    %c0_i32 = arith.constant 0 : i32
    %c0_i32_0 = arith.constant 0 : i32
    return %arg2, %c0_i32 : i32, i32
  }
  func.func @transform_6(%arg0: i32, %arg1: i32, %arg2: i32) -> (i32, i32) {
    %c0_i32 = arith.constant 0 : i32
    %c0_i32_0 = arith.constant 0 : i32
    %c0_i32_1 = arith.constant 0 : i32
    return %c0_i32, %c0_i32_0 : i32, i32
  }
  func.func @transform_7(%arg0: i32, %arg1: i32, %arg2: i32) -> (i32, i32, i32) {
    %c0_i32 = arith.constant 0 : i32
    %c0_i32_0 = arith.constant 0 : i32
    return %arg0, %arg1, %c0_i32 : i32, i32, i32
  }
}

module attributes {stable_mosaic.version = 11 : i64} {
  func.func @proj_kernel(%arg0: i32, %arg1: i32, %arg2: memref<1x8x256xbf16, #tpu.memory_space<vmem>>, %arg3: memref<256x512xbf16, #tpu.memory_space<vmem>>, %arg4: memref<1x512xf32, #tpu.memory_space<vmem>>, %arg5: memref<1x8x256xbf16, #tpu.memory_space<vmem>>, %arg6: memref<1x8x256xbf16, #tpu.memory_space<vmem>>) attributes {dimension_semantics = [#tpu.dimension_semantics<parallel>, #tpu.dimension_semantics<parallel>], iteration_bounds = array<i64: 2, 1>, scalar_prefetch = 0 : i64, scratch_operands = 0 : i64, tpu.core_type = #tpu.core_type<tc>, window_params = [{transform_indices = @transform_0, window_bounds = array<i64: 1, 8, 256>}, {pipeline_mode = #tpu.pipeline_mode<synchronous>, transform_indices = @transform_1, window_bounds = array<i64: 256, 512>}, {pipeline_mode = #tpu.pipeline_mode<synchronous>, transform_indices = @transform_2, window_bounds = array<i64: 1, 512>}, {transform_indices = @transform_3, window_bounds = array<i64: 1, 8, 256>}, {transform_indices = @transform_4, window_bounds = array<i64: 1, 8, 256>}]} {
    %c0 = arith.constant 0 : index
    %c0_0 = arith.constant 0 : index
    %c0_1 = arith.constant 0 : index
    %0 = vector.load %arg2[%c0, %c0_0, %c0_1] : memref<1x8x256xbf16, #tpu.memory_space<vmem>>, vector<1x8x256xbf16>
    %1 = vector.shape_cast %0 : vector<1x8x256xbf16> to vector<8x256xbf16>
    %c0_2 = arith.constant 0 : index
    %c0_3 = arith.constant 0 : index
    %2 = vector.load %arg3[%c0_2, %c0_3] : memref<256x512xbf16, #tpu.memory_space<vmem>>, vector<256x512xbf16>
    %cst = arith.constant dense<0.000000e+00> : vector<8x512xf32>
    %3 = tpu.matmul %1, %2, %cst {dimension_numbers = #tpu.dot_dimension_numbers<[1], [0], [0], [1], [0, 0, 1, 1], [], []>} : vector<8x256xbf16>, vector<256x512xbf16>, vector<8x512xf32> -> vector<8x512xf32>
    %c0_4 = arith.constant 0 : index
    %c0_5 = arith.constant 0 : index
    %4 = vector.load %arg4[%c0_4, %c0_5] : memref<1x512xf32, #tpu.memory_space<vmem>>, vector<1x512xf32>
    %5 = vector.broadcast %4 : vector<1x512xf32> to vector<8x512xf32>
    %6 = arith.addf %3, %5 : vector<8x512xf32>
    %7 = vector.extract_strided_slice %6 {offsets = [0, 0], sizes = [8, 256], strides = [1, 1]} : vector<8x512xf32> to vector<8x256xf32>
    %8 = arith.truncf %7 : vector<8x256xf32> to vector<8x256xbf16>
    %c0_6 = arith.constant 0 : index
    %c0_7 = arith.constant 0 : index
    %c0_8 = arith.constant 0 : index
    %9 = vector.load %arg5[%c0_6, %c0_7, %c0_8] : memref<1x8x256xbf16, #tpu.memory_space<vmem>>, vector<1x8x256xbf16>
    %10 = vector.shape_cast %9 : vector<1x8x256xbf16> to vector<8x256xbf16>
    %11 = vector.shape_cast %8 : vector<8x256xbf16> to vector<1x8x256xbf16>
    tpu.vector_store %arg5[%c0_6, %c0_7, %c0_8], %11 {strides = array<i32>} : memref<1x8x256xbf16, #tpu.memory_space<vmem>>, vector<1x8x256xbf16>,
    %12 = vector.extract_strided_slice %6 {offsets = [0, 256], sizes = [8, 256], strides = [1, 1]} : vector<8x512xf32> to vector<8x256xf32>
    %13 = arith.truncf %12 : vector<8x256xf32> to vector<8x256xbf16>
    %c0_9 = arith.constant 0 : index
    %c0_10 = arith.constant 0 : index
    %c0_11 = arith.constant 0 : index
    %14 = vector.load %arg6[%c0_9, %c0_10, %c0_11] : memref<1x8x256xbf16, #tpu.memory_space<vmem>>, vector<1x8x256xbf16>
    %15 = vector.shape_cast %14 : vector<1x8x256xbf16> to vector<8x256xbf16>
    %16 = vector.shape_cast %13 : vector<8x256xbf16> to vector<1x8x256xbf16>
    tpu.vector_store %arg6[%c0_9, %c0_10, %c0_11], %16 {strides = array<i32>} : memref<1x8x256xbf16, #tpu.memory_space<vmem>>, vector<1x8x256xbf16>,
    return
  }
  func.func @transform_0(%arg0: i32, %arg1: i32) -> (i32, i32, i32) {
    %c0_i32 = arith.constant 0 : i32
    %c0_i32_0 = arith.constant 0 : i32
    return %arg0, %arg1, %c0_i32 : i32, i32, i32
  }
  func.func @transform_1(%arg0: i32, %arg1: i32) -> (i32, i32) {
    %c0_i32 = arith.constant 0 : i32
    %c0_i32_0 = arith.constant 0 : i32
    %c0_i32_1 = arith.constant 0 : i32
    return %c0_i32, %c0_i32_0 : i32, i32
  }
  func.func @transform_2(%arg0: i32, %arg1: i32) -> (i32, i32) {
    %c0_i32 = arith.constant 0 : i32
    %c0_i32_0 = arith.constant 0 : i32
    %c0_i32_1 = arith.constant 0 : i32
    return %c0_i32, %c0_i32_0 : i32, i32
  }
  func.func @transform_3(%arg0: i32, %arg1: i32) -> (i32, i32, i32) {
    %c0_i32 = arith.constant 0 : i32
    %c0_i32_0 = arith.constant 0 : i32
    return %arg0, %arg1, %c0_i32 : i32, i32, i32
  }
  func.func @transform_4(%arg0: i32, %arg1: i32) -> (i32, i32, i32) {
    %c0_i32 = arith.constant 0 : i32
    %c0_i32_0 = arith.constant 0 : i32
    return %arg0, %arg1, %c0_i32 : i32, i32, i32
  }
}

module attributes {stable_mosaic.version = 11 : i64} {
  func.func @attn_kernel(%arg0: i32, %arg1: i32, %arg2: i32, %arg3: memref<1x8x256xbf16, #tpu.memory_space<vmem>>, %arg4: memref<1x256xf32, #tpu.memory_space<vmem>>, %arg5: memref<1x256xf32, #tpu.memory_space<vmem>>, %arg6: memref<256x128xbf16, #tpu.memory_space<vmem>>, %arg7: memref<1x128xf32, #tpu.memory_space<vmem>>, %arg8: memref<1x8x128xbf16, #tpu.memory_space<vmem>>, %arg9: memref<1x8x128xbf16, #tpu.memory_space<vmem>>, %arg10: memref<128x256xbf16, #tpu.memory_space<vmem>>, %arg11: memref<1x256xf32, #tpu.memory_space<vmem>>, %arg12: memref<1x8x256xbf16, #tpu.memory_space<vmem>>, %arg13: memref<1x1x8x8xf32, #tpu.memory_space<vmem>>, %arg14: memref<8x256xf32, #tpu.memory_space<vmem>>) attributes {dimension_semantics = [#tpu.dimension_semantics<parallel>, #tpu.dimension_semantics<parallel>, #tpu.dimension_semantics<arbitrary>], iteration_bounds = array<i64: 2, 1, 2>, scalar_prefetch = 0 : i64, scratch_operands = 1 : i64, tpu.core_type = #tpu.core_type<tc>, window_params = [{transform_indices = @transform_0, window_bounds = array<i64: 1, 8, 256>}, {pipeline_mode = #tpu.pipeline_mode<synchronous>, transform_indices = @transform_1, window_bounds = array<i64: 1, 256>}, {pipeline_mode = #tpu.pipeline_mode<synchronous>, transform_indices = @transform_2, window_bounds = array<i64: 1, 256>}, {transform_indices = @transform_3, window_bounds = array<i64: 256, 128>}, {transform_indices = @transform_4, window_bounds = array<i64: 1, 128>}, {transform_indices = @transform_5, window_bounds = array<i64: 1, 8, 128>}, {transform_indices = @transform_6, window_bounds = array<i64: 1, 8, 128>}, {transform_indices = @transform_7, window_bounds = array<i64: 128, 256>}, {pipeline_mode = #tpu.pipeline_mode<synchronous>, transform_indices = @transform_8, window_bounds = array<i64: 1, 256>}, {transform_indices = @transform_9, window_bounds = array<i64: 1, 8, 256>}, {transform_indices = @transform_10, window_bounds = array<i64: 1, 1, 8, 8>}]} {
    %c0 = arith.constant 0 : index
    %c0_0 = arith.constant 0 : index
    %c0_1 = arith.constant 0 : index
    %0 = vector.load %arg3[%c0, %c0_0, %c0_1] : memref<1x8x256xbf16, #tpu.memory_space<vmem>>, vector<1x8x256xbf16>
    %1 = vector.shape_cast %0 : vector<1x8x256xbf16> to vector<8x256xbf16>
    %2 = arith.extf %1 : vector<8x256xbf16> to vector<8x256xf32>
    %c0_i32 = arith.constant 0 : i32
    %3 = arith.cmpi eq, %arg2, %c0_i32 : i32
    %4 = arith.extui %3 : i1 to i32
    %c0_i32_2 = arith.constant 0 : i32
    %5 = arith.cmpi ne, %4, %c0_i32_2 : i32
    scf.if %5 {
      %c0_39 = arith.constant 0 : index
      %c0_40 = arith.constant 0 : index
      %68 = vector.load %arg11[%c0_39, %c0_40] : memref<1x256xf32, #tpu.memory_space<vmem>>, vector<1x256xf32>
      %69 = vector.broadcast %68 : vector<1x256xf32> to vector<8x256xf32>
      %70 = arith.addf %2, %69 : vector<8x256xf32>
      %c0_41 = arith.constant 0 : index
      %c0_42 = arith.constant 0 : index
      %71 = vector.load %arg14[%c0_41, %c0_42] : memref<8x256xf32, #tpu.memory_space<vmem>>, vector<8x256xf32>
      tpu.vector_store %arg14[%c0_41, %c0_42], %70 {strides = array<i32>} : memref<8x256xf32, #tpu.memory_space<vmem>>, vector<8x256xf32>,
    } else {
    }
    %c0_3 = arith.constant 0 : index
    %c0_4 = arith.constant 0 : index
    %6 = vector.load %arg4[%c0_3, %c0_4] : memref<1x256xf32, #tpu.memory_space<vmem>>, vector<1x256xf32>
    %c0_5 = arith.constant 0 : index
    %c0_6 = arith.constant 0 : index
    %7 = vector.load %arg5[%c0_5, %c0_6] : memref<1x256xf32, #tpu.memory_space<vmem>>, vector<1x256xf32>
    %cst = arith.constant dense<0.000000e+00> : vector<8xf32>
    %8 = vector.multi_reduction <add>, %2, %cst [1] : vector<8x256xf32> to vector<8xf32>
    %9 = vector.shape_cast %8 : vector<8xf32> to vector<8x1xf32>
    %cst_7 = arith.constant 2.560000e+02 : f32
    %10 = vector.broadcast %cst_7 : f32 to vector<8x1xf32>
    %11 = arith.divf %9, %10 : vector<8x1xf32>
    %12 = vector.broadcast %11 : vector<8x1xf32> to vector<8x256xf32>
    %13 = arith.subf %2, %12 : vector<8x256xf32>
    %14 = arith.mulf %13, %13 : vector<8x256xf32>
    %cst_8 = arith.constant dense<0.000000e+00> : vector<8xf32>
    %15 = vector.multi_reduction <add>, %14, %cst_8 [1] : vector<8x256xf32> to vector<8xf32>
    %16 = vector.shape_cast %15 : vector<8xf32> to vector<8x1xf32>
    %cst_9 = arith.constant 2.560000e+02 : f32
    %17 = vector.broadcast %cst_9 : f32 to vector<8x1xf32>
    %18 = arith.divf %16, %17 : vector<8x1xf32>
    %19 = vector.broadcast %11 : vector<8x1xf32> to vector<8x256xf32>
    %20 = arith.subf %2, %19 : vector<8x256xf32>
    %cst_10 = arith.constant 9.99999974E-6 : f32
    %21 = vector.broadcast %cst_10 : f32 to vector<8x1xf32>
    %22 = arith.addf %18, %21 : vector<8x1xf32>
    %23 = math.rsqrt %22 : vector<8x1xf32>
    %24 = vector.broadcast %23 : vector<8x1xf32> to vector<8x256xf32>
    %25 = arith.mulf %20, %24 : vector<8x256xf32>
    %26 = vector.broadcast %6 : vector<1x256xf32> to vector<8x256xf32>
    %27 = arith.mulf %25, %26 : vector<8x256xf32>
    %28 = vector.broadcast %7 : vector<1x256xf32> to vector<8x256xf32>
    %29 = arith.addf %27, %28 : vector<8x256xf32>
    %30 = arith.truncf %29 : vector<8x256xf32> to vector<8x256xbf16>
    %c0_11 = arith.constant 0 : index
    %c0_12 = arith.constant 0 : index
    %31 = vector.load %arg6[%c0_11, %c0_12] : memref<256x128xbf16, #tpu.memory_space<vmem>>, vector<256x128xbf16>
    %cst_13 = arith.constant dense<0.000000e+00> : vector<8x128xf32>
    %32 = tpu.matmul %30, %31, %cst_13 {dimension_numbers = #tpu.dot_dimension_numbers<[1], [0], [0], [1], [0, 0, 1, 1], [], []>} : vector<8x256xbf16>, vector<256x128xbf16>, vector<8x128xf32> -> vector<8x128xf32>
    %c0_14 = arith.constant 0 : index
    %c0_15 = arith.constant 0 : index
    %33 = vector.load %arg7[%c0_14, %c0_15] : memref<1x128xf32, #tpu.memory_space<vmem>>, vector<1x128xf32>
    %34 = vector.broadcast %33 : vector<1x128xf32> to vector<8x128xf32>
    %35 = arith.addf %32, %34 : vector<8x128xf32>
    %cst_16 = arith.constant 0.0883883461 : f32
    %36 = vector.broadcast %cst_16 : f32 to vector<8x128xf32>
    %37 = arith.mulf %35, %36 : vector<8x128xf32>
    %38 = arith.truncf %37 : vector<8x128xf32> to vector<8x128xbf16>
    %c0_17 = arith.constant 0 : index
    %c0_18 = arith.constant 0 : index
    %c0_19 = arith.constant 0 : index
    %39 = vector.load %arg8[%c0_17, %c0_18, %c0_19] : memref<1x8x128xbf16, #tpu.memory_space<vmem>>, vector<1x8x128xbf16>
    %40 = vector.shape_cast %39 : vector<1x8x128xbf16> to vector<8x128xbf16>
    %cst_20 = arith.constant dense<0.000000e+00> : vector<8x8xf32>
    %41 = tpu.matmul %38, %40, %cst_20 {dimension_numbers = #tpu.dot_dimension_numbers<[1], [1], [0], [0], [0, 0, 1, 0], [], []>} : vector<8x128xbf16>, vector<8x128xbf16>, vector<8x8xf32> -> vector<8x8xf32>
    %cst_21 = arith.constant dense<0xFF800000> : vector<8xf32>
    %42 = vector.multi_reduction <maximumf>, %41, %cst_21 [1] : vector<8x8xf32> to vector<8xf32>
    %43 = vector.shape_cast %42 : vector<8xf32> to vector<8x1xf32>
    %44 = vector.broadcast %43 : vector<8x1xf32> to vector<8x8xf32>
    %45 = arith.subf %41, %44 : vector<8x8xf32>
    %46 = math.exp %45 : vector<8x8xf32>
    %cst_22 = arith.constant dense<0.000000e+00> : vector<8xf32>
    %47 = vector.multi_reduction <add>, %46, %cst_22 [1] : vector<8x8xf32> to vector<8xf32>
    %48 = vector.shape_cast %47 : vector<8xf32> to vector<8x1xf32>
    %49 = tpu.reciprocal %48 {approx = true} : vector<8x1xf32> -> vector<8x1xf32>
    %50 = vector.broadcast %49 : vector<8x1xf32> to vector<8x8xf32>
    %51 = arith.mulf %46, %50 : vector<8x8xf32>
    %c0_23 = arith.constant 0 : index
    %c0_24 = arith.constant 0 : index
    %c0_25 = arith.constant 0 : index
    %c0_26 = arith.constant 0 : index
    %52 = vector.load %arg13[%c0_23, %c0_24, %c0_25, %c0_26] : memref<1x1x8x8xf32, #tpu.memory_space<vmem>>, vector<1x1x8x8xf32>
    %53 = vector.shape_cast %52 : vector<1x1x8x8xf32> to vector<8x8xf32>
    %54 = vector.shape_cast %51 : vector<8x8xf32> to vector<1x1x8x8xf32>
    tpu.vector_store %arg13[%c0_23, %c0_24, %c0_25, %c0_26], %54 {strides = array<i32>} : memref<1x1x8x8xf32, #tpu.memory_space<vmem>>, vector<1x1x8x8xf32>,
    %55 = arith.truncf %51 : vector<8x8xf32> to vector<8x8xbf16>
    %c0_27 = arith.constant 0 : index
    %c0_28 = arith.constant 0 : index
    %c0_29 = arith.constant 0 : index
    %56 = vector.load %arg9[%c0_27, %c0_28, %c0_29] : memref<1x8x128xbf16, #tpu.memory_space<vmem>>, vector<1x8x128xbf16>
    %57 = vector.shape_cast %56 : vector<1x8x128xbf16> to vector<8x128xbf16>
    %cst_30 = arith.constant dense<0.000000e+00> : vector<8x128xf32>
    %58 = tpu.matmul %55, %57, %cst_30 {dimension_numbers = #tpu.dot_dimension_numbers<[1], [0], [0], [1], [0, 0, 1, 1], [], []>} : vector<8x8xbf16>, vector<8x128xbf16>, vector<8x128xf32> -> vector<8x128xf32>
    %c0_31 = arith.constant 0 : index
    %c0_32 = arith.constant 0 : index
    %59 = vector.load %arg14[%c0_31, %c0_32] : memref<8x256xf32, #tpu.memory_space<vmem>>, vector<8x256xf32>
    %60 = arith.truncf %58 : vector<8x128xf32> to vector<8x128xbf16>
    %c0_33 = arith.constant 0 : index
    %c0_34 = arith.constant 0 : index
    %61 = vector.load %arg10[%c0_33, %c0_34] : memref<128x256xbf16, #tpu.memory_space<vmem>>, vector<128x256xbf16>
    %cst_35 = arith.constant dense<0.000000e+00> : vector<8x256xf32>
    %62 = tpu.matmul %60, %61, %cst_35 {dimension_numbers = #tpu.dot_dimension_numbers<[1], [0], [0], [1], [0, 0, 1, 1], [], []>} : vector<8x128xbf16>, vector<128x256xbf16>, vector<8x256xf32> -> vector<8x256xf32>
    %63 = arith.addf %59, %62 : vector<8x256xf32>
    %c0_36 = arith.constant 0 : index
    %c0_37 = arith.constant 0 : index
    %64 = vector.load %arg14[%c0_36, %c0_37] : memref<8x256xf32, #tpu.memory_space<vmem>>, vector<8x256xf32>
    tpu.vector_store %arg14[%c0_36, %c0_37], %63 {strides = array<i32>} : memref<8x256xf32, #tpu.memory_space<vmem>>, vector<8x256xf32>,
    %c1_i32 = arith.constant 1 : i32
    %65 = arith.cmpi eq, %arg2, %c1_i32 : i32
    %66 = arith.extui %65 : i1 to i32
    %c0_i32_38 = arith.constant 0 : i32
    %67 = arith.cmpi ne, %66, %c0_i32_38 : i32
    scf.if %67 {
      %c0_39 = arith.constant 0 : index
      %c0_40 = arith.constant 0 : index
      %68 = vector.load %arg14[%c0_39, %c0_40] : memref<8x256xf32, #tpu.memory_space<vmem>>, vector<8x256xf32>
      %69 = arith.truncf %68 : vector<8x256xf32> to vector<8x256xbf16>
      %c0_41 = arith.constant 0 : index
      %c0_42 = arith.constant 0 : index
      %c0_43 = arith.constant 0 : index
      %70 = vector.load %arg12[%c0_41, %c0_42, %c0_43] : memref<1x8x256xbf16, #tpu.memory_space<vmem>>, vector<1x8x256xbf16>
      %71 = vector.shape_cast %70 : vector<1x8x256xbf16> to vector<8x256xbf16>
      %72 = vector.shape_cast %69 : vector<8x256xbf16> to vector<1x8x256xbf16>
      tpu.vector_store %arg12[%c0_41, %c0_42, %c0_43], %72 {strides = array<i32>} : memref<1x8x256xbf16, #tpu.memory_space<vmem>>, vector<1x8x256xbf16>,
    } else {
    }
    return
  }
  func.func @transform_0(%arg0: i32, %arg1: i32, %arg2: i32) -> (i32, i32, i32) {
    %c0_i32 = arith.constant 0 : i32
    %c0_i32_0 = arith.constant 0 : i32
    return %arg0, %arg1, %c0_i32 : i32, i32, i32
  }
  func.func @transform_1(%arg0: i32, %arg1: i32, %arg2: i32) -> (i32, i32) {
    %c0_i32 = arith.constant 0 : i32
    %c0_i32_0 = arith.constant 0 : i32
    %c0_i32_1 = arith.constant 0 : i32
    return %c0_i32, %c0_i32_0 : i32, i32
  }
  func.func @transform_2(%arg0: i32, %arg1: i32, %arg2: i32) -> (i32, i32) {
    %c0_i32 = arith.constant 0 : i32
    %c0_i32_0 = arith.constant 0 : i32
    %c0_i32_1 = arith.constant 0 : i32
    return %c0_i32, %c0_i32_0 : i32, i32
  }
  func.func @transform_3(%arg0: i32, %arg1: i32, %arg2: i32) -> (i32, i32) {
    %c0_i32 = arith.constant 0 : i32
    %c0_i32_0 = arith.constant 0 : i32
    return %c0_i32, %arg2 : i32, i32
  }
  func.func @transform_4(%arg0: i32, %arg1: i32, %arg2: i32) -> (i32, i32) {
    %c0_i32 = arith.constant 0 : i32
    %c0_i32_0 = arith.constant 0 : i32
    return %c0_i32, %arg2 : i32, i32
  }
  func.func @transform_5(%arg0: i32, %arg1: i32, %arg2: i32) -> (i32, i32, i32) {
    %c0_i32 = arith.constant 0 : i32
    %c0_i32_0 = arith.constant 0 : i32
    return %arg0, %c0_i32, %arg2 : i32, i32, i32
  }
  func.func @transform_6(%arg0: i32, %arg1: i32, %arg2: i32) -> (i32, i32, i32) {
    %c0_i32 = arith.constant 0 : i32
    %c0_i32_0 = arith.constant 0 : i32
    return %arg0, %c0_i32, %arg2 : i32, i32, i32
  }
  func.func @transform_7(%arg0: i32, %arg1: i32, %arg2: i32) -> (i32, i32) {
    %c0_i32 = arith.constant 0 : i32
    %c0_i32_0 = arith.constant 0 : i32
    return %arg2, %c0_i32 : i32, i32
  }
  func.func @transform_8(%arg0: i32, %arg1: i32, %arg2: i32) -> (i32, i32) {
    %c0_i32 = arith.constant 0 : i32
    %c0_i32_0 = arith.constant 0 : i32
    %c0_i32_1 = arith.constant 0 : i32
    return %c0_i32, %c0_i32_0 : i32, i32
  }
  func.func @transform_9(%arg0: i32, %arg1: i32, %arg2: i32) -> (i32, i32, i32) {
    %c0_i32 = arith.constant 0 : i32
    %c0_i32_0 = arith.constant 0 : i32
    return %arg0, %arg1, %c0_i32 : i32, i32, i32
  }
  func.func @transform_10(%arg0: i32, %arg1: i32, %arg2: i32) -> (i32, i32, i32, i32) {
    %c0_i32 = arith.constant 0 : i32
    %c0_i32_0 = arith.constant 0 : i32
    return %arg0, %arg2, %arg1, %c0_i32 : i32, i32, i32, i32
  }
}

</mosaic_0001>

<bundles_post_ra>
// kernel: mbart_model_forward.18
= control target key start
LH: loop header
LB: loop body
LE: loop exit
PB: predicated region body
PF: predicated region fallthrough
CT: control target
= control target key end

     0   :  { %s513_s15 = smov 0   ;;  %s515_s16 = smov 0   ;;  %s562_s0 = inlined_call_operand.vmem [shape: f32[2,8,256], index: 0, kind: input, shape index: {}]   ;;  %s563_s1 = inlined_call_operand.vmem [shape: f32[8,256], index: 1, kind: input, shape index: {}]   ;;  %s564_s2 = inlined_call_operand.vmem [shape: f32[1,256], index: 2, kind: input, shape index: {}]   ;;  %s565_s3 = inlined_call_operand.vmem [shape: f32[1,256], index: 3, kind: input, shape index: {}]   ;;  %s566_s4 = inlined_call_operand.vmem [shape: bf16[2,8,256], index: 4, kind: output, shape index: {}]  }
   0x1   :  { %s517_s17 = smov 0  }
   0x2 LB: > { %s26_s18 = sadd.s32 1, %s482_s16  ;;  %p427_p0 = scmp.ge.s32.totalorder %s486_s17, 1  ;;  %s486_s17 = sphi %s517_s17, %s14_s17   ;;  %s482_s16 = sphi %s515_s16, %s568_s16   ;;  %s478_s15 = sphi %s513_s15, %s567_s15  }
   0x3   : > { %p28_p1 = scmp.ge.s32.totalorder %s26_s18, 2  ;;  %p192_p2 = scmp.lt.s32.totalorder %s486_s17, 3 }
   0x5   : > { %s570_s18 = smov (%p28_p1, %s26_s18), 0  ;;  %p193_p3 = pnand %p427_p0, %p192_p2 }
   0x6   : > { %p231_p4 = scmp.lt.s32.totalorder (!%p193_p3), %s478_s15, 1  ;;  %v256_v0 = vld [vmem:[%s563_s1] sm:$0xff] (!%p193_p3)  ;;  %v257_v1 = vld [vmem:[%s563_s1 + $0x8] sm:$0xff] (!%p193_p3)  ;;  %v280_v16 = vlaneseq (!%p193_p3) }
   0x7   : > { %196 = sbr.rel (%p193_p3) target bundleno = 338 (0x152), region = 36  ;;  %v260_v21 = vld [vmem:[%s564_s2] sm:$0x3] (!%p193_p3) }
   0x8   : > { %v281_v18 = vshrl.u32 (!%p193_p3), %v280_v16, 7  ;;  %v261_v22 = vld [vmem:[%s565_s3] sm:$0x3] (!%p193_p3) }
   0xa   : > { %v282_v19 = vsub.s32 (!%p193_p3), 0, %v281_v18  ;;  %v286_v20 = vsub.s32 (!%p193_p3), 1, %v281_v18 }
   0xc   : > { %v283_v23 = vrot.slane (!%p193_p3), %v260_v21, %v282_v19  ;;  %v287_v24 = vrot.slane (!%p193_p3), %v260_v21, %v286_v20  ;;  %v296_v26 = vrot.slane (!%p193_p3), %v261_v22, %v282_v19  ;;  %v300_v27 = vrot.slane (!%p193_p3), %v261_v22, %v286_v20 }
   0xe   : > { %s572_s15 = smov (!%p231_p4, %s478_s15), 1 }
   0xf   : > { %s435_s19 = sshll.u32 %s572_s15, 4  ;;  %s436_s5 = sshll.u32 %s572_s15, 3 }
  0x10   : > { %s239_s26 = scalar_lea.vmem %s562_s0, %s435_s19  ;;  %s253_s8 = scalar_lea.vmem %s566_s4, %s436_s5 }
  0x11   : > { %v254_v2 = vld [vmem:[%s239_s26] sm:$0xff]  ;;  %v255_v3 = vld [vmem:[%s239_s26 + $0x8] sm:$0xff] }
  0x12   : > { %v258_v4 = vadd.f32 %v256_v0, %v254_v2  ;;  %v259_v5 = vadd.f32 %v257_v1, %v255_v3 }
  0x14   : > { %v262_v6 = vadd.f32 %v259_v5, %v258_v4 }
  0x16   : > { %263 = vadd.xlane.f32.xlu0 %v262_v6 }
  0xa3   : > { %v264_v7 = vpop.xlane.xlu0 %263 }
  0xa4   : > { %v266_v8 = vmul.f32 0.00390625, %v264_v7 }
  0xa6   : > { %v267_v9 = vsub.f32 %v258_v4, %v266_v8  ;;  %v268_v10 = vsub.f32 %v259_v5, %v266_v8 }
  0xa8   : > { %v269_v11 = vmul.f32 %v267_v9, %v267_v9  ;;  %v270_v12 = vmul.f32 %v268_v10, %v268_v10 }
  0xaa   : > { %v271_v13 = vadd.f32 %v270_v12, %v269_v11 }
  0xac   : > { %272 = vadd.xlane.f32.xlu0 %v271_v13 }
 0x139   : > { %v273_v14 = vpop.xlane.xlu0 %272 }
 0x13a   : > { %v274_v15 = vmul.f32 0.00390625, %v273_v14 }
 0x13c   : > { %v275_v17 = vadd.f32 1e-05, %v274_v15 }
 0x13e   : > { %462 = vrsqrt.f32 %v275_v17 }
 0x148   : > { %v463_v25 = vpop.eup %462 }
 0x149   : > { %v277_v28 = vmul.f32 %v463_v25, %v267_v9  ;;  %v278_v29 = vmul.f32 %v463_v25, %v268_v10 }
 0x14b   : > { %v290_v30 = vmul.f32 %v283_v23, %v277_v28  ;;  %v291_v31 = vmul.f32 %v287_v24, %v278_v29 }
 0x14d   : > { %v303_v32 = vadd.f32 %v296_v26, %v290_v30  ;;  %v304_v33 = vadd.f32 %v300_v27, %v291_v31 }
 0x14f   : > { %v437_v34 = vpack.c.bf16 %v304_v33, %v303_v32 }
 0x151   : > { %313 = vst [vmem:[%s253_s8] sm:$0xff] %v437_v34 }
 0x152 PF: > { %s14_s17 = sadd.s32 1, %s486_s17   ;;  %s567_s15 = smov %s482_s16 }
 0x153   : > { %p11_p5 = scmp.ge.s32.totalorder %s14_s17, 4   ;;  %s568_s16 = smov %s570_s18 }
 0x155   :  { %13 = sbr.rel (!%p11_p5) target bundleno = 2 (0x2), region = 69 }

// kernel: mbart_model_forward.27
= control target key start
LH: loop header
LB: loop body
LE: loop exit
PB: predicated region body
PF: predicated region fallthrough
CT: control target
= control target key end

     0   :  { %s1898_s0 = inlined_call_operand.vmem [shape: bf16[2,8,256], index: 0, kind: input, shape index: {}]   ;;  %s1899_s1 = inlined_call_operand.vmem [shape: f32[1,256], index: 1, kind: input, shape index: {}]   ;;  %s1900_s2 = inlined_call_operand.vmem [shape: f32[1,256], index: 2, kind: input, shape index: {}]   ;;  %s1901_s3 = inlined_call_operand.vmem [shape: bf16[256,256], index: 3, kind: input, shape index: {}]   ;;  %s1902_s4 = inlined_call_operand.vmem [shape: f32[1,256], index: 4, kind: input, shape index: {}]   ;;  %s1903_s5 = inlined_call_operand.vmem [shape: bf16[2,8,256], index: 5, kind: input, shape index: {}]   ;;  %s1904_s6 = inlined_call_operand.vmem [shape: bf16[2,8,256], index: 6, kind: input, shape index: {}]   ;;  %s1905_s7 = inlined_call_operand.vmem [shape: bf16[256,256], index: 7, kind: input, shape index: {}]   ;;  %s1906_s8 = inlined_call_operand.vmem [shape: f32[1,256], index: 8, kind: input, shape index: {}]   ;;  %s1907_s9 = inlined_call_operand.vmem [shape: bf16[2,8,256], index: 9, kind: output, shape index: {}]  }
   0x1   :  { %1911 = sst [smem:[#allocation8_spill]] %s1898_s0 }
   0x2   :  { %1912 = sst [smem:[#allocation9_spill]] %s1901_s3 }
   0x3   :  { %s1658_s30 = smov 0   ;;  %s1660_s10 = smov 0  }
   0x4   :  { %s1662_s11 = smov 0   ;;  %s1664_s12 = smov 0  }
   0x5   :  { %s1666_s13 = smov 0   ;;  %s1668_s14 = smov 0  }
   0x6   :  { %s1670_s15 = smov 0  }
   0x7 LB: > { %1913 = sst [smem:[#allocation4_spill]] %s1595_s13  ;;  %s31_s16 = sadd.s32 1, %s1595_s13  ;;  %s1603_s15 = sphi %s1670_s15, %s19_s15   ;;  %s1599_s14 = sphi %s1668_s14, %s1922_s14   ;;  %s1595_s13 = sphi %s1666_s13, %s1921_s13   ;;  %s1591_s12 = sphi %s1664_s12, %s1920_s12   ;;  %s1587_s11 = sphi %s1662_s11, %s1919_s11   ;;  %s1583_s10 = sphi %s1660_s10, %s1924_s10   ;;  %s1579_s30 = sphi %s1658_s30, %s1923_s30  }
   0x8   : > { %1914 = sst [smem:[#allocation5_spill]] %s1599_s14  ;;  %s38_s17 = sadd.s32 1, %s1599_s14 }
   0x9   : > { %p32_p0 = scmp.ge.s32.totalorder %s31_s16, 2  ;;  %s115_s18 = sadd.s32 1, %s1583_s10 }
   0xa   : > { %p122_p1 = scmp.ne.s32.totalorder %s1583_s10, %s1579_s30  ;;  %p123_p2 = scmp.eq.s32.totalorder %s1603_s15, 0 }
   0xb   : > { %s1926_s16 = smov (%p32_p0, %s31_s16), 0  ;;  %s1928_s17 = smov (!%p32_p0, %s38_s17), %s1599_s14 }
   0xc   : > { %1915 = sst [smem:[#allocation6_spill]] %s1926_s16  ;;  %s112_s19 = ssub.s32 %s1595_s13, %s1926_s16 }
   0xd   : > { %p124_p3 = por %p123_p2, %p122_p1  ;;  %p40_p4 = scmp.ge.s32.totalorder %s1928_s17, 2 }
   0xe   : > { %p113_p5 = scmp.eq.s32.totalorder %s112_s19, 0  ;;  %p1347_p6 = scmp.ge.s32.totalorder %s1603_s15, 4 }
   0xf   : > { %s1930_s17 = smov (%p40_p4, %s1928_s17), 0 }
  0x10   : > { %1916 = sst [smem:[#allocation7_spill]] %s1930_s17  ;;  %314 = sbr.rel (%p1347_p6) target bundleno = 54 (0x36), region = 28 }
  0x11   : > { %s1707_s20 = scalar_select %p113_p5, %s1583_s10, %s115_s18  }
  0x17   : > { %329 = sbr.rel (!%p124_p3) target bundleno = 54 (0x36), region = 36  ;;  %s331_s21 = sand.u32 (%p124_p3), 1, %s1583_s10  }
  0x18   : > { %s1349_s22 = sshll.u32 (%p124_p3), %s1595_s13, 2  ;;  %s1348_s23 = sshll.u32 (%p124_p3), %s331_s21, 7 }
  0x19   : > { %s1917_s3 = sld [smem:[#allocation9_spill]] (%p124_p3)  ;;  %s1719_s27 = scalar_lea.vmem (%p124_p3), [#allocation3], %s1348_s23 }
  0x1f   : > { %s1715_s26 = scalar_lea.vmem %s1917_s3, %s1349_s22 }
  0x20   : > { %v351_v0 = vld [vmem:[%s1715_s26] sm:$0xf]  ;;  %v353_v1 = vld [vmem:[%s1715_s26 + $0x8] sm:$0xf]  ;;  %v355_v2 = vld [vmem:[%s1715_s26 + $0x10] sm:$0xf] }
  0x21   : > { %352 = vst [vmem:[%s1719_s27] sm:$0xf] %v351_v0  ;;  %354 = vst [vmem:[%s1719_s27 + $0x4] sm:$0xf] %v353_v1  ;;  %v357_v3 = vld [vmem:[%s1715_s26 + $0x18] sm:$0xf] }
  0x22   : > { %v359_v4 = vld [vmem:[%s1715_s26 + $0x20] sm:$0xf]  ;;  %356 = vst [vmem:[%s1719_s27 + $0x8] sm:$0xf] %v355_v2  ;;  %358 = vst [vmem:[%s1719_s27 + $0xc] sm:$0xf] %v357_v3 }
  0x23   : > { %360 = vst [vmem:[%s1719_s27 + $0x10] sm:$0xf] %v359_v4  ;;  %v361_v5 = vld [vmem:[%s1715_s26 + $0x28] sm:$0xf]  ;;  %v363_v6 = vld [vmem:[%s1715_s26 + $0x30] sm:$0xf] }
  0x24   : > { %v365_v7 = vld [vmem:[%s1715_s26 + $0x38] sm:$0xf]  ;;  %362 = vst [vmem:[%s1719_s27 + $0x14] sm:$0xf] %v361_v5  ;;  %364 = vst [vmem:[%s1719_s27 + $0x18] sm:$0xf] %v363_v6 }
  0x25   : > { %366 = vst [vmem:[%s1719_s27 + $0x1c] sm:$0xf] %v365_v7  ;;  %v367_v8 = vld [vmem:[%s1715_s26 + $0x40] sm:$0xf]  ;;  %v369_v9 = vld [vmem:[%s1715_s26 + $0x48] sm:$0xf] }
  0x26   : > { %v371_v10 = vld [vmem:[%s1715_s26 + $0x50] sm:$0xf]  ;;  %368 = vst [vmem:[%s1719_s27 + $0x20] sm:$0xf] %v367_v8  ;;  %370 = vst [vmem:[%s1719_s27 + $0x24] sm:$0xf] %v369_v9 }
  0x27   : > { %372 = vst [vmem:[%s1719_s27 + $0x28] sm:$0xf] %v371_v10  ;;  %v373_v11 = vld [vmem:[%s1715_s26 + $0x58] sm:$0xf]  ;;  %v375_v12 = vld [vmem:[%s1715_s26 + $0x60] sm:$0xf] }
  0x28   : > { %v377_v13 = vld [vmem:[%s1715_s26 + $0x68] sm:$0xf]  ;;  %374 = vst [vmem:[%s1719_s27 + $0x2c] sm:$0xf] %v373_v11  ;;  %376 = vst [vmem:[%s1719_s27 + $0x30] sm:$0xf] %v375_v12 }
  0x29   : > { %378 = vst [vmem:[%s1719_s27 + $0x34] sm:$0xf] %v377_v13  ;;  %v379_v14 = vld [vmem:[%s1715_s26 + $0x70] sm:$0xf]  ;;  %v381_v15 = vld [vmem:[%s1715_s26 + $0x78] sm:$0xf] }
  0x2a   : > { %v383_v16 = vld [vmem:[%s1715_s26 + $0x80] sm:$0xf]  ;;  %380 = vst [vmem:[%s1719_s27 + $0x38] sm:$0xf] %v379_v14  ;;  %382 = vst [vmem:[%s1719_s27 + $0x3c] sm:$0xf] %v381_v15 }
  0x2b   : > { %384 = vst [vmem:[%s1719_s27 + $0x40] sm:$0xf] %v383_v16  ;;  %v385_v17 = vld [vmem:[%s1715_s26 + $0x88] sm:$0xf]  ;;  %v387_v18 = vld [vmem:[%s1715_s26 + $0x90] sm:$0xf] }
  0x2c   : > { %v389_v19 = vld [vmem:[%s1715_s26 + $0x98] sm:$0xf]  ;;  %386 = vst [vmem:[%s1719_s27 + $0x44] sm:$0xf] %v385_v17  ;;  %388 = vst [vmem:[%s1719_s27 + $0x48] sm:$0xf] %v387_v18 }
  0x2d   : > { %390 = vst [vmem:[%s1719_s27 + $0x4c] sm:$0xf] %v389_v19  ;;  %v391_v20 = vld [vmem:[%s1715_s26 + $0xa0] sm:$0xf]  ;;  %v393_v21 = vld [vmem:[%s1715_s26 + $0xa8] sm:$0xf] }
  0x2e   : > { %v395_v22 = vld [vmem:[%s1715_s26 + $0xb0] sm:$0xf]  ;;  %392 = vst [vmem:[%s1719_s27 + $0x50] sm:$0xf] %v391_v20  ;;  %394 = vst [vmem:[%s1719_s27 + $0x54] sm:$0xf] %v393_v21 }
  0x2f   : > { %396 = vst [vmem:[%s1719_s27 + $0x58] sm:$0xf] %v395_v22  ;;  %v397_v23 = vld [vmem:[%s1715_s26 + $0xb8] sm:$0xf]  ;;  %v399_v24 = vld [vmem:[%s1715_s26 + $0xc0] sm:$0xf] }
  0x30   : > { %v401_v25 = vld [vmem:[%s1715_s26 + $0xc8] sm:$0xf]  ;;  %398 = vst [vmem:[%s1719_s27 + $0x5c] sm:$0xf] %v397_v23  ;;  %400 = vst [vmem:[%s1719_s27 + $0x60] sm:$0xf] %v399_v24 }
  0x31   : > { %402 = vst [vmem:[%s1719_s27 + $0x64] sm:$0xf] %v401_v25  ;;  %v403_v26 = vld [vmem:[%s1715_s26 + $0xd0] sm:$0xf]  ;;  %v405_v27 = vld [vmem:[%s1715_s26 + $0xd8] sm:$0xf] }
  0x32   : > { %v407_v28 = vld [vmem:[%s1715_s26 + $0xe0] sm:$0xf]  ;;  %404 = vst [vmem:[%s1719_s27 + $0x68] sm:$0xf] %v403_v26  ;;  %406 = vst [vmem:[%s1719_s27 + $0x6c] sm:$0xf] %v405_v27 }
  0x33   : > { %408 = vst [vmem:[%s1719_s27 + $0x70] sm:$0xf] %v407_v28  ;;  %v409_v29 = vld [vmem:[%s1715_s26 + $0xe8] sm:$0xf]  ;;  %v411_v30 = vld [vmem:[%s1715_s26 + $0xf0] sm:$0xf] }
  0x34   : > { %v413_v31 = vld [vmem:[%s1715_s26 + $0xf8] sm:$0xf]  ;;  %410 = vst [vmem:[%s1719_s27 + $0x74] sm:$0xf] %v409_v29  ;;  %412 = vst [vmem:[%s1719_s27 + $0x78] sm:$0xf] %v411_v30 }
  0x35   : > { %414 = vst [vmem:[%s1719_s27 + $0x7c] sm:$0xf] %v413_v31 }
  0x36 PF: > { %p1350_p7 = scmp.ge.s32.totalorder %s1603_s15, 1  ;;  %p538_p8 = scmp.lt.s32.totalorder %s1603_s15, 5 }
  0x38   : > { %p539_p9 = pnand %p1350_p7, %p538_p8 }
  0x39   : > { %s545_s28 = sand.u32 (!%p539_p9), 1, %s1579_s30   ;;  %p618_p10 = scmp.lt.s32.totalorder (!%p539_p9), %s1591_s12, 1 }
  0x3a   : > { %542 = sbr.rel (%p539_p9) target bundleno = 1586 (0x632), region = 93  ;;  %s1351_s29 = sshll.u32 (!%p539_p9), %s545_s28, 7 }
  0x3b   : > { %p627_p11 = scmp.lt.s32.totalorder (!%p539_p9), %s1587_s11, 1  ;;  %s1358_s18 = sshll.u32 (!%p539_p9), %s1587_s11, 4 }
  0x3c   : > { %s1918_s0 = sld [smem:[#allocation8_spill]] (!%p539_p9)  ;;  %p647_p12 = scmp.lt.s32.totalorder (!%p539_p9), %s1358_s18, 31 }
  0x3d   : > { %s1821_s17 = scalar_lea.vmem (!%p539_p9), [#allocation3], %s1351_s29  ;;  %p1363_p13 = scmp.ne.s32.totalorder (!%p539_p9), %s1587_s11, 0 }
  0x41   : > { %s1932_s12 = smov (!%p618_p10, %s1591_s12), 1  ;;  %s1934_s18 = smov (!%p647_p12, %s1358_s18), 31 }
  0x42   : > { %s1791_s19 = scalar_select %p627_p11, %s1587_s11, 1 }
  0x43   : > { %s1402_s21 = sshll.u32 %s1932_s12, 3  ;;  %s1354_s22 = sshll.u32 %s1932_s12, 1  ;;  %v672_v35 = vlaneseq (!%p1363_p13)  ;;  %v670_v37 = vld [vmem:[%s1906_s8] sm:$0x3] (!%p1363_p13) }
  0x44   : > { %s626_s25 = scalar_lea.vmem %s1918_s0, %s1402_s21  ;;  %s629_s3 = scalar_lea.vmem %s1902_s4, %s1791_s19 }
  0x45   : > { %s635_s30 = sadd.s32 %s1354_s22, %s1791_s19  ;;  %v663_v32 = vld [vmem:[%s626_s25] sm:$0xff]  ;;  %s1804_s14 = scalar_lea.vmem %s1907_s9, %s1402_s21  ;;  %v673_v36 = vshrl.u32 (!%p1363_p13), %v672_v35, 7 }
  0x46   : > { %s1355_s28 = sshll.u32 %s635_s30, 2  ;;  %v664_v33 = vunpack.c.l.bf16 %v663_v32  ;;  %v665_v34 = vunpack.c.h.bf16 %v663_v32  ;;  %s1403_s22 = sshll.u32 %s1934_s18, 3 }
  0x47   : > { %s1809_s23 = scalar_lea.vmem %s1903_s5, %s1355_s28  ;;  %s1814_s26 = scalar_lea.vmem %s1904_s6, %s1355_s28  ;;  %v674_v38 = vsub.s32 (!%p1363_p13), 0, %v673_v36  ;;  %v678_v39 = vsub.s32 (!%p1363_p13), 1, %v673_v36 }
  0x48   : > { %s1819_s16 = scalar_lea.vmem %s1905_s7, %s1403_s22  ;;  %669 = sbr.rel (%p1363_p13) target bundleno = 79 (0x4f), region = 101 }
  0x49   : > { %v675_v40 = vrot.slane (!%p1363_p13), %v670_v37, %v674_v38  ;;  %v679_v41 = vrot.slane (!%p1363_p13), %v670_v37, %v678_v39 }
  0x4b   : > { %v682_v42 = vadd.f32 (!%p1363_p13), %v675_v40, %v664_v33  ;;  %v683_v43 = vadd.f32 (!%p1363_p13), %v679_v41, %v665_v34 }
  0x4d   : > { %684 = vst [vmem:[#allocation2] sm:$0xff] (!%p1363_p13), %v682_v42  ;;  %685 = vst [vmem:[#allocation2 + $0x8] sm:$0xff] (!%p1363_p13), %v683_v43 }
  0x4f PF: > { %v688_v44 = vadd.f32 %v665_v34, %v664_v33  ;;  %v1503_v45 = vld [vmem:[%s1821_s17 + $0x40] sm:$0xff]   ;;  %v1505_v47 = vld [vmem:[%s1821_s17 + $0x48] sm:$0xff]   ;;  %v1507_v56 = vld [vmem:[%s1821_s17 + $0x50] sm:$0xff]   ;;  %v706_v6 = vlaneseq  ;;  %v1605_v26 = vmov 0.0   ;;  %vm1606_vm0 = vmmov 0   ;;  %p1398_p0 = scmp.ne.s32.totalorder %s1587_s11, 1 }
  0x50   : > { %v1504_v46 = vld [vmem:[%s1821_s17] sm:$0xff]   ;;  %1406 = vmatprep.subr.bf16.mxu0 %v1503_v45  ;;  %v1506_v48 = vld [vmem:[%s1821_s17 + $0x8] sm:$0xff]   ;;  %v1508_v57 = vld [vmem:[%s1821_s17 + $0x10] sm:$0xff]   ;;  %1438 = vmatprep.subr.bf16.mxu1 %v1605_v26  ;;  %vm951_vm1 = vcmask 64512   ;;  %vm968_vm2 = vcmask 1043456  }
  0x51   : > { %689 = vadd.xlane.f32.xlu0 %v688_v44  ;;  %1407 = vmatpush3.bf16.msra.mxu0 %v1504_v46  ;;  %v1509_v58 = vld [vmem:[%s1821_s17 + $0x58] sm:$0xff]   ;;  %v1511_v60 = vld [vmem:[%s1821_s17 + $0x60] sm:$0xff]   ;;  %v1513_v62 = vld [vmem:[%s1821_s17 + $0x68] sm:$0xff]   ;;  %v707_v8 = vshrl.u32 %v706_v6, 7 }
  0x52   : > { %1408 = vmatprep.subr.bf16.mxu0 %v1505_v47  ;;  %v1510_v59 = vld [vmem:[%s1821_s17 + $0x18] sm:$0xff]   ;;  %v1512_v61 = vld [vmem:[%s1821_s17 + $0x20] sm:$0xff]   ;;  %v1514_v63 = vld [vmem:[%s1821_s17 + $0x28] sm:$0xff]   ;;  %1440 = vmatprep.mubr.msk.bf16.mxu1 %vm1606_vm0, %v1605_v26 }
  0x53   : > { %v1515_v0 = vld [vmem:[%s1821_s17 + $0x70] sm:$0xff]   ;;  %v1517_v2 = vld [vmem:[%s1821_s17 + $0x78] sm:$0xff]   ;;  %v708_v9 = vsub.s32 0, %v707_v8  ;;  %v712_v10 = vsub.s32 1, %v707_v8 }
  0x54   : > { %v1516_v1 = vld [vmem:[%s1821_s17 + $0x30] sm:$0xff]   ;;  %v1518_v3 = vld [vmem:[%s1821_s17 + $0x38] sm:$0xff]  }
  0x55   : > { %1409 = vmatpush3.bf16.msra.mxu0 %v1506_v48  ;;  %v686_v11 = vld [vmem:[%s1899_s1] sm:$0x3] }
  0x56   : > { %1410 = vmatprep.subr.bf16.mxu0 %v1507_v56  ;;  %v687_v12 = vld [vmem:[%s1900_s2] sm:$0x3]  ;;  %v709_v13 = vrot.slane %v686_v11, %v708_v9  ;;  %v713_v14 = vrot.slane %v686_v11, %v712_v10  ;;  %v1522_v56 = vld [vmem:[%s1819_s16 + $0x10] ss:$8 sps:$4 sm:$0xff]  }
  0x57   : > { %v722_v17 = vrot.slane %v687_v12, %v708_v9  ;;  %v726_v18 = vrot.slane %v687_v12, %v712_v10  ;;  %v910_v27 = vld [vmem:[%s1809_s23] sm:$0xf]  ;;  %v1013_v12 = vld [vmem:[#allocation2 + $0x8] sm:$0xff] }
  0x58   : > { %v1364_v29 = vld [vmem:[%s629_s3] ss:$0 sm:$0xff] }
  0x59   : > { %1411 = vmatpush3.bf16.msra.mxu0 %v1508_v57  ;;  %v964_v47 = vld [vmem:[%s1814_s26] sm:$0xf]  ;;  %v1527_v57 = vld [vmem:[%s1819_s16 + $0x24] ss:$8 sps:$4 sm:$0xff]  }
  0x5a   : > { %1412 = vmatprep.subr.bf16.mxu0 %v1509_v58  ;;  %v970_v48 = vsel %vm968_vm2, %v964_v47, 0  ;;  %v1525_v58 = vld [vmem:[%s1819_s16 + $0x20] ss:$8 sps:$4 sm:$0xff]  }
  0x5b   : > { %1439 = vmatpush3.bf16.msra.mxu1 %v970_v48  ;;  %v1012_v11 = vld [vmem:[#allocation2] sm:$0xff] }
  0x5d   : > { %1413 = vmatpush3.bf16.msra.mxu0 %v1510_v59  ;;  %v1530_v59 = vld [vmem:[%s1819_s16 + $0x34] ss:$8 sps:$4 sm:$0xff]  }
  0x5e   : > { %1414 = vmatprep.subr.bf16.mxu0 %v1511_v60  ;;  %v1528_v60 = vld [vmem:[%s1819_s16 + $0x30] ss:$8 sps:$4 sm:$0xff]  }
  0x61   : > { %1415 = vmatpush3.bf16.msra.mxu0 %v1512_v61  ;;  %v1533_v61 = vld [vmem:[%s1819_s16 + $0x44] ss:$8 sps:$4 sm:$0xff]  }
  0x62   : > { %1416 = vmatprep.subr.bf16.mxu0 %v1513_v62  ;;  %v1531_v62 = vld [vmem:[%s1819_s16 + $0x40] ss:$8 sps:$4 sm:$0xff]  }
  0x65   : > { %1417 = vmatpush3.bf16.msra.mxu0 %v1514_v63  ;;  %v1536_v63 = vld [vmem:[%s1819_s16 + $0x54] ss:$8 sps:$4 sm:$0xff]  }
  0x66   : > { %1418 = vmatprep.subr.bf16.mxu0 %v1515_v0  ;;  %v1534_v0 = vld [vmem:[%s1819_s16 + $0x50] ss:$8 sps:$4 sm:$0xff]  }
  0x69   : > { %1419 = vmatpush3.bf16.msra.mxu0 %v1516_v1  ;;  %v1539_v1 = vld [vmem:[%s1819_s16 + $0x64] ss:$8 sps:$4 sm:$0xff]  }
  0x6a   : > { %1420 = vmatprep.subr.bf16.mxu0 %v1517_v2  ;;  %v1537_v2 = vld [vmem:[%s1819_s16 + $0x60] ss:$8 sps:$4 sm:$0xff]  }
  0x6d   : > { %1421 = vmatpush3.bf16.msra.mxu0 %v1518_v3  ;;  %v1542_v3 = vld [vmem:[%s1819_s16 + $0x74] ss:$8 sps:$4 sm:$0xff]  }
  0x6e   : > { %1432 = vmatprep.subr.bf16.mxu0 %v1605_v26 }
  0xde   : > { %v690_v49 = vpop.xlane.xlu0 %689 }
  0xdf   : > { %v692_v50 = vmul.f32 0.00390625, %v690_v49  ;;  %v1521_v49 = vld [vmem:[%s1819_s16 + $0x4] ss:$8 sps:$4 sm:$0xff]  }
  0xe0   : > { %1111 = vmatprep.subr.bf16.mxu1 %v1521_v49 }
  0xe1   : > { %v693_v51 = vsub.f32 %v664_v33, %v692_v50  ;;  %v694_v52 = vsub.f32 %v665_v34, %v692_v50 }
  0xe3   : > { %v695_v53 = vmul.f32 %v693_v51, %v693_v51  ;;  %v696_v54 = vmul.f32 %v694_v52, %v694_v52 }
  0xe5   : > { %v697_v55 = vadd.f32 %v696_v54, %v695_v53  ;;  %v1519_v53 = vld [vmem:[%s1819_s16] ss:$8 sps:$4 sm:$0xff]  }
  0xe7   : > { %698 = vadd.xlane.f32.xlu0 %v697_v55  ;;  %v1524_v55 = vld [vmem:[%s1819_s16 + $0x14] ss:$8 sps:$4 sm:$0xff]  }
 0x174   : > { %v699_v4 = vpop.xlane.xlu0 %698 }
 0x175   : > { %v700_v5 = vmul.f32 0.00390625, %v699_v4  ;;  %v1540_v4 = vld [vmem:[%s1819_s16 + $0x70] ss:$8 sps:$4 sm:$0xff]  }
 0x177   : > { %v701_v7 = vadd.f32 1e-05, %v700_v5  ;;  %v1607_v5 = vmov 0  }
 0x179   : > { %1543 = vrsqrt.f32 %v701_v7 }
 0x183   : > { %v1544_v15 = vpop.eup %1543 }
 0x184   : > { %v704_v16 = vmul.f32 %v1544_v15, %v694_v52  ;;  %v703_v19 = vmul.f32 %v1544_v15, %v693_v51 }
 0x186   : > { %v717_v20 = vmul.f32 %v713_v14, %v704_v16  ;;  %v716_v21 = vmul.f32 %v709_v13, %v703_v19 }
 0x188   : > { %v730_v22 = vadd.f32 %v726_v18, %v717_v20  ;;  %v729_v23 = vadd.f32 %v722_v17, %v716_v21 }
 0x18a   : > { %v732_v24 = vpack.c.bf16 %v730_v22, %v730_v22  ;;  %v731_v25 = vpack.c.bf16 %v729_v23, %v729_v23 }
 0x18c   : > { %900 = vmatprep.mubr.bf16.mxu0 %v732_v24 }
 0x18d   : > { %901 = vmatmul.mubr.bf16.vlgmr.msra.gmra.mrb[0].mxu0 %v731_v25 }
 0x18e   : > { %1433 = vmatpush3.bf16.xpose.msra.mxu0 %v910_v27  ;;  %1434 = vmatprep.mubr.msk.bf16.mxu0 %vm1606_vm0, %v1605_v26 }
 0x260   : > { %v1422_v28 = vpop.f32.mrb[0].mxu0 }
 0x261   : > { %v1423_v30 = vpop.f32.mrb[1].mxu0 }
 0x262   : > { %v1424_v31 = vadd.f32 %v1423_v30, %v1422_v28  ;;  %v1425_v32 = vpop.f32.mrb[2].mxu0 }
 0x263   : > { %v1426_v33 = vpop.f32.mrb[3].mxu0 }
 0x264   : > { %v903_v34 = vadd.f32 %v1424_v31, %v1364_v29 }
 0x266   : > { %v908_v35 = vmul.f32 0.088388346, %v903_v34 }
 0x268   : > { %v909_v36 = vpack.c.bf16 %v908_v35, %v908_v35 }
 0x26a   : > { %1435 = vmatmul.mubr.bf16.vlgmr.msra.gmra.mrb[4].mxu0 %v909_v36 }
 0x33d   : > { %v945_v37 = vpop.f32.mrb[4].mxu0 }
 0x33e   : > { %v1436_v38 = vpop.f32.mrb[5].mxu0  ;;  %v952_v39 = vsel %vm951_vm1, %v945_v37, -inf }
 0x33f   : > { %953 = vmax.xlane.f32.xlu1 %v952_v39  ;;  %v948_v40 = vpop.f32.mrb[6].mxu0 }
 0x340   : > { %v1437_v41 = vpop.f32.mrb[7].mxu0 }
 0x3cc   : > { %v954_v42 = vpop.xlane.xlu1 %953 }
 0x3cd   : > { %v955_v43 = vsub.f32 %v945_v37, %v954_v42 }
 0x3cf   : > { %v956_v44 = vmul.f32 1.442695, %v955_v43 }
 0x3d1   : > { %1545 = vpow2.f32 %v956_v44 }
 0x3db   : > { %v1546_v45 = vpop.eup %1545 }
 0x3dc   : > { %v958_v46 = vsel %vm951_vm1, %v1546_v45, 0.0 }
 0x3dd   : > { %959 = vadd.xlane.f32.xlu1 %v958_v46 }
 0x46a   : > { %v960_v50 = vpop.xlane.xlu1 %959 }
 0x46b   : > { %1547 = vrcp.f32 %v960_v50 }
 0x475   : > { %v1548_v51 = vpop.eup %1547 }
 0x476   : > { %v962_v52 = vmul.f32 %v1548_v51, %v1546_v45 }
 0x478   : > { %v963_v54 = vpack.c.bf16 %v962_v52, %v962_v52 }
 0x47a   : > { %1441 = vmatmul.mubr.msk.bf16.vlgmr.msra.gmra.mrb[0].mxu1 %vm951_vm1, %v963_v54 }
 0x47b   : > { %1112 = vmatpush1.bf16.msra.mxu1 %v1519_v53  ;;  %1143 = vmatprep.mubr.bf16.mxu1 %v1607_v5 }
 0x47c   : > { %1113 = vmatprep.subr.bf16.mxu1 %v1524_v55 }
 0x47f   : > { %1114 = vmatpush1.bf16.msra.mxu1 %v1522_v56 }
 0x480   : > { %1115 = vmatprep.subr.bf16.mxu1 %v1527_v57 }
 0x483   : > { %1116 = vmatpush1.bf16.msra.mxu1 %v1525_v58 }
 0x484   : > { %1117 = vmatprep.subr.bf16.mxu1 %v1530_v59 }
 0x487   : > { %1118 = vmatpush1.bf16.msra.mxu1 %v1528_v60 }
 0x488   : > { %1119 = vmatprep.subr.bf16.mxu1 %v1533_v61 }
 0x48b   : > { %1120 = vmatpush1.bf16.msra.mxu1 %v1531_v62 }
 0x48c   : > { %1121 = vmatprep.subr.bf16.mxu1 %v1536_v63 }
 0x48f   : > { %1122 = vmatpush1.bf16.msra.mxu1 %v1534_v0 }
 0x490   : > { %1123 = vmatprep.subr.bf16.mxu1 %v1539_v1 }
 0x493   : > { %1124 = vmatpush1.bf16.msra.mxu1 %v1537_v2 }
 0x494   : > { %1125 = vmatprep.subr.bf16.mxu1 %v1542_v3 }
 0x497   : > { %1126 = vmatpush1.bf16.msra.mxu1 %v1540_v4 }
 0x54d   : > { %v1006_v6 = vpop.f32.mrb[0].mxu1 }
 0x54e   : > { %v1014_v7 = vpack.c.bf16 %v1006_v6, %v1006_v6  ;;  %v1442_v8 = vpop.f32.mrb[1].mxu1 }
 0x54f   : > { %v1009_v9 = vpop.f32.mrb[2].mxu1 }
 0x550   : > { %v1443_v10 = vpop.f32.mrb[3].mxu1  ;;  %1144 = vmatmul.mubr.bf16.vlgmr.msra.gmra.mrb[4].mxu1 %v1014_v7 }
 0x621   : > { %1159 = sbr.rel (%p1398_p0) target bundleno = 1586 (0x632), region = 105 }
 0x623   : > { %v1145_v13 = vpop.f32.mrb[4].mxu1 }
 0x624   : > { %v1152_v14 = vadd.f32 %v1145_v13, %v1012_v11  ;;  %v1147_v15 = vpop.f32.mrb[5].mxu1 }
 0x625   : > { %v1153_v16 = vadd.f32 %v1147_v15, %v1013_v12  ;;  %v1149_v17 = vpop.f32.mrb[6].mxu1 }
 0x626   : > { %1154 = vst [vmem:[#allocation2] sm:$0xff] %v1152_v14  ;;  %v1150_v18 = vpop.f32.mrb[7].mxu1 }
 0x627   : > { %1155 = vst [vmem:[#allocation2 + $0x8] sm:$0xff] %v1153_v16 }
 0x62d   : > { %v1160_v19 = vld [vmem:[#allocation2] sm:$0xff] }
 0x62e   : > { %v1161_v20 = vld [vmem:[#allocation2 + $0x8] sm:$0xff] }
 0x62f   : > { %v1405_v21 = vpack.c.bf16 %v1161_v20, %v1160_v19 }
 0x631   : > { %1170 = vst [vmem:[%s1804_s14] sm:$0xff] %v1405_v21 }
 0x632 PF: > { %s19_s15 = sadd.s32 1, %s1603_s15   ;;  %s1919_s11 = sld [smem:[#allocation4_spill]] }
 0x633   : > { %p16_p1 = scmp.ge.s32.totalorder %s19_s15, 6   ;;  %s1920_s12 = sld [smem:[#allocation5_spill]] }
 0x634   : > { %s1921_s13 = sld [smem:[#allocation6_spill]]  ;;  %s1922_s14 = sld [smem:[#allocation7_spill]] }
 0x635   : > { %s1923_s30 = smov %s1583_s10  ;;  %s1924_s10 = smov %s1707_s20 }
 0x636   :  { %18 = sbr.rel (!%p16_p1) target bundleno = 7 (0x7), region = 155 }

// kernel: mbart_model_forward.26
= control target key start
LH: loop header
LB: loop body
LE: loop exit
PB: predicated region body
PF: predicated region fallthrough
CT: control target
= control target key end

     0   :  { %s1277_s21 = smov 0   ;;  %s1279_s22 = smov 0   ;;  %s1541_s0 = inlined_call_operand.vmem [shape: bf16[2,8,256], index: 0, kind: input, shape index: {}]   ;;  %s1542_s1 = inlined_call_operand.vmem [shape: f32[1,256], index: 1, kind: input, shape index: {}]   ;;  %s1543_s2 = inlined_call_operand.vmem [shape: f32[1,256], index: 2, kind: input, shape index: {}]   ;;  %s1544_s3 = inlined_call_operand.vmem [shape: bf16[256,512], index: 3, kind: input, shape index: {}]   ;;  %s1545_s4 = inlined_call_operand.vmem [shape: f32[1,512], index: 4, kind: input, shape index: {}]   ;;  %s1546_s5 = inlined_call_operand.vmem [shape: bf16[2,8,256], index: 5, kind: output, shape index: {0}]   ;;  %s1547_s6 = inlined_call_operand.vmem [shape: bf16[2,8,256], index: 6, kind: output, shape index: {1}]  }
   0x1   :  { %s1281_s23 = smov 0  }
   0x2 LB: > { %s29_s24 = sadd.s32 1, %s1236_s22  ;;  %p1016_p0 = scmp.ge.s32.totalorder %s1240_s23, 1  ;;  %s1240_s23 = sphi %s1281_s23, %s17_s23   ;;  %s1236_s22 = sphi %s1279_s22, %s1549_s22   ;;  %s1232_s21 = sphi %s1277_s21, %s1548_s21  }
   0x3   : > { %p31_p1 = scmp.ge.s32.totalorder %s29_s24, 2  ;;  %p237_p2 = scmp.lt.s32.totalorder %s1240_s23, 3 }
   0x5   : > { %s1551_s24 = smov (%p31_p1, %s29_s24), 0  ;;  %p238_p3 = pnand %p1016_p0, %p237_p2 }
   0x6   : > { %p284_p4 = scmp.lt.s32.totalorder (!%p238_p3), %s1232_s21, 1  ;;  %v1120_v4 = vld [vmem:[%s1544_s3 + $0x4] ss:$16 sps:$4 sm:$0xff] (!%p238_p3)   ;;  %v1122_v5 = vld [vmem:[%s1544_s3 + $0xc] ss:$16 sps:$4 sm:$0xff] (!%p238_p3)  }
   0x7   : > { %241 = sbr.rel (%p238_p3) target bundleno = 556 (0x22c), region = 40  ;;  %v1124_v6 = vld [vmem:[%s1544_s3] ss:$16 sps:$4 sm:$0xff] (!%p238_p3)   ;;  %v1125_v7 = vld [vmem:[%s1544_s3 + $0x8] ss:$16 sps:$4 sm:$0xff] (!%p238_p3)   ;;  %767 = vmatprep.subr.bf16.mxu0 (!%p238_p3), %v1120_v4  ;;  %808 = vmatprep.subr.bf16.mxu1 (!%p238_p3), %v1122_v5 }
   0x8   : > { %v1126_v8 = vld [vmem:[%s1544_s3 + $0x24] ss:$16 sps:$4 sm:$0xff] (!%p238_p3)   ;;  %v1128_v9 = vld [vmem:[%s1544_s3 + $0x2c] ss:$16 sps:$4 sm:$0xff] (!%p238_p3)   ;;  %768 = vmatpush1.bf16.msra.mxu0 (!%p238_p3), %v1124_v6  ;;  %809 = vmatpush1.bf16.msra.mxu1 (!%p238_p3), %v1125_v7  ;;  %v1130_v10 = vld [vmem:[%s1544_s3 + $0x20] ss:$16 sps:$4 sm:$0xff] (!%p238_p3)  }
   0x9   : > { %v1131_v11 = vld [vmem:[%s1544_s3 + $0x28] ss:$16 sps:$4 sm:$0xff] (!%p238_p3)   ;;  %769 = vmatprep.subr.bf16.mxu0 (!%p238_p3), %v1126_v8  ;;  %810 = vmatprep.subr.bf16.mxu1 (!%p238_p3), %v1128_v9  ;;  %v1132_v12 = vld [vmem:[%s1544_s3 + $0x44] ss:$16 sps:$4 sm:$0xff] (!%p238_p3)   ;;  %v1134_v13 = vld [vmem:[%s1544_s3 + $0x4c] ss:$16 sps:$4 sm:$0xff] (!%p238_p3)  }
   0xa   : > { %v1136_v14 = vld [vmem:[%s1544_s3 + $0x40] ss:$16 sps:$4 sm:$0xff] (!%p238_p3)   ;;  %v1137_v15 = vld [vmem:[%s1544_s3 + $0x48] ss:$16 sps:$4 sm:$0xff] (!%p238_p3)   ;;  %v1138_v16 = vld [vmem:[%s1544_s3 + $0x64] ss:$16 sps:$4 sm:$0xff] (!%p238_p3)  }
   0xb   : > { %v1140_v17 = vld [vmem:[%s1544_s3 + $0x6c] ss:$16 sps:$4 sm:$0xff] (!%p238_p3)   ;;  %v1142_v18 = vld [vmem:[%s1544_s3 + $0x60] ss:$16 sps:$4 sm:$0xff] (!%p238_p3)   ;;  %v1143_v19 = vld [vmem:[%s1544_s3 + $0x68] ss:$16 sps:$4 sm:$0xff] (!%p238_p3)  }
   0xc   : > { %770 = vmatpush1.bf16.msra.mxu0 (!%p238_p3), %v1130_v10  ;;  %811 = vmatpush1.bf16.msra.mxu1 (!%p238_p3), %v1131_v11  ;;  %v1144_v20 = vld [vmem:[%s1544_s3 + $0x84] ss:$16 sps:$4 sm:$0xff] (!%p238_p3)   ;;  %v1146_v21 = vld [vmem:[%s1544_s3 + $0x8c] ss:$16 sps:$4 sm:$0xff] (!%p238_p3)   ;;  %v1148_v22 = vld [vmem:[%s1544_s3 + $0x80] ss:$16 sps:$4 sm:$0xff] (!%p238_p3)  }
   0xd   : > { %771 = vmatprep.subr.bf16.mxu0 (!%p238_p3), %v1132_v12  ;;  %812 = vmatprep.subr.bf16.mxu1 (!%p238_p3), %v1134_v13  ;;  %v1149_v23 = vld [vmem:[%s1544_s3 + $0x88] ss:$16 sps:$4 sm:$0xff] (!%p238_p3)   ;;  %v1150_v24 = vld [vmem:[%s1544_s3 + $0xa4] ss:$16 sps:$4 sm:$0xff] (!%p238_p3)   ;;  %v1152_v25 = vld [vmem:[%s1544_s3 + $0xac] ss:$16 sps:$4 sm:$0xff] (!%p238_p3)   ;;  %v334_v13 = vlaneseq (!%p238_p3) }
   0xe   : > { %s1553_s21 = smov (!%p284_p4, %s1232_s21), 1  ;;  %v1154_v26 = vld [vmem:[%s1544_s3 + $0xa0] ss:$16 sps:$4 sm:$0xff]   ;;  %v1155_v27 = vld [vmem:[%s1544_s3 + $0xa8] ss:$16 sps:$4 sm:$0xff]  }
   0xf   : > { %s1295_s25 = sshll.u32 %s1553_s21, 3  ;;  %v1156_v28 = vld [vmem:[%s1544_s3 + $0xc4] ss:$16 sps:$4 sm:$0xff]   ;;  %v1158_v29 = vld [vmem:[%s1544_s3 + $0xcc] ss:$16 sps:$4 sm:$0xff]  }
  0x10   : > { %s292_s28 = scalar_lea.vmem %s1541_s0, %s1295_s25  ;;  %772 = vmatpush1.bf16.msra.mxu0 %v1136_v14  ;;  %813 = vmatpush1.bf16.msra.mxu1 %v1137_v15  ;;  %v1160_v30 = vld [vmem:[%s1544_s3 + $0xc0] ss:$16 sps:$4 sm:$0xff]   ;;  %v1161_v31 = vld [vmem:[%s1544_s3 + $0xc8] ss:$16 sps:$4 sm:$0xff]   ;;  %v1162_v32 = vld [vmem:[%s1544_s3 + $0xe4] ss:$16 sps:$4 sm:$0xff]   ;;  %s301_s21 = scalar_lea.vmem %s1546_s5, %s1295_s25 }
  0x11   : > { %v1301_v0 = vld [vmem:[%s292_s28] sm:$0xff]  ;;  %773 = vmatprep.subr.bf16.mxu0 %v1138_v16  ;;  %814 = vmatprep.subr.bf16.mxu1 %v1140_v17  ;;  %v1164_v33 = vld [vmem:[%s1544_s3 + $0xec] ss:$16 sps:$4 sm:$0xff]   ;;  %v1167_v35 = vld [vmem:[%s1544_s3 + $0xe8] ss:$16 sps:$4 sm:$0xff]   ;;  %v335_v15 = vshrl.u32 %v334_v13, 7  ;;  %s310_s28 = scalar_lea.vmem %s1547_s6, %s1295_s25 }
  0x12   : > { %v312_v1 = vunpack.c.l.bf16 %v1301_v0  ;;  %v313_v2 = vunpack.c.h.bf16 %v1301_v0  ;;  %v1166_v34 = vld [vmem:[%s1544_s3 + $0xe0] ss:$16 sps:$4 sm:$0xff]   ;;  %v1168_v36 = vld [vmem:[%s1544_s3 + $0x104] ss:$16 sps:$4 sm:$0xff]   ;;  %v1170_v37 = vld [vmem:[%s1544_s3 + $0x10c] ss:$16 sps:$4 sm:$0xff]  }
  0x13   : > { %v1172_v38 = vld [vmem:[%s1544_s3 + $0x100] ss:$16 sps:$4 sm:$0xff]   ;;  %v1173_v39 = vld [vmem:[%s1544_s3 + $0x108] ss:$16 sps:$4 sm:$0xff]   ;;  %v1174_v40 = vld [vmem:[%s1544_s3 + $0x124] ss:$16 sps:$4 sm:$0xff]  }
  0x14   : > { %v316_v3 = vadd.f32 %v313_v2, %v312_v1  ;;  %774 = vmatpush1.bf16.msra.mxu0 %v1142_v18  ;;  %815 = vmatpush1.bf16.msra.mxu1 %v1143_v19  ;;  %v1176_v41 = vld [vmem:[%s1544_s3 + $0x12c] ss:$16 sps:$4 sm:$0xff]   ;;  %v1178_v42 = vld [vmem:[%s1544_s3 + $0x120] ss:$16 sps:$4 sm:$0xff]   ;;  %v1179_v43 = vld [vmem:[%s1544_s3 + $0x128] ss:$16 sps:$4 sm:$0xff]  }
  0x15   : > { %775 = vmatprep.subr.bf16.mxu0 %v1144_v20  ;;  %816 = vmatprep.subr.bf16.mxu1 %v1146_v21  ;;  %v1180_v51 = vld [vmem:[%s1544_s3 + $0x144] ss:$16 sps:$4 sm:$0xff]   ;;  %v1182_v52 = vld [vmem:[%s1544_s3 + $0x14c] ss:$16 sps:$4 sm:$0xff]   ;;  %v1184_v53 = vld [vmem:[%s1544_s3 + $0x140] ss:$16 sps:$4 sm:$0xff]  }
  0x16   : > { %317 = vadd.xlane.f32.xlu0 %v316_v3  ;;  %v1185_v54 = vld [vmem:[%s1544_s3 + $0x148] ss:$16 sps:$4 sm:$0xff]   ;;  %v1186_v55 = vld [vmem:[%s1544_s3 + $0x164] ss:$16 sps:$4 sm:$0xff]   ;;  %v1188_v56 = vld [vmem:[%s1544_s3 + $0x16c] ss:$16 sps:$4 sm:$0xff]  }
  0x17   : > { %v1190_v57 = vld [vmem:[%s1544_s3 + $0x160] ss:$16 sps:$4 sm:$0xff]   ;;  %v1191_v58 = vld [vmem:[%s1544_s3 + $0x168] ss:$16 sps:$4 sm:$0xff]   ;;  %v1192_v59 = vld [vmem:[%s1544_s3 + $0x184] ss:$16 sps:$4 sm:$0xff]  }
  0x18   : > { %776 = vmatpush1.bf16.msra.mxu0 %v1148_v22  ;;  %817 = vmatpush1.bf16.msra.mxu1 %v1149_v23  ;;  %v1194_v60 = vld [vmem:[%s1544_s3 + $0x18c] ss:$16 sps:$4 sm:$0xff]   ;;  %v1196_v61 = vld [vmem:[%s1544_s3 + $0x180] ss:$16 sps:$4 sm:$0xff]   ;;  %v1197_v62 = vld [vmem:[%s1544_s3 + $0x188] ss:$16 sps:$4 sm:$0xff]  }
  0x19   : > { %777 = vmatprep.subr.bf16.mxu0 %v1150_v24  ;;  %818 = vmatprep.subr.bf16.mxu1 %v1152_v25  ;;  %v1198_v63 = vld [vmem:[%s1544_s3 + $0x1a4] ss:$16 sps:$4 sm:$0xff]   ;;  %v1200_v0 = vld [vmem:[%s1544_s3 + $0x1ac] ss:$16 sps:$4 sm:$0xff]   ;;  %v1208_v5 = vld [vmem:[%s1544_s3 + $0x1c0] ss:$16 sps:$4 sm:$0xff]  }
  0x1a   : > { %v1204_v3 = vld [vmem:[%s1544_s3 + $0x1c4] ss:$16 sps:$4 sm:$0xff]   ;;  %v1206_v4 = vld [vmem:[%s1544_s3 + $0x1cc] ss:$16 sps:$4 sm:$0xff]   ;;  %v1209_v6 = vld [vmem:[%s1544_s3 + $0x1c8] ss:$16 sps:$4 sm:$0xff]  }
  0x1b   : > { %v1210_v7 = vld [vmem:[%s1544_s3 + $0x1e4] ss:$16 sps:$4 sm:$0xff]   ;;  %v1212_v8 = vld [vmem:[%s1544_s3 + $0x1ec] ss:$16 sps:$4 sm:$0xff]   ;;  %v1214_v9 = vld [vmem:[%s1544_s3 + $0x1e0] ss:$16 sps:$4 sm:$0xff]  }
  0x1c   : > { %778 = vmatpush1.bf16.msra.mxu0 %v1154_v26  ;;  %819 = vmatpush1.bf16.msra.mxu1 %v1155_v27  ;;  %v1215_v10 = vld [vmem:[%s1544_s3 + $0x1e8] ss:$16 sps:$4 sm:$0xff]   ;;  %v336_v16 = vsub.s32 0, %v335_v15  ;;  %v340_v17 = vsub.s32 1, %v335_v15  ;;  %v314_v18 = vld [vmem:[%s1542_s1] sm:$0x3] }
  0x1d   : > { %779 = vmatprep.subr.bf16.mxu0 %v1156_v28  ;;  %820 = vmatprep.subr.bf16.mxu1 %v1158_v29  ;;  %v315_v19 = vld [vmem:[%s1543_s2] sm:$0x3] }
  0x1e   : > { %v337_v20 = vrot.slane %v314_v18, %v336_v16  ;;  %v341_v21 = vrot.slane %v314_v18, %v340_v17  ;;  %v350_v24 = vrot.slane %v315_v19, %v336_v16  ;;  %v354_v25 = vrot.slane %v315_v19, %v340_v17 }
  0x20   : > { %780 = vmatpush1.bf16.msra.mxu0 %v1160_v30  ;;  %821 = vmatpush1.bf16.msra.mxu1 %v1161_v31 }
  0x21   : > { %781 = vmatprep.subr.bf16.mxu0 %v1162_v32  ;;  %822 = vmatprep.subr.bf16.mxu1 %v1164_v33  ;;  %v437_v33 = vsub.s32 2, %v335_v15 }
  0x24   : > { %782 = vmatpush1.bf16.msra.mxu0 %v1166_v34  ;;  %823 = vmatpush1.bf16.msra.mxu1 %v1167_v35  ;;  %v425_v34 = vld [vmem:[%s1545_s4] sm:$0xf]  ;;  %v441_v35 = vsub.s32 3, %v335_v15 }
  0x25   : > { %783 = vmatprep.subr.bf16.mxu0 %v1168_v36  ;;  %824 = vmatprep.subr.bf16.mxu1 %v1170_v37  ;;  %v430_v36 = vrot.slane %v425_v34, %v336_v16  ;;  %v438_v37 = vrot.slane %v425_v34, %v437_v33 }
  0x28   : > { %784 = vmatpush1.bf16.msra.mxu0 %v1172_v38  ;;  %825 = vmatpush1.bf16.msra.mxu1 %v1173_v39  ;;  %v434_v38 = vrot.slane %v425_v34, %v340_v17  ;;  %v442_v39 = vrot.slane %v425_v34, %v441_v35 }
  0x29   : > { %785 = vmatprep.subr.bf16.mxu0 %v1174_v40  ;;  %826 = vmatprep.subr.bf16.mxu1 %v1176_v41 }
  0x2c   : > { %786 = vmatpush1.bf16.msra.mxu0 %v1178_v42  ;;  %827 = vmatpush1.bf16.msra.mxu1 %v1179_v43 }
  0x2d   : > { %787 = vmatprep.subr.bf16.mxu0 %v1180_v51  ;;  %828 = vmatprep.subr.bf16.mxu1 %v1182_v52 }
  0x30   : > { %788 = vmatpush1.bf16.msra.mxu0 %v1184_v53  ;;  %829 = vmatpush1.bf16.msra.mxu1 %v1185_v54 }
  0x31   : > { %789 = vmatprep.subr.bf16.mxu0 %v1186_v55  ;;  %830 = vmatprep.subr.bf16.mxu1 %v1188_v56 }
  0x34   : > { %790 = vmatpush1.bf16.msra.mxu0 %v1190_v57  ;;  %831 = vmatpush1.bf16.msra.mxu1 %v1191_v58 }
  0x35   : > { %791 = vmatprep.subr.bf16.mxu0 %v1192_v59  ;;  %832 = vmatprep.subr.bf16.mxu1 %v1194_v60 }
  0x38   : > { %792 = vmatpush1.bf16.msra.mxu0 %v1196_v61  ;;  %833 = vmatpush1.bf16.msra.mxu1 %v1197_v62 }
  0x39   : > { %793 = vmatprep.subr.bf16.mxu0 %v1198_v63  ;;  %834 = vmatprep.subr.bf16.mxu1 %v1200_v0 }
  0xa3   : > { %v318_v44 = vpop.xlane.xlu0 %317 }
  0xa4   : > { %v320_v45 = vmul.f32 0.00390625, %v318_v44 }
  0xa6   : > { %v1431_v46 = vsub.f32 %v312_v1, %v320_v45  ;;  %v1435_v47 = vsub.f32 %v313_v2, %v320_v45  ;;  %v1202_v1 = vld [vmem:[%s1544_s3 + $0x1a0] ss:$16 sps:$4 sm:$0xff]   ;;  %v1203_v2 = vld [vmem:[%s1544_s3 + $0x1a8] ss:$16 sps:$4 sm:$0xff]  }
  0xa7   : > { %794 = vmatpush1.bf16.msra.mxu0 %v1202_v1  ;;  %835 = vmatpush1.bf16.msra.mxu1 %v1203_v2 }
  0xa8   : > { %v323_v48 = vmul.f32 %v1431_v46, %v1431_v46  ;;  %v324_v49 = vmul.f32 %v1435_v47, %v1435_v47  ;;  %795 = vmatprep.subr.bf16.mxu0 %v1204_v3  ;;  %836 = vmatprep.subr.bf16.mxu1 %v1206_v4 }
  0xaa   : > { %v325_v50 = vadd.f32 %v324_v49, %v323_v48 }
  0xab   : > { %796 = vmatpush1.bf16.msra.mxu0 %v1208_v5  ;;  %837 = vmatpush1.bf16.msra.mxu1 %v1209_v6 }
  0xac   : > { %326 = vadd.xlane.f32.xlu0 %v325_v50  ;;  %797 = vmatprep.subr.bf16.mxu0 %v1210_v7 }
  0xad   : > { %838 = vmatprep.subr.bf16.mxu1 %v1212_v8 }
  0xaf   : > { %798 = vmatpush1.bf16.msra.mxu0 %v1214_v9  ;;  %839 = vmatpush1.bf16.msra.mxu1 %v1215_v10 }
 0x139   : > { %v327_v11 = vpop.xlane.xlu0 %326 }
 0x13a   : > { %v328_v12 = vmul.f32 0.00390625, %v327_v11 }
 0x13c   : > { %v329_v14 = vadd.f32 1e-05, %v328_v12 }
 0x13e   : > { %1216 = vrsqrt.f32 %v329_v14 }
 0x148   : > { %v1217_v22 = vpop.eup %1216 }
 0x149   : > { %v332_v23 = vmul.f32 %v1217_v22, %v1435_v47  ;;  %v331_v26 = vmul.f32 %v1217_v22, %v1431_v46 }
 0x14b   : > { %v345_v27 = vmul.f32 %v341_v21, %v332_v23  ;;  %v344_v28 = vmul.f32 %v337_v20, %v331_v26 }
 0x14d   : > { %v358_v29 = vadd.f32 %v354_v25, %v345_v27  ;;  %v357_v30 = vadd.f32 %v350_v24, %v344_v28 }
 0x14f   : > { %v360_v31 = vpack.c.bf16 %v358_v29, %v358_v29  ;;  %v359_v32 = vpack.c.bf16 %v357_v30, %v357_v30 }
 0x151   : > { %799 = vmatprep.mubr.bf16.mxu0 %v360_v31  ;;  %840 = vmatprep.mubr.bf16.mxu1 %v360_v31 }
 0x152   : > { %800 = vmatmul.mubr.bf16.vlgmr.msra.gmra.mrb[0].mxu0 %v359_v32  ;;  %841 = vmatmul.mubr.bf16.vlgmr.msra.gmra.mrb[0].mxu1 %v359_v32 }
 0x225   : > { %v801_v40 = vpop.f32.mrb[0].mxu0  ;;  %v842_v41 = vpop.f32.mrb[0].mxu1 }
 0x226   : > { %v802_v42 = vadd.f32 %v801_v40, %v430_v36  ;;  %v843_v43 = vadd.f32 %v842_v41, %v438_v37  ;;  %v803_v44 = vpop.f32.mrb[1].mxu0  ;;  %v844_v45 = vpop.f32.mrb[1].mxu1 }
 0x227   : > { %v804_v46 = vadd.f32 %v803_v44, %v434_v38  ;;  %v845_v47 = vadd.f32 %v844_v45, %v442_v39  ;;  %v805_v48 = vpop.f32.mrb[2].mxu0  ;;  %v846_v49 = vpop.f32.mrb[2].mxu1 }
 0x228   : > { %v806_v50 = vpop.f32.mrb[3].mxu0  ;;  %v847_v51 = vpop.f32.mrb[3].mxu1 }
 0x229   : > { %v1094_v52 = vpack.c.bf16 %v804_v46, %v802_v42  ;;  %v1095_v53 = vpack.c.bf16 %v845_v47, %v843_v43 }
 0x22b   : > { %857 = vst [vmem:[%s301_s21] sm:$0xff] %v1094_v52  ;;  %866 = vst [vmem:[%s310_s28] sm:$0xff] %v1095_v53 }
 0x22c PF: > { %s17_s23 = sadd.s32 1, %s1240_s23   ;;  %s1548_s21 = smov %s1236_s22 }
 0x22d   : > { %p14_p5 = scmp.ge.s32.totalorder %s17_s23, 4   ;;  %s1549_s22 = smov %s1551_s24 }
 0x22f   :  { %16 = sbr.rel (!%p14_p5) target bundleno = 2 (0x2), region = 82 }

// kernel: mbart_model_forward.21
= control target key start
LH: loop header
LB: loop body
LE: loop exit
PB: predicated region body
PF: predicated region fallthrough
CT: control target
= control target key end

     0   :  { %s2027_s24 = smov 0   ;;  %s2029_s25 = smov 0   ;;  %s2501_s0 = inlined_call_operand.vmem [shape: bf16[2,8,256], index: 0, kind: input, shape index: {}]   ;;  %s2502_s1 = inlined_call_operand.vmem [shape: f32[1,256], index: 1, kind: input, shape index: {}]   ;;  %s2503_s2 = inlined_call_operand.vmem [shape: f32[1,256], index: 2, kind: input, shape index: {}]   ;;  %s2504_s3 = inlined_call_operand.vmem [shape: bf16[256,512], index: 3, kind: input, shape index: {}]   ;;  %s2505_s4 = inlined_call_operand.vmem [shape: f32[1,512], index: 4, kind: input, shape index: {}]   ;;  %s2506_s5 = inlined_call_operand.vmem [shape: bf16[512,256], index: 5, kind: input, shape index: {}]   ;;  %s2507_s6 = inlined_call_operand.vmem [shape: f32[1,256], index: 6, kind: input, shape index: {}]   ;;  %s2508_s7 = inlined_call_operand.vmem [shape: bf16[2,8,256], index: 7, kind: output, shape index: {}]  }
   0x1   :  { %s2031_s26 = smov 0  }
   0x2 LB: > { %s36_s27 = sadd.s32 1, %s1981_s25  ;;  %p1600_p0 = scmp.ge.s32.totalorder %s1985_s26, 1  ;;  %s1985_s26 = sphi %s2031_s26, %s17_s26   ;;  %s1981_s25 = sphi %s2029_s25, %s2510_s25   ;;  %s1977_s24 = sphi %s2027_s24, %s2509_s24  }
   0x3   : > { %p38_p1 = scmp.ge.s32.totalorder %s36_s27, 2  ;;  %p297_p2 = scmp.lt.s32.totalorder %s1985_s26, 3 }
   0x5   : > { %s2512_s27 = smov (%p38_p1, %s36_s27), 0  ;;  %p298_p3 = pnand %p1600_p0, %p297_p2 }
   0x6   : > { %p352_p4 = scmp.lt.s32.totalorder (!%p298_p3), %s1977_s24, 1  ;;  %v1769_v4 = vld [vmem:[%s2504_s3 + $0x4] ss:$16 sps:$4 sm:$0xff] (!%p298_p3)   ;;  %v1771_v5 = vld [vmem:[%s2504_s3 + $0xc] ss:$16 sps:$4 sm:$0xff] (!%p298_p3)  }
   0x7   : > { %301 = sbr.rel (%p298_p3) target bundleno = 778 (0x30a), region = 48  ;;  %v1773_v6 = vld [vmem:[%s2504_s3] ss:$16 sps:$4 sm:$0xff] (!%p298_p3)   ;;  %v1774_v7 = vld [vmem:[%s2504_s3 + $0x8] ss:$16 sps:$4 sm:$0xff] (!%p298_p3)   ;;  %879 = vmatprep.subr.bf16.mxu0 (!%p298_p3), %v1769_v4  ;;  %920 = vmatprep.subr.bf16.mxu1 (!%p298_p3), %v1771_v5 }
   0x8   : > { %v1775_v8 = vld [vmem:[%s2504_s3 + $0x24] ss:$16 sps:$4 sm:$0xff] (!%p298_p3)   ;;  %v1777_v9 = vld [vmem:[%s2504_s3 + $0x2c] ss:$16 sps:$4 sm:$0xff] (!%p298_p3)   ;;  %880 = vmatpush1.bf16.msra.mxu0 (!%p298_p3), %v1773_v6  ;;  %921 = vmatpush1.bf16.msra.mxu1 (!%p298_p3), %v1774_v7  ;;  %v1779_v10 = vld [vmem:[%s2504_s3 + $0x20] ss:$16 sps:$4 sm:$0xff] (!%p298_p3)  }
   0x9   : > { %v1780_v11 = vld [vmem:[%s2504_s3 + $0x28] ss:$16 sps:$4 sm:$0xff] (!%p298_p3)   ;;  %881 = vmatprep.subr.bf16.mxu0 (!%p298_p3), %v1775_v8  ;;  %922 = vmatprep.subr.bf16.mxu1 (!%p298_p3), %v1777_v9  ;;  %v1781_v12 = vld [vmem:[%s2504_s3 + $0x44] ss:$16 sps:$4 sm:$0xff] (!%p298_p3)   ;;  %v1783_v13 = vld [vmem:[%s2504_s3 + $0x4c] ss:$16 sps:$4 sm:$0xff] (!%p298_p3)  }
   0xa   : > { %v1785_v14 = vld [vmem:[%s2504_s3 + $0x40] ss:$16 sps:$4 sm:$0xff] (!%p298_p3)   ;;  %v1786_v15 = vld [vmem:[%s2504_s3 + $0x48] ss:$16 sps:$4 sm:$0xff] (!%p298_p3)   ;;  %v1787_v16 = vld [vmem:[%s2504_s3 + $0x64] ss:$16 sps:$4 sm:$0xff] (!%p298_p3)  }
   0xb   : > { %v1789_v17 = vld [vmem:[%s2504_s3 + $0x6c] ss:$16 sps:$4 sm:$0xff] (!%p298_p3)   ;;  %v1791_v18 = vld [vmem:[%s2504_s3 + $0x60] ss:$16 sps:$4 sm:$0xff] (!%p298_p3)   ;;  %v1792_v19 = vld [vmem:[%s2504_s3 + $0x68] ss:$16 sps:$4 sm:$0xff] (!%p298_p3)  }
   0xc   : > { %882 = vmatpush1.bf16.msra.mxu0 (!%p298_p3), %v1779_v10  ;;  %923 = vmatpush1.bf16.msra.mxu1 (!%p298_p3), %v1780_v11  ;;  %v1793_v20 = vld [vmem:[%s2504_s3 + $0x84] ss:$16 sps:$4 sm:$0xff] (!%p298_p3)   ;;  %v1795_v21 = vld [vmem:[%s2504_s3 + $0x8c] ss:$16 sps:$4 sm:$0xff] (!%p298_p3)   ;;  %v1797_v22 = vld [vmem:[%s2504_s3 + $0x80] ss:$16 sps:$4 sm:$0xff] (!%p298_p3)  }
   0xd   : > { %883 = vmatprep.subr.bf16.mxu0 (!%p298_p3), %v1781_v12  ;;  %924 = vmatprep.subr.bf16.mxu1 (!%p298_p3), %v1783_v13  ;;  %v1798_v23 = vld [vmem:[%s2504_s3 + $0x88] ss:$16 sps:$4 sm:$0xff] (!%p298_p3)   ;;  %v1799_v24 = vld [vmem:[%s2504_s3 + $0xa4] ss:$16 sps:$4 sm:$0xff] (!%p298_p3)   ;;  %v1801_v25 = vld [vmem:[%s2504_s3 + $0xac] ss:$16 sps:$4 sm:$0xff] (!%p298_p3)  }
   0xe   : > { %s2514_s24 = smov (!%p352_p4, %s1977_s24), 1  ;;  %v1803_v26 = vld [vmem:[%s2504_s3 + $0xa0] ss:$16 sps:$4 sm:$0xff]   ;;  %v1804_v27 = vld [vmem:[%s2504_s3 + $0xa8] ss:$16 sps:$4 sm:$0xff]  }
   0xf   : > { %s1739_s28 = sshll.u32 %s2514_s24, 3  ;;  %v1805_v28 = vld [vmem:[%s2504_s3 + $0xc4] ss:$16 sps:$4 sm:$0xff]   ;;  %v1807_v29 = vld [vmem:[%s2504_s3 + $0xcc] ss:$16 sps:$4 sm:$0xff]  }
  0x10   : > { %s360_s8 = scalar_lea.vmem %s2501_s0, %s1739_s28  ;;  %884 = vmatpush1.bf16.msra.mxu0 %v1785_v14  ;;  %925 = vmatpush1.bf16.msra.mxu1 %v1786_v15  ;;  %v1809_v30 = vld [vmem:[%s2504_s3 + $0xc0] ss:$16 sps:$4 sm:$0xff]   ;;  %v1810_v31 = vld [vmem:[%s2504_s3 + $0xc8] ss:$16 sps:$4 sm:$0xff]   ;;  %v1811_v32 = vld [vmem:[%s2504_s3 + $0xe4] ss:$16 sps:$4 sm:$0xff]   ;;  %s387_s23 = scalar_lea.vmem %s2508_s7, %s1739_s28 }
  0x11   : > { %v392_v0 = vld [vmem:[%s360_s8] sm:$0xff]  ;;  %885 = vmatprep.subr.bf16.mxu0 %v1787_v16  ;;  %926 = vmatprep.subr.bf16.mxu1 %v1789_v17  ;;  %v1813_v33 = vld [vmem:[%s2504_s3 + $0xec] ss:$16 sps:$4 sm:$0xff]   ;;  %v1816_v35 = vld [vmem:[%s2504_s3 + $0xe8] ss:$16 sps:$4 sm:$0xff]   ;;  %v415_v17 = vlaneseq }
  0x12   : > { %v2053_v1 = vunpack.c.l.bf16 %v392_v0  ;;  %v2055_v2 = vunpack.c.h.bf16 %v392_v0  ;;  %v1815_v34 = vld [vmem:[%s2504_s3 + $0xe0] ss:$16 sps:$4 sm:$0xff]   ;;  %v1817_v36 = vld [vmem:[%s2504_s3 + $0x104] ss:$16 sps:$4 sm:$0xff]   ;;  %v1819_v37 = vld [vmem:[%s2504_s3 + $0x10c] ss:$16 sps:$4 sm:$0xff]  }
  0x13   : > { %v1821_v38 = vld [vmem:[%s2504_s3 + $0x100] ss:$16 sps:$4 sm:$0xff]   ;;  %v1822_v39 = vld [vmem:[%s2504_s3 + $0x108] ss:$16 sps:$4 sm:$0xff]   ;;  %v1823_v40 = vld [vmem:[%s2504_s3 + $0x124] ss:$16 sps:$4 sm:$0xff]  }
  0x14   : > { %v397_v3 = vadd.f32 %v2055_v2, %v2053_v1  ;;  %886 = vmatpush1.bf16.msra.mxu0 %v1791_v18  ;;  %927 = vmatpush1.bf16.msra.mxu1 %v1792_v19  ;;  %v1825_v41 = vld [vmem:[%s2504_s3 + $0x12c] ss:$16 sps:$4 sm:$0xff]   ;;  %v1827_v42 = vld [vmem:[%s2504_s3 + $0x120] ss:$16 sps:$4 sm:$0xff]   ;;  %v1828_v43 = vld [vmem:[%s2504_s3 + $0x128] ss:$16 sps:$4 sm:$0xff]  }
  0x15   : > { %887 = vmatprep.subr.bf16.mxu0 %v1793_v20  ;;  %928 = vmatprep.subr.bf16.mxu1 %v1795_v21  ;;  %v1829_v51 = vld [vmem:[%s2504_s3 + $0x144] ss:$16 sps:$4 sm:$0xff]   ;;  %v1831_v52 = vld [vmem:[%s2504_s3 + $0x14c] ss:$16 sps:$4 sm:$0xff]   ;;  %v1833_v53 = vld [vmem:[%s2504_s3 + $0x140] ss:$16 sps:$4 sm:$0xff]  }
  0x16   : > { %398 = vadd.xlane.f32.xlu0 %v397_v3  ;;  %v1834_v54 = vld [vmem:[%s2504_s3 + $0x148] ss:$16 sps:$4 sm:$0xff]   ;;  %v1835_v55 = vld [vmem:[%s2504_s3 + $0x164] ss:$16 sps:$4 sm:$0xff]   ;;  %v1837_v56 = vld [vmem:[%s2504_s3 + $0x16c] ss:$16 sps:$4 sm:$0xff]  }
  0x17   : > { %v1839_v57 = vld [vmem:[%s2504_s3 + $0x160] ss:$16 sps:$4 sm:$0xff]   ;;  %v1840_v58 = vld [vmem:[%s2504_s3 + $0x168] ss:$16 sps:$4 sm:$0xff]   ;;  %v1841_v59 = vld [vmem:[%s2504_s3 + $0x184] ss:$16 sps:$4 sm:$0xff]  }
  0x18   : > { %888 = vmatpush1.bf16.msra.mxu0 %v1797_v22  ;;  %929 = vmatpush1.bf16.msra.mxu1 %v1798_v23  ;;  %v1843_v60 = vld [vmem:[%s2504_s3 + $0x18c] ss:$16 sps:$4 sm:$0xff]   ;;  %v1845_v61 = vld [vmem:[%s2504_s3 + $0x180] ss:$16 sps:$4 sm:$0xff]   ;;  %v1846_v62 = vld [vmem:[%s2504_s3 + $0x188] ss:$16 sps:$4 sm:$0xff]  }
  0x19   : > { %889 = vmatprep.subr.bf16.mxu0 %v1799_v24  ;;  %930 = vmatprep.subr.bf16.mxu1 %v1801_v25  ;;  %v1847_v63 = vld [vmem:[%s2504_s3 + $0x1a4] ss:$16 sps:$4 sm:$0xff]   ;;  %v1849_v0 = vld [vmem:[%s2504_s3 + $0x1ac] ss:$16 sps:$4 sm:$0xff]   ;;  %v1851_v3 = vld [vmem:[%s2504_s3 + $0x1a0] ss:$16 sps:$4 sm:$0xff]  }
  0x1a   : > { %v1852_v4 = vld [vmem:[%s2504_s3 + $0x1a8] ss:$16 sps:$4 sm:$0xff]   ;;  %v1853_v5 = vld [vmem:[%s2504_s3 + $0x1c4] ss:$16 sps:$4 sm:$0xff]   ;;  %v1855_v6 = vld [vmem:[%s2504_s3 + $0x1cc] ss:$16 sps:$4 sm:$0xff]  }
  0x1b   : > { %v1857_v7 = vld [vmem:[%s2504_s3 + $0x1c0] ss:$16 sps:$4 sm:$0xff]   ;;  %v1858_v8 = vld [vmem:[%s2504_s3 + $0x1c8] ss:$16 sps:$4 sm:$0xff]   ;;  %v1859_v9 = vld [vmem:[%s2504_s3 + $0x1e4] ss:$16 sps:$4 sm:$0xff]  }
  0x1c   : > { %890 = vmatpush1.bf16.msra.mxu0 %v1803_v26  ;;  %931 = vmatpush1.bf16.msra.mxu1 %v1804_v27  ;;  %v1861_v10 = vld [vmem:[%s2504_s3 + $0x1ec] ss:$16 sps:$4 sm:$0xff]   ;;  %v1863_v11 = vld [vmem:[%s2504_s3 + $0x1e0] ss:$16 sps:$4 sm:$0xff]   ;;  %v1864_v12 = vld [vmem:[%s2504_s3 + $0x1e8] ss:$16 sps:$4 sm:$0xff]  }
  0x1d   : > { %891 = vmatprep.subr.bf16.mxu0 %v1805_v28  ;;  %932 = vmatprep.subr.bf16.mxu1 %v1807_v29  ;;  %v1867_v13 = vld [vmem:[%s2506_s5 + $0x4] ss:$8 sps:$4 sm:$0xff]   ;;  %v2267_v19 = vshrl.u32 %v415_v17, 7  ;;  %v395_v22 = vld [vmem:[%s2502_s1] sm:$0x3] }
  0x1e   : > { %v1870_v14 = vld [vmem:[%s2506_s5 + $0x104] ss:$8 sps:$4 sm:$0xff]   ;;  %v396_v23 = vld [vmem:[%s2503_s2] sm:$0x3]  ;;  %v1933_v17 = vld [vmem:[%s2506_s5 + $0xb4] ss:$8 sps:$4 sm:$0xff]  }
  0x1f   : > { %v2270_v20 = vsub.s32 0, %v2267_v19  ;;  %v2273_v21 = vsub.s32 1, %v2267_v19 }
  0x20   : > { %892 = vmatpush1.bf16.msra.mxu0 %v1809_v30  ;;  %933 = vmatpush1.bf16.msra.mxu1 %v1810_v31 }
  0x21   : > { %893 = vmatprep.subr.bf16.mxu0 %v1811_v32  ;;  %934 = vmatprep.subr.bf16.mxu1 %v1813_v33  ;;  %v418_v24 = vrot.slane %v395_v22, %v2270_v20  ;;  %v422_v25 = vrot.slane %v395_v22, %v2273_v21  ;;  %v431_v28 = vrot.slane %v396_v23, %v2270_v20  ;;  %v1931_v22 = vld [vmem:[%s2506_s5 + $0xb0] ss:$8 sps:$4 sm:$0xff]  }
  0x22   : > { %v435_v29 = vrot.slane %v396_v23, %v2273_v21  ;;  %v1934_v23 = vld [vmem:[%s2506_s5 + $0x1b0] ss:$8 sps:$4 sm:$0xff]  }
  0x24   : > { %894 = vmatpush1.bf16.msra.mxu0 %v1815_v34  ;;  %935 = vmatpush1.bf16.msra.mxu1 %v1816_v35 }
  0x25   : > { %895 = vmatprep.subr.bf16.mxu0 %v1817_v36  ;;  %936 = vmatprep.subr.bf16.mxu1 %v1819_v37  ;;  %v1865_v37 = vld [vmem:[%s2506_s5] ss:$8 sps:$4 sm:$0xff]  }
  0x28   : > { %896 = vmatpush1.bf16.msra.mxu0 %v1821_v38  ;;  %937 = vmatpush1.bf16.msra.mxu1 %v1822_v39  ;;  %v1868_v38 = vld [vmem:[%s2506_s5 + $0x100] ss:$8 sps:$4 sm:$0xff]   ;;  %v1873_v39 = vld [vmem:[%s2506_s5 + $0x14] ss:$8 sps:$4 sm:$0xff]  }
  0x29   : > { %897 = vmatprep.subr.bf16.mxu0 %v1823_v40  ;;  %938 = vmatprep.subr.bf16.mxu1 %v1825_v41  ;;  %v1876_v40 = vld [vmem:[%s2506_s5 + $0x114] ss:$8 sps:$4 sm:$0xff]   ;;  %v1871_v41 = vld [vmem:[%s2506_s5 + $0x10] ss:$8 sps:$4 sm:$0xff]  }
  0x2c   : > { %898 = vmatpush1.bf16.msra.mxu0 %v1827_v42  ;;  %939 = vmatpush1.bf16.msra.mxu1 %v1828_v43  ;;  %v1874_v42 = vld [vmem:[%s2506_s5 + $0x110] ss:$8 sps:$4 sm:$0xff]   ;;  %v1879_v43 = vld [vmem:[%s2506_s5 + $0x24] ss:$8 sps:$4 sm:$0xff]  }
  0x2d   : > { %899 = vmatprep.subr.bf16.mxu0 %v1829_v51  ;;  %940 = vmatprep.subr.bf16.mxu1 %v1831_v52  ;;  %v1891_v51 = vld [vmem:[%s2506_s5 + $0x44] ss:$8 sps:$4 sm:$0xff]  }
  0x2e   : > { %v1894_v52 = vld [vmem:[%s2506_s5 + $0x144] ss:$8 sps:$4 sm:$0xff]  }
  0x30   : > { %900 = vmatpush1.bf16.msra.mxu0 %v1833_v53  ;;  %941 = vmatpush1.bf16.msra.mxu1 %v1834_v54  ;;  %v1889_v53 = vld [vmem:[%s2506_s5 + $0x40] ss:$8 sps:$4 sm:$0xff]  }
  0x31   : > { %901 = vmatprep.subr.bf16.mxu0 %v1835_v55  ;;  %942 = vmatprep.subr.bf16.mxu1 %v1837_v56  ;;  %v1892_v54 = vld [vmem:[%s2506_s5 + $0x140] ss:$8 sps:$4 sm:$0xff]   ;;  %v1897_v55 = vld [vmem:[%s2506_s5 + $0x54] ss:$8 sps:$4 sm:$0xff]  }
  0x32   : > { %v1900_v56 = vld [vmem:[%s2506_s5 + $0x154] ss:$8 sps:$4 sm:$0xff]  }
  0x34   : > { %902 = vmatpush1.bf16.msra.mxu0 %v1839_v57  ;;  %943 = vmatpush1.bf16.msra.mxu1 %v1840_v58  ;;  %v1895_v57 = vld [vmem:[%s2506_s5 + $0x50] ss:$8 sps:$4 sm:$0xff]  }
  0x35   : > { %903 = vmatprep.subr.bf16.mxu0 %v1841_v59  ;;  %944 = vmatprep.subr.bf16.mxu1 %v1843_v60  ;;  %v1898_v58 = vld [vmem:[%s2506_s5 + $0x150] ss:$8 sps:$4 sm:$0xff]   ;;  %v1903_v59 = vld [vmem:[%s2506_s5 + $0x64] ss:$8 sps:$4 sm:$0xff]  }
  0x36   : > { %v1906_v60 = vld [vmem:[%s2506_s5 + $0x164] ss:$8 sps:$4 sm:$0xff]  }
  0x38   : > { %904 = vmatpush1.bf16.msra.mxu0 %v1845_v61  ;;  %945 = vmatpush1.bf16.msra.mxu1 %v1846_v62  ;;  %v1901_v61 = vld [vmem:[%s2506_s5 + $0x60] ss:$8 sps:$4 sm:$0xff]  }
  0x39   : > { %905 = vmatprep.subr.bf16.mxu0 %v1847_v63  ;;  %946 = vmatprep.subr.bf16.mxu1 %v1849_v0  ;;  %v1904_v62 = vld [vmem:[%s2506_s5 + $0x160] ss:$8 sps:$4 sm:$0xff]   ;;  %v1909_v63 = vld [vmem:[%s2506_s5 + $0x74] ss:$8 sps:$4 sm:$0xff]  }
  0x3a   : > { %v1912_v0 = vld [vmem:[%s2506_s5 + $0x174] ss:$8 sps:$4 sm:$0xff]  }
  0x3c   : > { %906 = vmatpush1.bf16.msra.mxu0 %v1851_v3  ;;  %947 = vmatpush1.bf16.msra.mxu1 %v1852_v4  ;;  %v1907_v3 = vld [vmem:[%s2506_s5 + $0x70] ss:$8 sps:$4 sm:$0xff]  }
  0x3d   : > { %907 = vmatprep.subr.bf16.mxu0 %v1853_v5  ;;  %948 = vmatprep.subr.bf16.mxu1 %v1855_v6  ;;  %v1910_v4 = vld [vmem:[%s2506_s5 + $0x170] ss:$8 sps:$4 sm:$0xff]   ;;  %v1915_v5 = vld [vmem:[%s2506_s5 + $0x84] ss:$8 sps:$4 sm:$0xff]  }
  0x3e   : > { %v1918_v6 = vld [vmem:[%s2506_s5 + $0x184] ss:$8 sps:$4 sm:$0xff]  }
  0x40   : > { %908 = vmatpush1.bf16.msra.mxu0 %v1857_v7  ;;  %949 = vmatpush1.bf16.msra.mxu1 %v1858_v8  ;;  %v1913_v7 = vld [vmem:[%s2506_s5 + $0x80] ss:$8 sps:$4 sm:$0xff]  }
  0x41   : > { %909 = vmatprep.subr.bf16.mxu0 %v1859_v9  ;;  %950 = vmatprep.subr.bf16.mxu1 %v1861_v10  ;;  %v1916_v8 = vld [vmem:[%s2506_s5 + $0x180] ss:$8 sps:$4 sm:$0xff]   ;;  %v1921_v9 = vld [vmem:[%s2506_s5 + $0x94] ss:$8 sps:$4 sm:$0xff]  }
  0x42   : > { %v1924_v10 = vld [vmem:[%s2506_s5 + $0x194] ss:$8 sps:$4 sm:$0xff]  }
  0x44   : > { %910 = vmatpush1.bf16.msra.mxu0 %v1863_v11  ;;  %951 = vmatpush1.bf16.msra.mxu1 %v1864_v12  ;;  %v1919_v11 = vld [vmem:[%s2506_s5 + $0x90] ss:$8 sps:$4 sm:$0xff]  }
  0x45   : > { %1355 = vmatprep.subr.bf16.mxu0 %v1867_v13  ;;  %1396 = vmatprep.subr.bf16.mxu1 %v1870_v14  ;;  %v1922_v12 = vld [vmem:[%s2506_s5 + $0x190] ss:$8 sps:$4 sm:$0xff]   ;;  %v1927_v13 = vld [vmem:[%s2506_s5 + $0xa4] ss:$8 sps:$4 sm:$0xff]  }
  0x46   : > { %v1930_v14 = vld [vmem:[%s2506_s5 + $0x1a4] ss:$8 sps:$4 sm:$0xff]  }
  0xa3   : > { %v399_v44 = vpop.xlane.xlu0 %398 }
  0xa4   : > { %v401_v45 = vmul.f32 0.00390625, %v399_v44  ;;  %v1882_v44 = vld [vmem:[%s2506_s5 + $0x124] ss:$8 sps:$4 sm:$0xff]  }
  0xa6   : > { %v2180_v46 = vsub.f32 %v2053_v1, %v401_v45  ;;  %v2183_v47 = vsub.f32 %v2055_v2, %v401_v45  ;;  %v1877_v45 = vld [vmem:[%s2506_s5 + $0x20] ss:$8 sps:$4 sm:$0xff]  }
  0xa8   : > { %v404_v48 = vmul.f32 %v2180_v46, %v2180_v46  ;;  %v405_v49 = vmul.f32 %v2183_v47, %v2183_v47 }
  0xaa   : > { %v406_v50 = vadd.f32 %v405_v49, %v404_v48  ;;  %v1888_v48 = vld [vmem:[%s2506_s5 + $0x134] ss:$8 sps:$4 sm:$0xff]   ;;  %v1883_v49 = vld [vmem:[%s2506_s5 + $0x30] ss:$8 sps:$4 sm:$0xff]  }
  0xac   : > { %407 = vadd.xlane.f32.xlu0 %v406_v50  ;;  %v1886_v50 = vld [vmem:[%s2506_s5 + $0x130] ss:$8 sps:$4 sm:$0xff]  }
 0x139   : > { %v408_v15 = vpop.xlane.xlu0 %407 }
 0x13a   : > { %v409_v16 = vmul.f32 0.00390625, %v408_v15  ;;  %v1925_v15 = vld [vmem:[%s2506_s5 + $0xa0] ss:$8 sps:$4 sm:$0xff]  }
 0x13c   : > { %v410_v18 = vadd.f32 1e-05, %v409_v16  ;;  %v1928_v16 = vld [vmem:[%s2506_s5 + $0x1a0] ss:$8 sps:$4 sm:$0xff]  }
 0x13e   : > { %1961 = vrsqrt.f32 %v410_v18  ;;  %v1936_v18 = vld [vmem:[%s2506_s5 + $0x1b4] ss:$8 sps:$4 sm:$0xff]  }
 0x148   : > { %v1962_v26 = vpop.eup %1961 }
 0x149   : > { %v413_v27 = vmul.f32 %v1962_v26, %v2183_v47  ;;  %v412_v30 = vmul.f32 %v1962_v26, %v2180_v46  ;;  %v1880_v46 = vld [vmem:[%s2506_s5 + $0x120] ss:$8 sps:$4 sm:$0xff]   ;;  %v1885_v47 = vld [vmem:[%s2506_s5 + $0x34] ss:$8 sps:$4 sm:$0xff]  }
 0x14a   : > { %v1937_v26 = vld [vmem:[%s2506_s5 + $0xc0] ss:$8 sps:$4 sm:$0xff]  }
 0x14b   : > { %v426_v31 = vmul.f32 %v422_v25, %v413_v27  ;;  %v425_v32 = vmul.f32 %v418_v24, %v412_v30  ;;  %v1939_v24 = vld [vmem:[%s2506_s5 + $0xc4] ss:$8 sps:$4 sm:$0xff]   ;;  %v1940_v27 = vld [vmem:[%s2506_s5 + $0x1c0] ss:$8 sps:$4 sm:$0xff]   ;;  %v1943_v30 = vld [vmem:[%s2506_s5 + $0xd0] ss:$8 sps:$4 sm:$0xff]  }
 0x14c   : > { %v1942_v25 = vld [vmem:[%s2506_s5 + $0x1c4] ss:$8 sps:$4 sm:$0xff]  }
 0x14d   : > { %v439_v33 = vadd.f32 %v435_v29, %v426_v31  ;;  %v438_v34 = vadd.f32 %v431_v28, %v425_v32  ;;  %v1945_v28 = vld [vmem:[%s2506_s5 + $0xd4] ss:$8 sps:$4 sm:$0xff]   ;;  %v1946_v31 = vld [vmem:[%s2506_s5 + $0x1d0] ss:$8 sps:$4 sm:$0xff]   ;;  %v1951_v32 = vld [vmem:[%s2506_s5 + $0xe4] ss:$8 sps:$4 sm:$0xff]  }
 0x14e   : > { %v1948_v29 = vld [vmem:[%s2506_s5 + $0x1d4] ss:$8 sps:$4 sm:$0xff]  }
 0x14f   : > { %v1744_v35 = vpack.c.bf16 %v439_v33, %v439_v33  ;;  %v1743_v36 = vpack.c.bf16 %v438_v34, %v438_v34  ;;  %v1954_v33 = vld [vmem:[%s2506_s5 + $0x1e4] ss:$8 sps:$4 sm:$0xff]   ;;  %v1949_v34 = vld [vmem:[%s2506_s5 + $0xe0] ss:$8 sps:$4 sm:$0xff]  }
 0x151   : > { %911 = vmatprep.mubr.bf16.mxu0 %v1744_v35  ;;  %952 = vmatprep.mubr.bf16.mxu1 %v1744_v35  ;;  %v1952_v35 = vld [vmem:[%s2506_s5 + $0x1e0] ss:$8 sps:$4 sm:$0xff]  }
 0x152   : > { %912 = vmatmul.mubr.bf16.vlgmr.msra.gmra.mrb[0].mxu0 %v1743_v36  ;;  %953 = vmatmul.mubr.bf16.vlgmr.msra.gmra.mrb[0].mxu1 %v1743_v36  ;;  %v1957_v36 = vld [vmem:[%s2506_s5 + $0xf4] ss:$8 sps:$4 sm:$0xff]  }
 0x153   : > { %1356 = vmatpush1.bf16.msra.mxu0 %v1865_v37  ;;  %1397 = vmatpush1.bf16.msra.mxu1 %v1868_v38  ;;  %v1960_v37 = vld [vmem:[%s2506_s5 + $0x1f4] ss:$8 sps:$4 sm:$0xff]   ;;  %v1955_v38 = vld [vmem:[%s2506_s5 + $0xf0] ss:$8 sps:$4 sm:$0xff]  }
 0x154   : > { %1357 = vmatprep.subr.bf16.mxu0 %v1873_v39  ;;  %1398 = vmatprep.subr.bf16.mxu1 %v1876_v40  ;;  %v1958_v39 = vld [vmem:[%s2506_s5 + $0x1f0] ss:$8 sps:$4 sm:$0xff]   ;;  %v542_v40 = vsub.s32 2, %v2267_v19 }
 0x157   : > { %1358 = vmatpush1.bf16.msra.mxu0 %v1871_v41  ;;  %1399 = vmatpush1.bf16.msra.mxu1 %v1874_v42  ;;  %v530_v41 = vld [vmem:[%s2505_s4] sm:$0xf]  ;;  %v546_v42 = vsub.s32 3, %v2267_v19 }
 0x158   : > { %1359 = vmatprep.subr.bf16.mxu0 %v1879_v43  ;;  %1400 = vmatprep.subr.bf16.mxu1 %v1882_v44  ;;  %v535_v43 = vrot.slane %v530_v41, %v2270_v20  ;;  %v543_v44 = vrot.slane %v530_v41, %v542_v40 }
 0x15b   : > { %1360 = vmatpush1.bf16.msra.mxu0 %v1877_v45  ;;  %1401 = vmatpush1.bf16.msra.mxu1 %v1880_v46  ;;  %v539_v45 = vrot.slane %v530_v41, %v2273_v21  ;;  %v547_v46 = vrot.slane %v530_v41, %v546_v42 }
 0x15c   : > { %1361 = vmatprep.subr.bf16.mxu0 %v1885_v47  ;;  %1402 = vmatprep.subr.bf16.mxu1 %v1888_v48 }
 0x15f   : > { %1362 = vmatpush1.bf16.msra.mxu0 %v1883_v49  ;;  %1403 = vmatpush1.bf16.msra.mxu1 %v1886_v50 }
 0x160   : > { %1363 = vmatprep.subr.bf16.mxu0 %v1891_v51  ;;  %1404 = vmatprep.subr.bf16.mxu1 %v1894_v52 }
 0x163   : > { %1364 = vmatpush1.bf16.msra.mxu0 %v1889_v53  ;;  %1405 = vmatpush1.bf16.msra.mxu1 %v1892_v54 }
 0x164   : > { %1365 = vmatprep.subr.bf16.mxu0 %v1897_v55  ;;  %1406 = vmatprep.subr.bf16.mxu1 %v1900_v56 }
 0x167   : > { %1366 = vmatpush1.bf16.msra.mxu0 %v1895_v57  ;;  %1407 = vmatpush1.bf16.msra.mxu1 %v1898_v58 }
 0x168   : > { %1367 = vmatprep.subr.bf16.mxu0 %v1903_v59  ;;  %1408 = vmatprep.subr.bf16.mxu1 %v1906_v60 }
 0x16b   : > { %1368 = vmatpush1.bf16.msra.mxu0 %v1901_v61  ;;  %1409 = vmatpush1.bf16.msra.mxu1 %v1904_v62 }
 0x16c   : > { %1369 = vmatprep.subr.bf16.mxu0 %v1909_v63  ;;  %1410 = vmatprep.subr.bf16.mxu1 %v1912_v0 }
 0x16f   : > { %1370 = vmatpush1.bf16.msra.mxu0 %v1907_v3  ;;  %1411 = vmatpush1.bf16.msra.mxu1 %v1910_v4  ;;  %v449_v4 = vld [vmem:[%s2507_s6] sm:$0x3] }
 0x170   : > { %1371 = vmatprep.subr.bf16.mxu0 %v1915_v5  ;;  %1412 = vmatprep.subr.bf16.mxu1 %v1918_v6  ;;  %v454_v5 = vrot.slane %v449_v4, %v2270_v20  ;;  %v458_v6 = vrot.slane %v449_v4, %v2273_v21 }
 0x173   : > { %1372 = vmatpush1.bf16.msra.mxu0 %v1913_v7  ;;  %1413 = vmatpush1.bf16.msra.mxu1 %v1916_v8  ;;  %v461_v7 = vadd.f32 %v454_v5, %v2053_v1 }
 0x174   : > { %1373 = vmatprep.subr.bf16.mxu0 %v1921_v9  ;;  %1414 = vmatprep.subr.bf16.mxu1 %v1924_v10  ;;  %v462_v10 = vadd.f32 %v458_v6, %v2055_v2 }
 0x177   : > { %1374 = vmatpush1.bf16.msra.mxu0 %v1919_v11  ;;  %1415 = vmatpush1.bf16.msra.mxu1 %v1922_v12 }
 0x178   : > { %1375 = vmatprep.subr.bf16.mxu0 %v1927_v13  ;;  %1416 = vmatprep.subr.bf16.mxu1 %v1930_v14 }
 0x17b   : > { %1376 = vmatpush1.bf16.msra.mxu0 %v1925_v15  ;;  %1417 = vmatpush1.bf16.msra.mxu1 %v1928_v16 }
 0x17c   : > { %1377 = vmatprep.subr.bf16.mxu0 %v1933_v17  ;;  %1418 = vmatprep.subr.bf16.mxu1 %v1936_v18 }
 0x17f   : > { %1378 = vmatpush1.bf16.msra.mxu0 %v1931_v22  ;;  %1419 = vmatpush1.bf16.msra.mxu1 %v1934_v23 }
 0x180   : > { %1379 = vmatprep.subr.bf16.mxu0 %v1939_v24  ;;  %1420 = vmatprep.subr.bf16.mxu1 %v1942_v25 }
 0x183   : > { %1380 = vmatpush1.bf16.msra.mxu0 %v1937_v26  ;;  %1421 = vmatpush1.bf16.msra.mxu1 %v1940_v27 }
 0x184   : > { %1381 = vmatprep.subr.bf16.mxu0 %v1945_v28  ;;  %1422 = vmatprep.subr.bf16.mxu1 %v1948_v29 }
 0x187   : > { %1382 = vmatpush1.bf16.msra.mxu0 %v1943_v30  ;;  %1423 = vmatpush1.bf16.msra.mxu1 %v1946_v31 }
 0x188   : > { %1383 = vmatprep.subr.bf16.mxu0 %v1951_v32  ;;  %1424 = vmatprep.subr.bf16.mxu1 %v1954_v33 }
 0x18b   : > { %1384 = vmatpush1.bf16.msra.mxu0 %v1949_v34  ;;  %1425 = vmatpush1.bf16.msra.mxu1 %v1952_v35 }
 0x18c   : > { %1385 = vmatprep.subr.bf16.mxu0 %v1957_v36  ;;  %1426 = vmatprep.subr.bf16.mxu1 %v1960_v37 }
 0x18f   : > { %1386 = vmatpush1.bf16.msra.mxu0 %v1955_v38  ;;  %1427 = vmatpush1.bf16.msra.mxu1 %v1958_v39 }
 0x225   : > { %v913_v47 = vpop.f32.mrb[0].mxu0  ;;  %v954_v48 = vpop.f32.mrb[0].mxu1 }
 0x226   : > { %v914_v49 = vadd.f32 %v913_v47, %v535_v43  ;;  %v955_v50 = vadd.f32 %v954_v48, %v543_v44  ;;  %v915_v51 = vpop.f32.mrb[1].mxu0  ;;  %v956_v52 = vpop.f32.mrb[1].mxu1 }
 0x227   : > { %v916_v53 = vadd.f32 %v915_v51, %v539_v45  ;;  %v957_v54 = vadd.f32 %v956_v52, %v547_v46  ;;  %v917_v55 = vpop.f32.mrb[2].mxu0  ;;  %v958_v56 = vpop.f32.mrb[2].mxu1 }
 0x228   : > { %v961_v57 = vmax.f32 %v914_v49, 0.0  ;;  %v963_v58 = vmax.f32 %v955_v50, 0.0  ;;  %v918_v59 = vpop.f32.mrb[3].mxu0  ;;  %v959_v19 = vpop.f32.mrb[3].mxu1 }
 0x229   : > { %v962_v60 = vmax.f32 %v916_v53, 0.0  ;;  %v964_v61 = vmax.f32 %v957_v54, 0.0 }
 0x22a   : > { %v967_v0 = vpack.c.bf16 %v961_v57, %v961_v57  ;;  %v969_v3 = vpack.c.bf16 %v963_v58, %v963_v58 }
 0x22b   : > { %v968_v62 = vpack.c.bf16 %v962_v60, %v962_v60  ;;  %v970_v63 = vpack.c.bf16 %v964_v61, %v964_v61 }
 0x22d   : > { %1387 = vmatprep.mubr.bf16.mxu0 %v968_v62  ;;  %1428 = vmatprep.mubr.bf16.mxu1 %v970_v63 }
 0x22e   : > { %1388 = vmatmul.mubr.bf16.vlgmr.msra.gmra.mrb[4].mxu0 %v967_v0  ;;  %1429 = vmatmul.mubr.bf16.vlgmr.msra.gmra.mrb[4].mxu1 %v969_v3 }
 0x301   : > { %v1389_v8 = vpop.f32.mrb[4].mxu0  ;;  %v1430_v9 = vpop.f32.mrb[4].mxu1 }
 0x302   : > { %v1431_v11 = vadd.f32 %v1430_v9, %v1389_v8  ;;  %v1391_v12 = vpop.f32.mrb[5].mxu0  ;;  %v1432_v13 = vpop.f32.mrb[5].mxu1 }
 0x303   : > { %v1433_v14 = vadd.f32 %v1432_v13, %v1391_v12  ;;  %v1393_v15 = vpop.f32.mrb[6].mxu0  ;;  %v1434_v16 = vpop.f32.mrb[6].mxu1 }
 0x304   : > { %v1437_v17 = vadd.f32 %v1431_v11, %v461_v7  ;;  %v1394_v18 = vpop.f32.mrb[7].mxu0  ;;  %v1435_v22 = vpop.f32.mrb[7].mxu1 }
 0x305   : > { %v1438_v23 = vadd.f32 %v1433_v14, %v462_v10 }
 0x307   : > { %v1742_v1 = vpack.c.bf16 %v1438_v23, %v1437_v17 }
 0x309   : > { %1454 = vst [vmem:[%s387_s23] sm:$0xff] %v1742_v1 }
 0x30a PF: > { %s17_s26 = sadd.s32 1, %s1985_s26   ;;  %s2509_s24 = smov %s1981_s25 }
 0x30b   : > { %p14_p5 = scmp.ge.s32.totalorder %s17_s26, 4   ;;  %s2510_s25 = smov %s2512_s27 }
 0x30d   :  { %16 = sbr.rel (!%p14_p5) target bundleno = 2 (0x2), region = 95 }

// kernel: mbart_model_forward.33
= control target key start
LH: loop header
LB: loop body
LE: loop exit
PB: predicated region body
PF: predicated region fallthrough
CT: control target
= control target key end

     0   :  { %s1173_s15 = smov 0   ;;  %s1175_s16 = smov 0   ;;  %s1413_s0 = inlined_call_operand.vmem [shape: bf16[2,8,256], index: 0, kind: input, shape index: {}]   ;;  %s1414_s1 = inlined_call_operand.vmem [shape: bf16[256,512], index: 1, kind: input, shape index: {}]   ;;  %s1415_s2 = inlined_call_operand.vmem [shape: f32[1,512], index: 2, kind: input, shape index: {}]   ;;  %s1416_s3 = inlined_call_operand.vmem [shape: bf16[2,8,256], index: 3, kind: output, shape index: {0}]   ;;  %s1417_s4 = inlined_call_operand.vmem [shape: bf16[2,8,256], index: 4, kind: output, shape index: {1}]  }
   0x1   :  { %s1177_s17 = smov 0  }
   0x2 LB: > { %s27_s18 = sadd.s32 1, %s1142_s16  ;;  %p920_p0 = scmp.ge.s32.totalorder %s1146_s17, 1  ;;  %s1146_s17 = sphi %s1177_s17, %s15_s17   ;;  %s1142_s16 = sphi %s1175_s16, %s1419_s16   ;;  %s1138_s15 = sphi %s1173_s15, %s1418_s15  }
   0x3   : > { %p29_p1 = scmp.ge.s32.totalorder %s27_s18, 2  ;;  %p187_p2 = scmp.lt.s32.totalorder %s1146_s17, 3 }
   0x5   : > { %s1421_s18 = smov (%p29_p1, %s27_s18), 0  ;;  %p188_p3 = pnand %p920_p0, %p187_p2 }
   0x6   : > { %v1026_v0 = vld [vmem:[%s1414_s1 + $0x4] ss:$16 sps:$4 sm:$0xff] (!%p188_p3)   ;;  %v1028_v1 = vld [vmem:[%s1414_s1 + $0xc] ss:$16 sps:$4 sm:$0xff] (!%p188_p3)   ;;  %v1030_v2 = vld [vmem:[%s1414_s1] ss:$16 sps:$4 sm:$0xff] (!%p188_p3)  }
   0x7   : > { %191 = sbr.rel (%p188_p3) target bundleno = 289 (0x121), region = 32  ;;  %671 = vmatprep.subr.bf16.mxu0 (!%p188_p3), %v1026_v0  ;;  %v1031_v3 = vld [vmem:[%s1414_s1 + $0x8] ss:$16 sps:$4 sm:$0xff] (!%p188_p3)   ;;  %712 = vmatprep.subr.bf16.mxu1 (!%p188_p3), %v1028_v1  ;;  %v1032_v4 = vld [vmem:[%s1414_s1 + $0x24] ss:$16 sps:$4 sm:$0xff] (!%p188_p3)   ;;  %p230_p4 = scmp.lt.s32.totalorder (!%p188_p3), %s1138_s15, 1 }
   0x8   : > { %672 = vmatpush1.bf16.msra.mxu0 (!%p188_p3), %v1030_v2  ;;  %713 = vmatpush1.bf16.msra.mxu1 (!%p188_p3), %v1031_v3  ;;  %v1034_v5 = vld [vmem:[%s1414_s1 + $0x2c] ss:$16 sps:$4 sm:$0xff] (!%p188_p3)   ;;  %v1036_v6 = vld [vmem:[%s1414_s1 + $0x20] ss:$16 sps:$4 sm:$0xff] (!%p188_p3)   ;;  %v1037_v7 = vld [vmem:[%s1414_s1 + $0x28] ss:$16 sps:$4 sm:$0xff] (!%p188_p3)   ;;  %v324_v3 = vlaneseq (!%p188_p3) }
   0x9   : > { %673 = vmatprep.subr.bf16.mxu0 (!%p188_p3), %v1032_v4  ;;  %714 = vmatprep.subr.bf16.mxu1 (!%p188_p3), %v1034_v5  ;;  %v1038_v8 = vld [vmem:[%s1414_s1 + $0x44] ss:$16 sps:$4 sm:$0xff] (!%p188_p3)   ;;  %v1040_v9 = vld [vmem:[%s1414_s1 + $0x4c] ss:$16 sps:$4 sm:$0xff] (!%p188_p3)   ;;  %v1042_v10 = vld [vmem:[%s1414_s1 + $0x40] ss:$16 sps:$4 sm:$0xff] (!%p188_p3)  }
   0xa   : > { %v1043_v11 = vld [vmem:[%s1414_s1 + $0x48] ss:$16 sps:$4 sm:$0xff] (!%p188_p3)   ;;  %v1044_v12 = vld [vmem:[%s1414_s1 + $0x64] ss:$16 sps:$4 sm:$0xff] (!%p188_p3)   ;;  %v1046_v13 = vld [vmem:[%s1414_s1 + $0x6c] ss:$16 sps:$4 sm:$0xff] (!%p188_p3)  }
   0xb   : > { %v1048_v14 = vld [vmem:[%s1414_s1 + $0x60] ss:$16 sps:$4 sm:$0xff] (!%p188_p3)   ;;  %v1049_v15 = vld [vmem:[%s1414_s1 + $0x68] ss:$16 sps:$4 sm:$0xff] (!%p188_p3)   ;;  %v1050_v16 = vld [vmem:[%s1414_s1 + $0x84] ss:$16 sps:$4 sm:$0xff] (!%p188_p3)  }
   0xc   : > { %674 = vmatpush1.bf16.msra.mxu0 (!%p188_p3), %v1036_v6  ;;  %715 = vmatpush1.bf16.msra.mxu1 (!%p188_p3), %v1037_v7  ;;  %v1052_v17 = vld [vmem:[%s1414_s1 + $0x8c] ss:$16 sps:$4 sm:$0xff] (!%p188_p3)   ;;  %v1054_v18 = vld [vmem:[%s1414_s1 + $0x80] ss:$16 sps:$4 sm:$0xff] (!%p188_p3)   ;;  %v1055_v19 = vld [vmem:[%s1414_s1 + $0x88] ss:$16 sps:$4 sm:$0xff] (!%p188_p3)  }
   0xd   : > { %675 = vmatprep.subr.bf16.mxu0 (!%p188_p3), %v1038_v8  ;;  %716 = vmatprep.subr.bf16.mxu1 (!%p188_p3), %v1040_v9  ;;  %v1056_v20 = vld [vmem:[%s1414_s1 + $0xa4] ss:$16 sps:$4 sm:$0xff] (!%p188_p3)   ;;  %v1058_v21 = vld [vmem:[%s1414_s1 + $0xac] ss:$16 sps:$4 sm:$0xff] (!%p188_p3)   ;;  %v1060_v22 = vld [vmem:[%s1414_s1 + $0xa0] ss:$16 sps:$4 sm:$0xff] (!%p188_p3)  }
   0xe   : > { %v1061_v23 = vld [vmem:[%s1414_s1 + $0xa8] ss:$16 sps:$4 sm:$0xff]   ;;  %v1062_v24 = vld [vmem:[%s1414_s1 + $0xc4] ss:$16 sps:$4 sm:$0xff]   ;;  %v1064_v25 = vld [vmem:[%s1414_s1 + $0xcc] ss:$16 sps:$4 sm:$0xff]  }
   0xf   : > { %v1066_v26 = vld [vmem:[%s1414_s1 + $0xc0] ss:$16 sps:$4 sm:$0xff]   ;;  %v1067_v27 = vld [vmem:[%s1414_s1 + $0xc8] ss:$16 sps:$4 sm:$0xff]   ;;  %v1068_v28 = vld [vmem:[%s1414_s1 + $0xe4] ss:$16 sps:$4 sm:$0xff]  }
  0x10   : > { %676 = vmatpush1.bf16.msra.mxu0 %v1042_v10  ;;  %717 = vmatpush1.bf16.msra.mxu1 %v1043_v11  ;;  %v1070_v29 = vld [vmem:[%s1414_s1 + $0xec] ss:$16 sps:$4 sm:$0xff]   ;;  %v1072_v30 = vld [vmem:[%s1414_s1 + $0xe0] ss:$16 sps:$4 sm:$0xff]   ;;  %v1073_v31 = vld [vmem:[%s1414_s1 + $0xe8] ss:$16 sps:$4 sm:$0xff]  }
  0x11   : > { %677 = vmatprep.subr.bf16.mxu0 %v1044_v12  ;;  %718 = vmatprep.subr.bf16.mxu1 %v1046_v13  ;;  %v1074_v32 = vld [vmem:[%s1414_s1 + $0x104] ss:$16 sps:$4 sm:$0xff]   ;;  %v1076_v33 = vld [vmem:[%s1414_s1 + $0x10c] ss:$16 sps:$4 sm:$0xff]   ;;  %v1078_v34 = vld [vmem:[%s1414_s1 + $0x100] ss:$16 sps:$4 sm:$0xff]  }
  0x12   : > { %v1079_v35 = vld [vmem:[%s1414_s1 + $0x108] ss:$16 sps:$4 sm:$0xff]   ;;  %v1080_v36 = vld [vmem:[%s1414_s1 + $0x124] ss:$16 sps:$4 sm:$0xff]   ;;  %s1423_s15 = smov (!%p230_p4, %s1138_s15), 1  ;;  %v325_v4 = vshrl.u32 %v324_v3, 7 }
  0x13   : > { %v1082_v37 = vld [vmem:[%s1414_s1 + $0x12c] ss:$16 sps:$4 sm:$0xff]   ;;  %v1084_v38 = vld [vmem:[%s1414_s1 + $0x120] ss:$16 sps:$4 sm:$0xff]   ;;  %v1085_v39 = vld [vmem:[%s1414_s1 + $0x128] ss:$16 sps:$4 sm:$0xff]  }
  0x14   : > { %678 = vmatpush1.bf16.msra.mxu0 %v1048_v14  ;;  %719 = vmatpush1.bf16.msra.mxu1 %v1049_v15  ;;  %v1086_v40 = vld [vmem:[%s1414_s1 + $0x144] ss:$16 sps:$4 sm:$0xff]   ;;  %s1318_s9 = sshll.u32 %s1423_s15, 3  ;;  %v1088_v41 = vld [vmem:[%s1414_s1 + $0x14c] ss:$16 sps:$4 sm:$0xff]   ;;  %v326_v5 = vsub.s32 0, %v325_v4 }
  0x15   : > { %679 = vmatprep.subr.bf16.mxu0 %v1050_v16  ;;  %720 = vmatprep.subr.bf16.mxu1 %v1052_v17  ;;  %v1090_v42 = vld [vmem:[%s1414_s1 + $0x140] ss:$16 sps:$4 sm:$0xff]   ;;  %v1091_v43 = vld [vmem:[%s1414_s1 + $0x148] ss:$16 sps:$4 sm:$0xff]   ;;  %s238_s15 = scalar_lea.vmem %s1413_s0, %s1318_s9  ;;  %v1092_v44 = vld [vmem:[%s1414_s1 + $0x164] ss:$16 sps:$4 sm:$0xff]   ;;  %s247_s22 = scalar_lea.vmem %s1416_s3, %s1318_s9 }
  0x16   : > { %v1094_v45 = vld [vmem:[%s1414_s1 + $0x16c] ss:$16 sps:$4 sm:$0xff]   ;;  %v257_v46 = vld [vmem:[%s238_s15] sm:$0xff]  ;;  %v1097_v49 = vld [vmem:[%s1414_s1 + $0x168] ss:$16 sps:$4 sm:$0xff]   ;;  %v334_v6 = vsub.s32 2, %v325_v4  ;;  %s256_s25 = scalar_lea.vmem %s1417_s4, %s1318_s9 }
  0x17   : > { %v928_v47 = vcombine.high %v257_v46, %v257_v46  ;;  %v1096_v48 = vld [vmem:[%s1414_s1 + $0x160] ss:$16 sps:$4 sm:$0xff]   ;;  %v1098_v50 = vld [vmem:[%s1414_s1 + $0x184] ss:$16 sps:$4 sm:$0xff]   ;;  %v1100_v51 = vld [vmem:[%s1414_s1 + $0x18c] ss:$16 sps:$4 sm:$0xff]   ;;  %v927_v2 = vcombine.low %v257_v46, %v257_v46 }
  0x18   : > { %680 = vmatpush1.bf16.msra.mxu0 %v1054_v18  ;;  %721 = vmatpush1.bf16.msra.mxu1 %v1055_v19  ;;  %v1102_v52 = vld [vmem:[%s1414_s1 + $0x180] ss:$16 sps:$4 sm:$0xff]   ;;  %v1103_v53 = vld [vmem:[%s1414_s1 + $0x188] ss:$16 sps:$4 sm:$0xff]   ;;  %v1104_v54 = vld [vmem:[%s1414_s1 + $0x1a4] ss:$16 sps:$4 sm:$0xff]  }
  0x19   : > { %681 = vmatprep.subr.bf16.mxu0 %v1056_v20  ;;  %722 = vmatprep.subr.bf16.mxu1 %v1058_v21  ;;  %v1106_v55 = vld [vmem:[%s1414_s1 + $0x1ac] ss:$16 sps:$4 sm:$0xff]   ;;  %v1108_v56 = vld [vmem:[%s1414_s1 + $0x1a0] ss:$16 sps:$4 sm:$0xff]   ;;  %v1109_v57 = vld [vmem:[%s1414_s1 + $0x1a8] ss:$16 sps:$4 sm:$0xff]  }
  0x1a   : > { %703 = vmatprep.mubr.bf16.mxu0 %v928_v47  ;;  %744 = vmatprep.mubr.bf16.mxu1 %v928_v47  ;;  %v1110_v58 = vld [vmem:[%s1414_s1 + $0x1c4] ss:$16 sps:$4 sm:$0xff]   ;;  %v1112_v59 = vld [vmem:[%s1414_s1 + $0x1cc] ss:$16 sps:$4 sm:$0xff]   ;;  %v1114_v60 = vld [vmem:[%s1414_s1 + $0x1c0] ss:$16 sps:$4 sm:$0xff]  }
  0x1b   : > { %v1115_v61 = vld [vmem:[%s1414_s1 + $0x1c8] ss:$16 sps:$4 sm:$0xff]   ;;  %v1116_v62 = vld [vmem:[%s1414_s1 + $0x1e4] ss:$16 sps:$4 sm:$0xff]   ;;  %v1118_v63 = vld [vmem:[%s1414_s1 + $0x1ec] ss:$16 sps:$4 sm:$0xff]  }
  0x1c   : > { %682 = vmatpush1.bf16.msra.mxu0 %v1060_v22  ;;  %723 = vmatpush1.bf16.msra.mxu1 %v1061_v23  ;;  %v1120_v0 = vld [vmem:[%s1414_s1 + $0x1e0] ss:$16 sps:$4 sm:$0xff]   ;;  %v1121_v1 = vld [vmem:[%s1414_s1 + $0x1e8] ss:$16 sps:$4 sm:$0xff]   ;;  %v330_v8 = vsub.s32 1, %v325_v4  ;;  %v338_v9 = vsub.s32 3, %v325_v4 }
  0x1d   : > { %683 = vmatprep.subr.bf16.mxu0 %v1062_v24  ;;  %724 = vmatprep.subr.bf16.mxu1 %v1064_v25  ;;  %v322_v7 = vld [vmem:[%s1415_s2] sm:$0xf] }
  0x1e   : > { %v327_v10 = vrot.slane %v322_v7, %v326_v5  ;;  %v335_v11 = vrot.slane %v322_v7, %v334_v6  ;;  %v331_v12 = vrot.slane %v322_v7, %v330_v8  ;;  %v339_v13 = vrot.slane %v322_v7, %v338_v9 }
  0x20   : > { %684 = vmatpush1.bf16.msra.mxu0 %v1066_v26  ;;  %725 = vmatpush1.bf16.msra.mxu1 %v1067_v27 }
  0x21   : > { %685 = vmatprep.subr.bf16.mxu0 %v1068_v28  ;;  %726 = vmatprep.subr.bf16.mxu1 %v1070_v29 }
  0x24   : > { %686 = vmatpush1.bf16.msra.mxu0 %v1072_v30  ;;  %727 = vmatpush1.bf16.msra.mxu1 %v1073_v31 }
  0x25   : > { %687 = vmatprep.subr.bf16.mxu0 %v1074_v32  ;;  %728 = vmatprep.subr.bf16.mxu1 %v1076_v33 }
  0x28   : > { %688 = vmatpush1.bf16.msra.mxu0 %v1078_v34  ;;  %729 = vmatpush1.bf16.msra.mxu1 %v1079_v35 }
  0x29   : > { %689 = vmatprep.subr.bf16.mxu0 %v1080_v36  ;;  %730 = vmatprep.subr.bf16.mxu1 %v1082_v37 }
  0x2c   : > { %690 = vmatpush1.bf16.msra.mxu0 %v1084_v38  ;;  %731 = vmatpush1.bf16.msra.mxu1 %v1085_v39 }
  0x2d   : > { %691 = vmatprep.subr.bf16.mxu0 %v1086_v40  ;;  %732 = vmatprep.subr.bf16.mxu1 %v1088_v41 }
  0x30   : > { %692 = vmatpush1.bf16.msra.mxu0 %v1090_v42  ;;  %733 = vmatpush1.bf16.msra.mxu1 %v1091_v43 }
  0x31   : > { %693 = vmatprep.subr.bf16.mxu0 %v1092_v44  ;;  %734 = vmatprep.subr.bf16.mxu1 %v1094_v45 }
  0x34   : > { %694 = vmatpush1.bf16.msra.mxu0 %v1096_v48  ;;  %735 = vmatpush1.bf16.msra.mxu1 %v1097_v49 }
  0x35   : > { %695 = vmatprep.subr.bf16.mxu0 %v1098_v50  ;;  %736 = vmatprep.subr.bf16.mxu1 %v1100_v51 }
  0x38   : > { %696 = vmatpush1.bf16.msra.mxu0 %v1102_v52  ;;  %737 = vmatpush1.bf16.msra.mxu1 %v1103_v53 }
  0x39   : > { %697 = vmatprep.subr.bf16.mxu0 %v1104_v54  ;;  %738 = vmatprep.subr.bf16.mxu1 %v1106_v55 }
  0x3c   : > { %698 = vmatpush1.bf16.msra.mxu0 %v1108_v56  ;;  %739 = vmatpush1.bf16.msra.mxu1 %v1109_v57 }
  0x3d   : > { %699 = vmatprep.subr.bf16.mxu0 %v1110_v58  ;;  %740 = vmatprep.subr.bf16.mxu1 %v1112_v59 }
  0x40   : > { %700 = vmatpush1.bf16.msra.mxu0 %v1114_v60  ;;  %741 = vmatpush1.bf16.msra.mxu1 %v1115_v61 }
  0x41   : > { %701 = vmatprep.subr.bf16.mxu0 %v1116_v62  ;;  %742 = vmatprep.subr.bf16.mxu1 %v1118_v63 }
  0x44   : > { %702 = vmatpush1.bf16.msra.mxu0 %v1120_v0  ;;  %743 = vmatpush1.bf16.msra.mxu1 %v1121_v1 }
  0x47   : > { %704 = vmatmul.mubr.bf16.vlgmr.msra.gmra.mrb[0].mxu0 %v927_v2  ;;  %745 = vmatmul.mubr.bf16.vlgmr.msra.gmra.mrb[0].mxu1 %v927_v2 }
 0x11a   : > { %v705_v14 = vpop.f32.mrb[0].mxu0  ;;  %v746_v15 = vpop.f32.mrb[0].mxu1 }
 0x11b   : > { %v706_v16 = vadd.f32 %v705_v14, %v327_v10  ;;  %v747_v17 = vadd.f32 %v746_v15, %v335_v11  ;;  %v707_v18 = vpop.f32.mrb[1].mxu0  ;;  %v748_v19 = vpop.f32.mrb[1].mxu1 }
 0x11c   : > { %v708_v20 = vadd.f32 %v707_v18, %v331_v12  ;;  %v749_v21 = vadd.f32 %v748_v19, %v339_v13  ;;  %v709_v22 = vpop.f32.mrb[2].mxu0  ;;  %v750_v23 = vpop.f32.mrb[2].mxu1 }
 0x11d   : > { %v710_v24 = vpop.f32.mrb[3].mxu0  ;;  %v751_v25 = vpop.f32.mrb[3].mxu1 }
 0x11e   : > { %v1000_v26 = vpack.c.bf16 %v708_v20, %v706_v16  ;;  %v1001_v27 = vpack.c.bf16 %v749_v21, %v747_v17 }
 0x120   : > { %761 = vst [vmem:[%s247_s22] sm:$0xff] %v1000_v26  ;;  %770 = vst [vmem:[%s256_s25] sm:$0xff] %v1001_v27 }
 0x121 PF: > { %s15_s17 = sadd.s32 1, %s1146_s17   ;;  %s1418_s15 = smov %s1142_s16 }
 0x122   : > { %p12_p5 = scmp.ge.s32.totalorder %s15_s17, 4   ;;  %s1419_s16 = smov %s1421_s18 }
 0x124   :  { %14 = sbr.rel (!%p12_p5) target bundleno = 2 (0x2), region = 74 }

// kernel: mbart_model_forward.29
= control target key start
LH: loop header
LB: loop body
LE: loop exit
PB: predicated region body
PF: predicated region fallthrough
CT: control target
= control target key end

     0   :  { %s2185_s0 = inlined_call_operand.vmem [shape: bf16[2,8,256], index: 0, kind: input, shape index: {}]   ;;  %s2186_s1 = inlined_call_operand.vmem [shape: f32[1,256], index: 1, kind: input, shape index: {}]   ;;  %s2187_s2 = inlined_call_operand.vmem [shape: f32[1,256], index: 2, kind: input, shape index: {}]   ;;  %s2188_s3 = inlined_call_operand.vmem [shape: bf16[256,256], index: 3, kind: input, shape index: {}]   ;;  %s2189_s4 = inlined_call_operand.vmem [shape: f32[1,256], index: 4, kind: input, shape index: {}]   ;;  %s2190_s5 = inlined_call_operand.vmem [shape: bf16[2,8,256], index: 5, kind: input, shape index: {}]   ;;  %s2191_s6 = inlined_call_operand.vmem [shape: bf16[2,8,256], index: 6, kind: input, shape index: {}]   ;;  %s2192_s7 = inlined_call_operand.vmem [shape: bf16[256,256], index: 7, kind: input, shape index: {}]   ;;  %s2193_s8 = inlined_call_operand.vmem [shape: f32[1,256], index: 8, kind: input, shape index: {}]   ;;  %s2194_s9 = inlined_call_operand.vmem [shape: bf16[2,8,256], index: 9, kind: output, shape index: {0}]   ;;  %s2195_s10 = inlined_call_operand.hbm [shape: f32[2,2,8,8], index: 10, kind: output, shape index: {1}]  }
   0x1   :  { %2206 = sst [smem:[#allocation17_spill]] %s2185_s0 }
   0x2   :  { %2207 = sst [smem:[#allocation18_spill]] %s2186_s1 }
   0x3   :  { %2208 = sst [smem:[#allocation19_spill]] %s2187_s2 }
   0x4   :  { %2209 = sst [smem:[#allocation20_spill]] %s2188_s3 }
   0x5   :  { %2210 = sst [smem:[#allocation21_spill]] %s2195_s10 }
   0x6   :  { %16 = vsyncpa [#allocation5], 0 }
   0x7   :  { %18 = vsyncpa [#allocation5 + $0x1], 0  ;;  %s1855_s13 = smov 0   ;;  %s1857_s14 = smov 0  }
   0x8   :  { %s1859_s15 = smov 0   ;;  %s1861_s16 = smov 0  }
   0x9   :  { %s1863_s17 = smov 0   ;;  %s1865_s18 = smov 0  }
   0xa   :  { %s1867_s19 = smov 0   ;;  %s1869_s20 = smov 0  }
   0xb   :  { %s1871_s21 = smov 0   ;;  %s1873_s22 = smov 0  }
   0xc LB: > { %2211 = sst [smem:[#allocation7_spill]] %s1758_s13  ;;  %s1444_s23 = sadd.s32 4294967295, %s1794_s22   ;;  %s1794_s22 = sphi %s1873_s22, %s24_s22   ;;  %s1790_s21 = sphi %s1871_s21, %s2240_s21   ;;  %s1786_s20 = sphi %s1869_s20, %s2239_s20   ;;  %s1782_s19 = sphi %s1867_s19, %s2238_s19   ;;  %s1778_s18 = sphi %s1865_s18, %s2237_s18   ;;  %s1774_s17 = sphi %s1863_s17, %s2236_s17   ;;  %s1770_s16 = sphi %s1861_s16, %s2243_s16   ;;  %s1766_s15 = sphi %s1859_s15, %s2234_s15   ;;  %s1762_s14 = sphi %s1857_s14, %s2242_s14   ;;  %s1758_s13 = sphi %s1855_s13, %s2241_s13  }
   0xd   : > { %2212 = sst [smem:[#allocation8_spill]] %s1766_s15  ;;  %s1445_s24 = sadd.s32 4294967294, %s1794_s22  }
   0xe   : > { %2213 = sst [smem:[#allocation9_spill]] %s1774_s17  ;;  %s36_s25 = sadd.s32 1, %s1786_s20 }
   0xf   : > { %2214 = sst [smem:[#allocation10_spill]] %s1786_s20  ;;  %s43_s26 = sadd.s32 1, %s1790_s21 }
  0x10   : > { %2215 = sst [smem:[#allocation11_spill]] %s1790_s21  ;;  %p37_p0 = scmp.ge.s32.totalorder %s36_s25, 2 }
  0x11   : > { %s120_s27 = sadd.s32 1, %s1774_s17  ;;  %p127_p1 = scmp.ne.s32.totalorder %s1774_s17, %s1770_s16 }
  0x12   : > { %p128_p2 = scmp.eq.s32.totalorder %s1794_s22, 0  ;;  %s2245_s25 = smov (%p37_p0, %s36_s25), 0 }
  0x13   : > { %2216 = sst [smem:[#allocation12_spill]] %s2245_s25  ;;  %s2247_s26 = smov (!%p37_p0, %s43_s26), %s1790_s21 }
  0x14   : > { %s117_s28 = ssub.s32 %s1786_s20, %s2245_s25  ;;  %p1918_p3 = por %p128_p2, %p127_p1 }
  0x15   : > { %p45_p4 = scmp.ge.s32.totalorder %s2247_s26, 2  ;;  %p118_p5 = scmp.eq.s32.totalorder %s117_s28, 0 }
  0x16   : > { %s307_s30 = sadd.s32 1, %s1766_s15  ;;  %p317_p6 = scmp.ne.s32.totalorder %s1766_s15, %s1762_s14 }
  0x17   : > { %s2249_s26 = smov (%p45_p4, %s2247_s26), 0  ;;  %p318_p7 = scmp.eq.s32.totalorder %s1444_s23, 3 }
  0x18   : > { %2218 = sst [smem:[#allocation13_spill]] %s2249_s26  ;;  %s300_s12 = ssub.s32 %s1790_s21, %s2249_s26 }
  0x19   : > { %s1928_s11 = scalar_select %p118_p5, %s1774_s17, %s120_s27  }
  0x1a   : > { %s302_s10 = sor.u32 %s300_s12, %s117_s28  ;;  %p323_p8 = scmp.ne.s32.totalorder %s1762_s14, %s1758_s13 }
  0x1b   : > { %2219 = sst [smem:[#allocation14_spill]] %s1928_s11  ;;  %p305_p9 = scmp.eq.s32.totalorder %s302_s10, 0 }
  0x1c   : > { %p1934_p10 = por %p318_p7, %p317_p6  ;;  %p324_p11 = scmp.eq.s32.totalorder %s1445_s24, 3 }
  0x1d   : > { %s1939_s2 = scalar_select %p305_p9, %s1766_s15, %s307_s30  }
  0x1e   : > { %p1941_p12 = por %p324_p11, %p323_p8  ;;  %p1447_p13 = scmp.ge.s32.totalorder %s1794_s22, 4 }
  0x1f   : > { %2221 = sst [smem:[#allocation15_spill]] %s1939_s2 }
  0x20   : > { %s2222_s1 = scalar_select %p1941_p12, 1, 0 }
  0x21   : > { %349 = sbr.rel (%p1447_p13) target bundleno = 71 (0x47), region = 28 }
  0x22   : > { %2223 = sst [smem:[#allocation16_spill]] %s2222_s1 }
  0x28   : > { %364 = sbr.rel (!%p1918_p3) target bundleno = 71 (0x47), region = 36  ;;  %s366_s10 = sand.u32 (%p1918_p3), 1, %s1774_s17  }
  0x29   : > { %s1449_s23 = sshll.u32 (%p1918_p3), %s1786_s20, 2  ;;  %s1448_s27 = sshll.u32 (%p1918_p3), %s366_s10, 7 }
  0x2a   : > { %s2224_s3 = sld [smem:[#allocation20_spill]] (%p1918_p3)  ;;  %s1957_s29 = scalar_lea.vmem (%p1918_p3), [#allocation3], %s1448_s27 }
  0x30   : > { %s1953_s24 = scalar_lea.vmem %s2224_s3, %s1449_s23 }
  0x31   : > { %v386_v0 = vld [vmem:[%s1953_s24] sm:$0xf]  ;;  %v388_v1 = vld [vmem:[%s1953_s24 + $0x8] sm:$0xf]  ;;  %v390_v2 = vld [vmem:[%s1953_s24 + $0x10] sm:$0xf] }
  0x32   : > { %387 = vst [vmem:[%s1957_s29] sm:$0xf] %v386_v0  ;;  %389 = vst [vmem:[%s1957_s29 + $0x4] sm:$0xf] %v388_v1  ;;  %v392_v3 = vld [vmem:[%s1953_s24 + $0x18] sm:$0xf] }
  0x33   : > { %v394_v4 = vld [vmem:[%s1953_s24 + $0x20] sm:$0xf]  ;;  %391 = vst [vmem:[%s1957_s29 + $0x8] sm:$0xf] %v390_v2  ;;  %393 = vst [vmem:[%s1957_s29 + $0xc] sm:$0xf] %v392_v3 }
  0x34   : > { %395 = vst [vmem:[%s1957_s29 + $0x10] sm:$0xf] %v394_v4  ;;  %v396_v5 = vld [vmem:[%s1953_s24 + $0x28] sm:$0xf]  ;;  %v398_v6 = vld [vmem:[%s1953_s24 + $0x30] sm:$0xf] }
  0x35   : > { %v400_v7 = vld [vmem:[%s1953_s24 + $0x38] sm:$0xf]  ;;  %397 = vst [vmem:[%s1957_s29 + $0x14] sm:$0xf] %v396_v5  ;;  %399 = vst [vmem:[%s1957_s29 + $0x18] sm:$0xf] %v398_v6 }
  0x36   : > { %401 = vst [vmem:[%s1957_s29 + $0x1c] sm:$0xf] %v400_v7  ;;  %v402_v8 = vld [vmem:[%s1953_s24 + $0x40] sm:$0xf]  ;;  %v404_v9 = vld [vmem:[%s1953_s24 + $0x48] sm:$0xf] }
  0x37   : > { %v406_v10 = vld [vmem:[%s1953_s24 + $0x50] sm:$0xf]  ;;  %403 = vst [vmem:[%s1957_s29 + $0x20] sm:$0xf] %v402_v8  ;;  %405 = vst [vmem:[%s1957_s29 + $0x24] sm:$0xf] %v404_v9 }
  0x38   : > { %407 = vst [vmem:[%s1957_s29 + $0x28] sm:$0xf] %v406_v10  ;;  %v408_v11 = vld [vmem:[%s1953_s24 + $0x58] sm:$0xf]  ;;  %v410_v12 = vld [vmem:[%s1953_s24 + $0x60] sm:$0xf] }
  0x39   : > { %v412_v13 = vld [vmem:[%s1953_s24 + $0x68] sm:$0xf]  ;;  %409 = vst [vmem:[%s1957_s29 + $0x2c] sm:$0xf] %v408_v11  ;;  %411 = vst [vmem:[%s1957_s29 + $0x30] sm:$0xf] %v410_v12 }
  0x3a   : > { %413 = vst [vmem:[%s1957_s29 + $0x34] sm:$0xf] %v412_v13  ;;  %v414_v14 = vld [vmem:[%s1953_s24 + $0x70] sm:$0xf]  ;;  %v416_v15 = vld [vmem:[%s1953_s24 + $0x78] sm:$0xf] }
  0x3b   : > { %v418_v16 = vld [vmem:[%s1953_s24 + $0x80] sm:$0xf]  ;;  %415 = vst [vmem:[%s1957_s29 + $0x38] sm:$0xf] %v414_v14  ;;  %417 = vst [vmem:[%s1957_s29 + $0x3c] sm:$0xf] %v416_v15 }
  0x3c   : > { %419 = vst [vmem:[%s1957_s29 + $0x40] sm:$0xf] %v418_v16  ;;  %v420_v17 = vld [vmem:[%s1953_s24 + $0x88] sm:$0xf]  ;;  %v422_v18 = vld [vmem:[%s1953_s24 + $0x90] sm:$0xf] }
  0x3d   : > { %v424_v19 = vld [vmem:[%s1953_s24 + $0x98] sm:$0xf]  ;;  %421 = vst [vmem:[%s1957_s29 + $0x44] sm:$0xf] %v420_v17  ;;  %423 = vst [vmem:[%s1957_s29 + $0x48] sm:$0xf] %v422_v18 }
  0x3e   : > { %425 = vst [vmem:[%s1957_s29 + $0x4c] sm:$0xf] %v424_v19  ;;  %v426_v20 = vld [vmem:[%s1953_s24 + $0xa0] sm:$0xf]  ;;  %v428_v21 = vld [vmem:[%s1953_s24 + $0xa8] sm:$0xf] }
  0x3f   : > { %v430_v22 = vld [vmem:[%s1953_s24 + $0xb0] sm:$0xf]  ;;  %427 = vst [vmem:[%s1957_s29 + $0x50] sm:$0xf] %v426_v20  ;;  %429 = vst [vmem:[%s1957_s29 + $0x54] sm:$0xf] %v428_v21 }
  0x40   : > { %431 = vst [vmem:[%s1957_s29 + $0x58] sm:$0xf] %v430_v22  ;;  %v432_v23 = vld [vmem:[%s1953_s24 + $0xb8] sm:$0xf]  ;;  %v434_v24 = vld [vmem:[%s1953_s24 + $0xc0] sm:$0xf] }
  0x41   : > { %v436_v25 = vld [vmem:[%s1953_s24 + $0xc8] sm:$0xf]  ;;  %433 = vst [vmem:[%s1957_s29 + $0x5c] sm:$0xf] %v432_v23  ;;  %435 = vst [vmem:[%s1957_s29 + $0x60] sm:$0xf] %v434_v24 }
  0x42   : > { %437 = vst [vmem:[%s1957_s29 + $0x64] sm:$0xf] %v436_v25  ;;  %v438_v26 = vld [vmem:[%s1953_s24 + $0xd0] sm:$0xf]  ;;  %v440_v27 = vld [vmem:[%s1953_s24 + $0xd8] sm:$0xf] }
  0x43   : > { %v442_v28 = vld [vmem:[%s1953_s24 + $0xe0] sm:$0xf]  ;;  %439 = vst [vmem:[%s1957_s29 + $0x68] sm:$0xf] %v438_v26  ;;  %441 = vst [vmem:[%s1957_s29 + $0x6c] sm:$0xf] %v440_v27 }
  0x44   : > { %443 = vst [vmem:[%s1957_s29 + $0x70] sm:$0xf] %v442_v28  ;;  %v444_v29 = vld [vmem:[%s1953_s24 + $0xe8] sm:$0xf]  ;;  %v446_v30 = vld [vmem:[%s1953_s24 + $0xf0] sm:$0xf] }
  0x45   : > { %v448_v31 = vld [vmem:[%s1953_s24 + $0xf8] sm:$0xf]  ;;  %445 = vst [vmem:[%s1957_s29 + $0x74] sm:$0xf] %v444_v29  ;;  %447 = vst [vmem:[%s1957_s29 + $0x78] sm:$0xf] %v446_v30 }
  0x46   : > { %449 = vst [vmem:[%s1957_s29 + $0x7c] sm:$0xf] %v448_v31 }
  0x47 PF: > { %p1450_p0 = scmp.ge.s32.totalorder %s1794_s22, 1  ;;  %p573_p1 = scmp.lt.s32.totalorder %s1794_s22, 5 }
  0x49   : > { %p574_p2 = pnand %p1450_p0, %p573_p1 }
  0x4a   : > { %s580_s30 = sand.u32 (!%p574_p2), 1, %s1770_s16   ;;  %s2201_s10 = sand.u32 (!%p574_p2), 1, %s1762_s14  }
  0x4b   : > { %577 = sbr.rel (%p574_p2) target bundleno = 1632 (0x660), region = 93  ;;  %s1451_s23 = sshll.u32 (!%p574_p2), %s580_s30, 7 }
  0x4c   : > { %s2027_s27 = sshll.u32 (!%p574_p2), %s2201_s10, 3  ;;  %p660_p3 = scmp.lt.s32.totalorder (!%p574_p2), %s1782_s19, 1 }
  0x4d   : > { %p669_p4 = scmp.lt.s32.totalorder (!%p574_p2), %s1778_s18, 1  ;;  %s1459_s28 = sshll.u32 (!%p574_p2), %s1778_s18, 4 }
  0x4e   : > { %s2225_s0 = sld [smem:[#allocation17_spill]] (!%p574_p2)  ;;  %p689_p5 = scmp.lt.s32.totalorder (!%p574_p2), %s1459_s28, 31 }
  0x4f   : > { %s2064_s15 = scalar_lea.vmem (!%p574_p2), [#allocation3], %s1451_s23  ;;  %p1464_p6 = scmp.ne.s32.totalorder (!%p574_p2), %s1778_s18, 0 }
  0x52   : > { %s661_s12 = scalar_select %p660_p3, %s1782_s19, 1 }
  0x53   : > { %s2034_s24 = scalar_select %p669_p4, %s1778_s18, 1 }
  0x54   : > { %s1506_s29 = sshll.u32 %s661_s12, 3  ;;  %s1455_s3 = sshll.u32 %s661_s12, 1  ;;  %v714_v35 = vlaneseq (!%p1464_p6)  ;;  %v712_v37 = vld [vmem:[%s2193_s8] sm:$0x3] (!%p1464_p6) }
  0x55   : > { %s668_s16 = scalar_lea.vmem %s2225_s0, %s1506_s29  ;;  %s671_s10 = scalar_lea.vmem %s2189_s4, %s2034_s24 }
  0x56   : > { %s677_s11 = sadd.s32 %s1455_s3, %s2034_s24  ;;  %v705_v32 = vld [vmem:[%s668_s16] sm:$0xff]  ;;  %s2047_s1 = scalar_lea.vmem %s2194_s9, %s1506_s29  ;;  %v715_v36 = vshrl.u32 (!%p1464_p6), %v714_v35, 7 }
  0x57   : > { %s1456_s17 = sshll.u32 %s677_s11, 2  ;;  %v706_v33 = vunpack.c.l.bf16 %v705_v32  ;;  %v707_v34 = vunpack.c.h.bf16 %v705_v32  ;;  %s2251_s28 = smov (!%p689_p5, %s1459_s28), 31 }
  0x58   : > { %s2052_s21 = scalar_lea.vmem %s2190_s5, %s1456_s17  ;;  %s2057_s20 = scalar_lea.vmem %s2191_s6, %s1456_s17  ;;  %v716_v38 = vsub.s32 (!%p1464_p6), 0, %v715_v36  ;;  %v720_v39 = vsub.s32 (!%p1464_p6), 1, %v715_v36 }
  0x59   : > { %s1507_s3 = sshll.u32 %s2251_s28, 3  ;;  %s659_s29 = scalar_lea.vmem [#allocation4], %s2027_s27 }
  0x5a   : > { %s2062_s2 = scalar_lea.vmem %s2192_s7, %s1507_s3  ;;  %711 = sbr.rel (%p1464_p6) target bundleno = 97 (0x61), region = 101  ;;  %v717_v40 = vrot.slane (!%p1464_p6), %v712_v37, %v716_v38  ;;  %v721_v41 = vrot.slane (!%p1464_p6), %v712_v37, %v720_v39 }
  0x5c   : > { %v724_v42 = vadd.f32 (!%p1464_p6), %v717_v40, %v706_v33  ;;  %v725_v43 = vadd.f32 (!%p1464_p6), %v721_v41, %v707_v34 }
  0x5e   : > { %726 = vst [vmem:[#allocation2] sm:$0xff] (!%p1464_p6), %v724_v42  ;;  %727 = vst [vmem:[#allocation2 + $0x8] sm:$0xff] (!%p1464_p6), %v725_v43 }
  0x61 PF: > { %v730_v44 = vadd.f32 %v707_v34, %v706_v33  ;;  %v1638_v45 = vld [vmem:[%s2064_s15 + $0x40] sm:$0xff]   ;;  %v1640_v47 = vld [vmem:[%s2064_s15 + $0x48] sm:$0xff]   ;;  %v1642_v56 = vld [vmem:[%s2064_s15 + $0x50] sm:$0xff]   ;;  %v748_v6 = vlaneseq  ;;  %s2226_s23 = sld [smem:[#allocation18_spill]]  ;;  %s2227_s26 = sld [smem:[#allocation19_spill]]  ;;  %v1796_v26 = vmov 0.0  }
  0x62   : > { %v1639_v46 = vld [vmem:[%s2064_s15] sm:$0xff]   ;;  %1510 = vmatprep.subr.bf16.mxu0 %v1638_v45  ;;  %v1641_v48 = vld [vmem:[%s2064_s15 + $0x8] sm:$0xff]   ;;  %v1643_v57 = vld [vmem:[%s2064_s15 + $0x10] sm:$0xff]   ;;  %1542 = vmatprep.subr.bf16.mxu1 %v1796_v26  ;;  %vm1797_vm0 = vmmov 0   ;;  %vm993_vm1 = vcmask 64512   ;;  %vm1011_vm2 = vcmask 1043456  }
  0x63   : > { %731 = vadd.xlane.f32.xlu0 %v730_v44  ;;  %1511 = vmatpush3.bf16.msra.mxu0 %v1639_v46  ;;  %v1644_v58 = vld [vmem:[%s2064_s15 + $0x58] sm:$0xff]   ;;  %v1646_v60 = vld [vmem:[%s2064_s15 + $0x60] sm:$0xff]   ;;  %v1648_v62 = vld [vmem:[%s2064_s15 + $0x68] sm:$0xff]   ;;  %v749_v8 = vshrl.u32 %v748_v6, 7  ;;  %p1499_p7 = scmp.ne.s32.totalorder %s1778_s18, 1 }
  0x64   : > { %1512 = vmatprep.subr.bf16.mxu0 %v1640_v47  ;;  %v1645_v59 = vld [vmem:[%s2064_s15 + $0x18] sm:$0xff]   ;;  %v1647_v61 = vld [vmem:[%s2064_s15 + $0x20] sm:$0xff]   ;;  %v1649_v63 = vld [vmem:[%s2064_s15 + $0x28] sm:$0xff]   ;;  %1544 = vmatprep.mubr.msk.bf16.mxu1 %vm1797_vm0, %v1796_v26 }
  0x65   : > { %v1650_v0 = vld [vmem:[%s2064_s15 + $0x70] sm:$0xff]   ;;  %v1652_v2 = vld [vmem:[%s2064_s15 + $0x78] sm:$0xff]   ;;  %v750_v9 = vsub.s32 0, %v749_v8  ;;  %v754_v10 = vsub.s32 1, %v749_v8 }
  0x66   : > { %v1651_v1 = vld [vmem:[%s2064_s15 + $0x30] sm:$0xff]   ;;  %v1653_v3 = vld [vmem:[%s2064_s15 + $0x38] sm:$0xff]  }
  0x67   : > { %1513 = vmatpush3.bf16.msra.mxu0 %v1641_v48  ;;  %v728_v11 = vld [vmem:[%s2226_s23] sm:$0x3] }
  0x68   : > { %1514 = vmatprep.subr.bf16.mxu0 %v1642_v56  ;;  %v729_v12 = vld [vmem:[%s2227_s26] sm:$0x3]  ;;  %v751_v13 = vrot.slane %v728_v11, %v750_v9  ;;  %v755_v14 = vrot.slane %v728_v11, %v754_v10  ;;  %v1657_v56 = vld [vmem:[%s2062_s2 + $0x10] ss:$8 sps:$4 sm:$0xff]  }
  0x69   : > { %v764_v17 = vrot.slane %v729_v12, %v750_v9  ;;  %v768_v18 = vrot.slane %v729_v12, %v754_v10  ;;  %v952_v27 = vld [vmem:[%s2052_s21] sm:$0xf]  ;;  %v1056_v12 = vld [vmem:[#allocation2 + $0x8] sm:$0xff] }
  0x6a   : > { %v1465_v29 = vld [vmem:[%s671_s10] ss:$0 sm:$0xff] }
  0x6b   : > { %1515 = vmatpush3.bf16.msra.mxu0 %v1643_v57  ;;  %v1007_v47 = vld [vmem:[%s2057_s20] sm:$0xf]  ;;  %v1662_v57 = vld [vmem:[%s2062_s2 + $0x24] ss:$8 sps:$4 sm:$0xff]  }
  0x6c   : > { %1516 = vmatprep.subr.bf16.mxu0 %v1644_v58  ;;  %v1013_v48 = vsel %vm1011_vm2, %v1007_v47, 0  ;;  %v1660_v58 = vld [vmem:[%s2062_s2 + $0x20] ss:$8 sps:$4 sm:$0xff]  }
  0x6d   : > { %1543 = vmatpush3.bf16.msra.mxu1 %v1013_v48  ;;  %v1055_v11 = vld [vmem:[#allocation2] sm:$0xff] }
  0x6f   : > { %1517 = vmatpush3.bf16.msra.mxu0 %v1645_v59  ;;  %v1665_v59 = vld [vmem:[%s2062_s2 + $0x34] ss:$8 sps:$4 sm:$0xff]  }
  0x70   : > { %1518 = vmatprep.subr.bf16.mxu0 %v1646_v60  ;;  %v1663_v60 = vld [vmem:[%s2062_s2 + $0x30] ss:$8 sps:$4 sm:$0xff]  }
  0x73   : > { %1519 = vmatpush3.bf16.msra.mxu0 %v1647_v61  ;;  %v1668_v61 = vld [vmem:[%s2062_s2 + $0x44] ss:$8 sps:$4 sm:$0xff]  }
  0x74   : > { %1520 = vmatprep.subr.bf16.mxu0 %v1648_v62  ;;  %v1666_v62 = vld [vmem:[%s2062_s2 + $0x40] ss:$8 sps:$4 sm:$0xff]  }
  0x77   : > { %1521 = vmatpush3.bf16.msra.mxu0 %v1649_v63  ;;  %v1671_v63 = vld [vmem:[%s2062_s2 + $0x54] ss:$8 sps:$4 sm:$0xff]  }
  0x78   : > { %1522 = vmatprep.subr.bf16.mxu0 %v1650_v0  ;;  %v1669_v0 = vld [vmem:[%s2062_s2 + $0x50] ss:$8 sps:$4 sm:$0xff]  }
  0x7b   : > { %1523 = vmatpush3.bf16.msra.mxu0 %v1651_v1  ;;  %v1674_v1 = vld [vmem:[%s2062_s2 + $0x64] ss:$8 sps:$4 sm:$0xff]  }
  0x7c   : > { %1524 = vmatprep.subr.bf16.mxu0 %v1652_v2  ;;  %v1672_v2 = vld [vmem:[%s2062_s2 + $0x60] ss:$8 sps:$4 sm:$0xff]  }
  0x7f   : > { %1525 = vmatpush3.bf16.msra.mxu0 %v1653_v3  ;;  %v1677_v3 = vld [vmem:[%s2062_s2 + $0x74] ss:$8 sps:$4 sm:$0xff]  }
  0x80   : > { %1536 = vmatprep.subr.bf16.mxu0 %v1796_v26 }
  0xf0   : > { %v732_v49 = vpop.xlane.xlu0 %731 }
  0xf1   : > { %v734_v50 = vmul.f32 0.00390625, %v732_v49  ;;  %v1656_v49 = vld [vmem:[%s2062_s2 + $0x4] ss:$8 sps:$4 sm:$0xff]  }
  0xf2   : > { %1154 = vmatprep.subr.bf16.mxu1 %v1656_v49 }
  0xf3   : > { %v735_v51 = vsub.f32 %v706_v33, %v734_v50  ;;  %v736_v52 = vsub.f32 %v707_v34, %v734_v50 }
  0xf5   : > { %v737_v53 = vmul.f32 %v735_v51, %v735_v51  ;;  %v738_v54 = vmul.f32 %v736_v52, %v736_v52 }
  0xf7   : > { %v739_v55 = vadd.f32 %v738_v54, %v737_v53  ;;  %v1654_v53 = vld [vmem:[%s2062_s2] ss:$8 sps:$4 sm:$0xff]  }
  0xf9   : > { %740 = vadd.xlane.f32.xlu0 %v739_v55  ;;  %v1659_v55 = vld [vmem:[%s2062_s2 + $0x14] ss:$8 sps:$4 sm:$0xff]  }
 0x186   : > { %v741_v4 = vpop.xlane.xlu0 %740 }
 0x187   : > { %v742_v5 = vmul.f32 0.00390625, %v741_v4  ;;  %v1675_v4 = vld [vmem:[%s2062_s2 + $0x70] ss:$8 sps:$4 sm:$0xff]  }
 0x189   : > { %v743_v7 = vadd.f32 1e-05, %v742_v5  ;;  %v1798_v5 = vmov 0  }
 0x18b   : > { %1678 = vrsqrt.f32 %v743_v7 }
 0x195   : > { %v1679_v15 = vpop.eup %1678 }
 0x196   : > { %v746_v16 = vmul.f32 %v1679_v15, %v736_v52  ;;  %v745_v19 = vmul.f32 %v1679_v15, %v735_v51 }
 0x198   : > { %v759_v20 = vmul.f32 %v755_v14, %v746_v16  ;;  %v758_v21 = vmul.f32 %v751_v13, %v745_v19 }
 0x19a   : > { %v772_v22 = vadd.f32 %v768_v18, %v759_v20  ;;  %v771_v23 = vadd.f32 %v764_v17, %v758_v21 }
 0x19c   : > { %v774_v24 = vpack.c.bf16 %v772_v22, %v772_v22  ;;  %v773_v25 = vpack.c.bf16 %v771_v23, %v771_v23 }
 0x19e   : > { %942 = vmatprep.mubr.bf16.mxu0 %v774_v24 }
 0x19f   : > { %943 = vmatmul.mubr.bf16.vlgmr.msra.gmra.mrb[0].mxu0 %v773_v25 }
 0x1a0   : > { %1537 = vmatpush3.bf16.xpose.msra.mxu0 %v952_v27  ;;  %1538 = vmatprep.mubr.msk.bf16.mxu0 %vm1797_vm0, %v1796_v26 }
 0x272   : > { %v1526_v28 = vpop.f32.mrb[0].mxu0 }
 0x273   : > { %v1527_v30 = vpop.f32.mrb[1].mxu0 }
 0x274   : > { %v1528_v31 = vadd.f32 %v1527_v30, %v1526_v28  ;;  %v1529_v32 = vpop.f32.mrb[2].mxu0 }
 0x275   : > { %v1530_v33 = vpop.f32.mrb[3].mxu0 }
 0x276   : > { %v945_v34 = vadd.f32 %v1528_v31, %v1465_v29 }
 0x278   : > { %v950_v35 = vmul.f32 0.088388346, %v945_v34 }
 0x27a   : > { %v951_v36 = vpack.c.bf16 %v950_v35, %v950_v35 }
 0x27c   : > { %1539 = vmatmul.mubr.bf16.vlgmr.msra.gmra.mrb[4].mxu0 %v951_v36 }
 0x34f   : > { %v987_v37 = vpop.f32.mrb[4].mxu0 }
 0x350   : > { %v1540_v38 = vpop.f32.mrb[5].mxu0  ;;  %v994_v39 = vsel %vm993_vm1, %v987_v37, -inf }
 0x351   : > { %995 = vmax.xlane.f32.xlu1 %v994_v39  ;;  %v990_v40 = vpop.f32.mrb[6].mxu0 }
 0x352   : > { %v1541_v41 = vpop.f32.mrb[7].mxu0 }
 0x3de   : > { %v996_v42 = vpop.xlane.xlu1 %995 }
 0x3df   : > { %v997_v43 = vsub.f32 %v987_v37, %v996_v42 }
 0x3e1   : > { %v998_v44 = vmul.f32 1.442695, %v997_v43 }
 0x3e3   : > { %1680 = vpow2.f32 %v998_v44 }
 0x3ed   : > { %v1681_v45 = vpop.eup %1680 }
 0x3ee   : > { %v1000_v46 = vsel %vm993_vm1, %v1681_v45, 0.0 }
 0x3ef   : > { %1001 = vadd.xlane.f32.xlu1 %v1000_v46 }
 0x47c   : > { %v1002_v50 = vpop.xlane.xlu1 %1001 }
 0x47d   : > { %1682 = vrcp.f32 %v1002_v50 }
 0x487   : > { %v1683_v51 = vpop.eup %1682 }
 0x488   : > { %v1004_v52 = vmul.f32 %v1683_v51, %v1681_v45 }
 0x48a   : > { %1005 = vst.msk [vmem:[%s659_s29] sm:$0xff] %vm993_vm1, %v1004_v52  ;;  %v1006_v54 = vpack.c.bf16 %v1004_v52, %v1004_v52 }
 0x48c   : > { %1545 = vmatmul.mubr.msk.bf16.vlgmr.msra.gmra.mrb[0].mxu1 %vm993_vm1, %v1006_v54 }
 0x48d   : > { %1155 = vmatpush1.bf16.msra.mxu1 %v1654_v53  ;;  %1186 = vmatprep.mubr.bf16.mxu1 %v1798_v5 }
 0x48e   : > { %1156 = vmatprep.subr.bf16.mxu1 %v1659_v55 }
 0x491   : > { %1157 = vmatpush1.bf16.msra.mxu1 %v1657_v56 }
 0x492   : > { %1158 = vmatprep.subr.bf16.mxu1 %v1662_v57 }
 0x495   : > { %1159 = vmatpush1.bf16.msra.mxu1 %v1660_v58 }
 0x496   : > { %1160 = vmatprep.subr.bf16.mxu1 %v1665_v59 }
 0x499   : > { %1161 = vmatpush1.bf16.msra.mxu1 %v1663_v60 }
 0x49a   : > { %1162 = vmatprep.subr.bf16.mxu1 %v1668_v61 }
 0x49d   : > { %1163 = vmatpush1.bf16.msra.mxu1 %v1666_v62 }
 0x49e   : > { %1164 = vmatprep.subr.bf16.mxu1 %v1671_v63 }
 0x4a1   : > { %1165 = vmatpush1.bf16.msra.mxu1 %v1669_v0 }
 0x4a2   : > { %1166 = vmatprep.subr.bf16.mxu1 %v1674_v1 }
 0x4a5   : > { %1167 = vmatpush1.bf16.msra.mxu1 %v1672_v2 }
 0x4a6   : > { %1168 = vmatprep.subr.bf16.mxu1 %v1677_v3 }
 0x4a9   : > { %1169 = vmatpush1.bf16.msra.mxu1 %v1675_v4 }
 0x55f   : > { %v1049_v6 = vpop.f32.mrb[0].mxu1 }
 0x560   : > { %v1057_v7 = vpack.c.bf16 %v1049_v6, %v1049_v6  ;;  %v1546_v8 = vpop.f32.mrb[1].mxu1 }
 0x561   : > { %v1052_v9 = vpop.f32.mrb[2].mxu1 }
 0x562   : > { %v1547_v10 = vpop.f32.mrb[3].mxu1  ;;  %1187 = vmatmul.mubr.bf16.vlgmr.msra.gmra.mrb[4].mxu1 %v1057_v7 }
 0x633   : > { %1202 = sbr.rel (%p1499_p7) target bundleno = 1604 (0x644), region = 105 }
 0x635   : > { %v1188_v13 = vpop.f32.mrb[4].mxu1 }
 0x636   : > { %v1195_v14 = vadd.f32 %v1188_v13, %v1055_v11  ;;  %v1190_v15 = vpop.f32.mrb[5].mxu1 }
 0x637   : > { %v1196_v16 = vadd.f32 %v1190_v15, %v1056_v12  ;;  %v1192_v17 = vpop.f32.mrb[6].mxu1 }
 0x638   : > { %1197 = vst [vmem:[#allocation2] sm:$0xff] %v1195_v14  ;;  %v1193_v18 = vpop.f32.mrb[7].mxu1 }
 0x639   : > { %1198 = vst [vmem:[#allocation2 + $0x8] sm:$0xff] %v1196_v16 }
 0x63f   : > { %v1203_v19 = vld [vmem:[#allocation2] sm:$0xff] }
 0x640   : > { %v1204_v20 = vld [vmem:[#allocation2 + $0x8] sm:$0xff] }
 0x641   : > { %v1509_v21 = vpack.c.bf16 %v1204_v20, %v1203_v19 }
 0x643   : > { %1213 = vst [vmem:[%s2047_s1] sm:$0xff] %v1509_v21 }
 0x644 PF: > { %s1502_s10 = sshll.u32 %s1782_s19, 1  ;;  %s1243_s21 = sshll.u32 %s659_s29, 4  ;;  %s2128_s21 = int_to_ptr.vmem [resolvable:$true] %s1243_s21 }
 0x645   : > { %s1239_s24 = sadd.s32 %s1778_s18, %s1502_s10  ;;  %s2228_s15 = sld [smem:[#allocation21_spill]] }
 0x646   : > { %s1503_s20 = sshll.u32 %s1239_s24, 7  ;;  %s2230_s13 = sand.u32 1, %s1762_s14  }
 0x647   : > { %s1224_s0 = scalar_lea.sflag [#allocation5], %s2230_s13  ;;  %s1684_s17 = scalar_lea.vmem %s2128_s21, 128 }
 0x648   : > { %p1685_p8 = scmp.ne.s32.totalorder %s2128_s21, %s1684_s17  ;;  %s1799_s18 = smov [#allocation4]  }
 0x649   : > { %s1688_s19 = sshll.u32 %s1799_s18, 4  ;;  %s1689_s19 = int_to_ptr.vmem [resolvable:$false] %s1688_s19 }
 0x64a   : > { %p1686_p9 = pnand %p1685_p8, %p1934_p10  ;;  %s1690_s27 = scalar_lea.vmem %s1689_s19, 256 }
 0x64b   : > { %s2229_s30 = smov %s2228_s15  ;;  %s1241_s1 = scalar_lea.hbm %s2228_s15, %s1503_s20 }
 0x64c   : > { %p1687_p11 = pneg %p1686_p9  ;;  %p1691_p13 = scmp.lt.s32.totalorder %s2128_s21, %s1689_s19 }
 0x64d   : > { %p1692_p0 = scmp.lt.s32.totalorder %s1690_s27, %s1684_s17 }
 0x64f   : > { %p1693_p1 = por %p1692_p0, %p1691_p13 }
 0x651   : > { %p1694_p2 = pnand %p1693_p1, %p1687_p11 }
 0x653   : > { %1697 = shalt.err (!%p1694_p2)
}
 0x654   : > { %s1698_s29 = scalar_lea.hbm %s1241_s1, 128  ;;  %s1702_s12 = scalar_lea.hbm %s2229_s30, 512 }
 0x655   : > { %p1699_p3 = scmp.ne.s32.totalorder %s1241_s1, %s1698_s29  ;;  %p1703_p6 = scmp.lt.u32.totalorder %s1241_s1, %s2229_s30 }
 0x656   : > { %p1704_p7 = scmp.lt.u32.totalorder %s1702_s12, %s1698_s29  ;;  %p1706_p9 = scmp.lt.u32.totalorder %s1698_s29, %s1241_s1 }
 0x657   : > { %p1700_p4 = pnand %p1699_p3, %p1934_p10 }
 0x658   : > { %p1705_p8 = por %p1704_p7, %p1703_p6 }
 0x659   : > { %p1701_p5 = pneg %p1700_p4 }
 0x65a   : > { %p1707_p13 = por %p1706_p9, %p1705_p8 }
 0x65c   : > { %p1708_p11 = pnand %p1707_p13, %p1701_p5 }
 0x65e   : > { %1711 = shalt.err (!%p1708_p11)
}
 0x65f   : > { %1548 = dma.vmem_to_hbm [thread:$0]  (%p1934_p10), %s2128_s21, 128, %s1241_s1, %s1224_s0  }
 0x660 PF: > { %s2231_s11 = sld [smem:[#allocation7_spill]]  ;;  %p1554_p0 = scmp.ge.s32.totalorder %s1794_s22, 2 }
 0x662   : > { %p1551_p1 = pnand %p1554_p0, %p1941_p12 }
 0x666   : > { %s1267_s24 = sand.u32 1, %s2231_s11  }
 0x667   : > { %s1268_s20 = scalar_lea.sflag [#allocation5], %s1267_s24 }
 0x668   : > { %1753 = dma.done.wait (!%p1551_p1), %s1268_s20, 128  }
 0x669   : > { %1755 = vsyncadd (!%p1551_p1), %s1268_s20, 4294967168  ;;  %s24_s22 = sadd.s32 1, %s1794_s22   ;;  %s2233_s16 = sld [smem:[#allocation8_spill]] }
 0x66a   : > { %p21_p2 = scmp.ge.s32.totalorder %s24_s22, 6   ;;  %s2234_s15 = sld [smem:[#allocation15_spill]] }
 0x66b   : > { %s2235_s25 = sld [smem:[#allocation9_spill]]  ;;  %s2236_s17 = sld [smem:[#allocation14_spill]] }
 0x66c   : > { %s2237_s18 = sld [smem:[#allocation10_spill]]  ;;  %s2238_s19 = sld [smem:[#allocation11_spill]] }
 0x66d   : > { %s2239_s20 = sld [smem:[#allocation12_spill]]  ;;  %s2240_s21 = sld [smem:[#allocation13_spill]] }
 0x66e   : > { %s2241_s13 = smov %s1762_s14  ;;  %23 = sbr.rel (!%p21_p2) target bundleno = 12 (0xc), region = 172 }
 0x66f   : > { %s2242_s14 = smov %s2233_s16 }
 0x671   : > { %s2243_s16 = smov %s2235_s25 }
 0x675   :  { %1273 = vsyncpa [#allocation5], 1 }
 0x676   :  { %1275 = vsyncpa [#allocation5 + $0x1], 1 }

</bundles_post_ra>
